<compile_context>
chip_gen: v5e
topology: v5e:2x2
jax: 0.10.0
libtpu: 0.0.40
codegen_flags: <defaults>
</compile_context>

<pallas_src>
import functools
import jax
import jax.numpy as jnp
from jax import lax
from jax.experimental import pallas as pl
from jax.experimental.pallas import tpu as pltpu

LN_EPS = 1e-5            # torch nn.LayerNorm default
L2_EPS = 1e-12           # torch F.normalize default
# Folded causal-mask value.  exp(x - rowmax) underflows to exactly 0 for this
# value just as it does for torch's -finfo.max fill, so softmax is identical,
# but it stays finite in bf16 and can never poison the running row-max.
MASK_VALUE = -1e30


def _vmem_limit_bytes():
    """Per-generation VMEM limit: ~54 MiB on v7x, ~109 MiB on v5e/v6e."""
    try:
        cap = pltpu.get_tpu_info().vmem_capacity_bytes
    except Exception:
        kind = jax.devices()[0].device_kind.lower()
        cap = (64 if "7" in kind else 128) * 1024 * 1024
    return int(cap * 0.85)


def _pick_seq_tile(n):
    for t in (256, 128):
        if n % t == 0:
            return t
    return n          # small / irregular N: single tile (block == full dim is legal)


def _pick_hidden_chunk(h):
    for c in (512, 256, 128):
        if h % c == 0:
            return c
    return h


def _layernorm(x, w, b):
    """x: (T, C) fp32, w/b: (1, C) fp32."""
    mu = jnp.mean(x, axis=-1, keepdims=True)
    var = jnp.mean(jnp.square(x - mu), axis=-1, keepdims=True)
    return (x - mu) * lax.rsqrt(var + LN_EPS) * w + b


# ----------------------- kernel 1: LN + QKV projection -----------------------
# grid (B, N//T).  Writes temp-scaled l2-normalized q, l2-normalized k, and the
# raw (pre-norm) k/v KV-cache, all lane-dense (.., T, H*Dh) in bf16.

def _qkv_kernel(x_ref, lnw_ref, lnb_ref, wqkv_ref, temp_ref,
                qh_ref, kh_ref, kv_ref, *, n_heads, head_dim):
    H, Dh = n_heads, head_dim
    HD = H * Dh
    x = x_ref[0]                                        # (T, C) f32
    T = x.shape[0]

    xn = _layernorm(x, lnw_ref[...], lnb_ref[...])
    qkv = jnp.dot(xn.astype(jnp.bfloat16), wqkv_ref[...],
                  preferred_element_type=jnp.float32)   # (T, 3*HD) f32
    q = qkv[:, 0 * HD:1 * HD]
    k = qkv[:, 1 * HD:2 * HD]
    v = qkv[:, 2 * HD:3 * HD]

    # raw (pre-l2norm) k/v -> bf16 KV cache, like torch attach_cache on qkv out
    kv_ref[0, 0] = k.astype(kv_ref.dtype)
    kv_ref[1, 0] = v.astype(kv_ref.dtype)

    temp = temp_ref[0, 0]                               # scalar from SMEM
    # per-head l2norm via rsqrt; temperature folded into q BEFORE the bf16 cast
    # so the softmax phase never rescales an (H, T, T) tensor.
    q3 = q.reshape(T, H, Dh)
    k3 = k.reshape(T, H, Dh)
    q_inv = lax.rsqrt(jnp.maximum(jnp.sum(q3 * q3, -1, keepdims=True),
                                  L2_EPS * L2_EPS))
    k_inv = lax.rsqrt(jnp.maximum(jnp.sum(k3 * k3, -1, keepdims=True),
                                  L2_EPS * L2_EPS))
    qh_ref[0] = (q3 * (q_inv * temp)).reshape(T, HD).astype(qh_ref.dtype)
    kh_ref[0] = (k3 * k_inv).reshape(T, HD).astype(kh_ref.dtype)


def qkv_project(x, lp, temperature, cfg):
    B, N, C = x.shape
    T, HD = cfg['T'], cfg['HD']
    nt = N // T
    kernel = functools.partial(_qkv_kernel, n_heads=cfg['H'], head_dim=cfg['Dh'])
    return pl.pallas_call(
        kernel,
        grid=(B, nt),
        in_specs=[
            pl.BlockSpec((1, T, C), lambda b, i: (b, i, 0)),          # x tile
            pl.BlockSpec((1, C), lambda b, i: (0, 0)),                # attn ln w
            pl.BlockSpec((1, C), lambda b, i: (0, 0)),                # attn ln b
            pl.BlockSpec((C, 3 * HD), lambda b, i: (0, 0)),           # W_qkv (bf16, grid-invariant)
            pl.BlockSpec(memory_space=pltpu.MemorySpace.SMEM),        # temperature scalar
        ],
        out_specs=[
            pl.BlockSpec((1, T, HD), lambda b, i: (b, i, 0)),         # q_hat = l2norm(q)*temp
            pl.BlockSpec((1, T, HD), lambda b, i: (b, i, 0)),         # k_hat = l2norm(k)
            pl.BlockSpec((2, 1, T, HD), lambda b, i: (0, b, i, 0)),   # raw [k, v] cache
        ],
        out_shape=[
            jax.ShapeDtypeStruct((B, N, HD), jnp.bfloat16),
            jax.ShapeDtypeStruct((B, N, HD), jnp.bfloat16),
            jax.ShapeDtypeStruct((2, B, N, HD), jnp.bfloat16),
        ],
        compiler_params=pltpu.CompilerParams(
            dimension_semantics=("parallel", "parallel"),
            vmem_limit_bytes=cfg['vmem_limit']),
    )(x, lp['attn_ln_w'], lp['attn_ln_b'], lp['w_qkv'], temperature)


# ------------- kernel 2: flash attention + out-proj + residual ---------------
# grid (B, N//T) over query tiles; online softmax over key tiles in-kernel with
# causal tile skipping (only key tiles 0..qi are visited).  The relative
# position bias enters as precomputed Toeplitz diagonal tiles with the causal
# mask already folded into the diagonal (offset-0) tile.

def _attn_kernel(x_ref, qh_ref, kh_ref, kv_ref, bias_ref, wout_ref, out_ref,
                 *, n_heads, head_dim, seq_tile):
    H, Dh, T = n_heads, head_dim, seq_tile
    HD = H * Dh
    qi = pl.program_id(1)

    # q is already l2-normalized and temperature-scaled; head-batched layout.
    q3 = pltpu.einshape("nhd->hnd", qh_ref[0].reshape(T, H, Dh))     # (H,T,Dh) bf16

    m0 = jnp.full((H, T, 1), -jnp.inf, jnp.float32)
    l0 = jnp.zeros((H, T, 1), jnp.float32)
    a0 = jnp.zeros((H, T, Dh), jnp.float32)

    def body(kj, carry):
        m, l, acc = carry
        k0 = pl.multiple_of(kj * T, T)
        kt = kh_ref[0, pl.ds(k0, T), :]                              # (T, HD) bf16
        vt = kv_ref[0, 0, pl.ds(k0, T), :]                           # (T, HD) bf16 (v = cache[1])
        k3 = pltpu.einshape("nhd->hnd", kt.reshape(T, H, Dh))
        v3 = pltpu.einshape("nhd->hnd", vt.reshape(T, H, Dh))
        s = jnp.einsum('hqd,hkd->hqk', q3, k3,
                       preferred_element_type=jnp.float32)           # = qk^T * temp
        # Toeplitz bias tile for diagonal offset (qi - kj); causal mask folded
        # into the offset-0 tile outside the kernel.
        s = s + bias_ref[qi - kj].astype(jnp.float32)
        m_new = jnp.maximum(m, jnp.max(s, axis=-1, keepdims=True))
        alpha = jnp.exp(m - m_new)
        # fp32 exp for generation safety (bf16 exp would be faster on v6e/v7x).
        p = jnp.exp(s - m_new)
        l_new = alpha * l + jnp.sum(p, axis=-1, keepdims=True)
        acc_new = alpha * acc + jnp.einsum(
            'hqk,hkd->hqd', p.astype(jnp.bfloat16), v3,
            preferred_element_type=jnp.float32)
        return m_new, l_new, acc_new

    # causal tile skipping: only key tiles 0..qi contribute.
    _, l, acc = lax.fori_loop(0, qi + 1, body, (m0, l0, a0))

    # normalize once after the PV accumulation (EUP reciprocal on (H,T,1),
    # not an (H,T,T)-sized divide).
    o3 = acc * pl.reciprocal(l, approx=True)
    o = pltpu.einshape("hnd->nhd", o3).reshape(T, HD)                # concat heads
    attn_out = jnp.dot(o.astype(jnp.bfloat16), wout_ref[...],
                       preferred_element_type=jnp.float32)           # (T, C)
    out_ref[0] = (x_ref[0] + attn_out).astype(out_ref.dtype)


def attention_block(x, q_hat, k_hat, kv, diag_bias, w_out, cfg):
    B, N, C = x.shape
    T, HD, H, Dh = cfg['T'], cfg['HD'], cfg['H'], cfg['Dh']
    nt = N // T
    kernel = functools.partial(_attn_kernel, n_heads=H, head_dim=Dh, seq_tile=T)
    # NOTE: on v7x, the grid-invariant operands (diag_bias, W_out) could use
    # pipeline_mode=pl.Buffered(1) to avoid double-buffering their VMEM copy.
    # TODO(synk): for very long sequences, stream k/v key tiles via manual
    # double-buffered DMA instead of keeping the full per-batch k/v in VMEM.
    return pl.pallas_call(
        kernel,
        grid=(B, nt),
        in_specs=[
            pl.BlockSpec((1, T, C), lambda b, qi: (b, qi, 0)),        # residual x tile
            pl.BlockSpec((1, T, HD), lambda b, qi: (b, qi, 0)),       # q_hat tile
            pl.BlockSpec((1, N, HD), lambda b, qi: (b, 0, 0)),        # k_hat (full keys, per batch)
            pl.BlockSpec((1, 1, N, HD), lambda b, qi: (1, b, 0, 0)),  # v = cache[1]
            pl.BlockSpec((nt, H, T, T), lambda b, qi: (0, 0, 0, 0)),  # bias diag tiles (grid-invariant)
            pl.BlockSpec((HD, C), lambda b, qi: (0, 0)),              # W_out (grid-invariant)
        ],
        out_specs=pl.BlockSpec((1, T, C), lambda b, qi: (b, qi, 0)),
        out_shape=jax.ShapeDtypeStruct((B, N, C), jnp.float32),
        compiler_params=pltpu.CompilerParams(
            dimension_semantics=("parallel", "parallel"),
            vmem_limit_bytes=cfg['vmem_limit']),
    )(x, q_hat, k_hat, kv, diag_bias, w_out)


# --------------- kernel 3: PreNorm + GLU(SiLU) FFN, hidden-streamed ----------
# grid (B, N//T, hidden//HC); the hidden axis is a reduction: w1a/w1g/b1/w2 are
# pipelined in chunks and o2 accumulates in a (T, C) fp32 VMEM scratch.

def _ffn_kernel(x_ref, lnw_ref, lnb_ref, w1a_ref, w1g_ref, b1a_ref, b1g_ref,
                w2_ref, b2_ref, out_ref, xn_s, acc_s):
    j = pl.program_id(2)

    @pl.when(j == 0)
    def _():
        xn_s[...] = _layernorm(x_ref[0], lnw_ref[...],
                               lnb_ref[...]).astype(xn_s.dtype)
        acc_s[...] = jnp.zeros_like(acc_s)

    xn = xn_s[...]                                                   # (T, C) bf16
    a = jnp.dot(xn, w1a_ref[...], preferred_element_type=jnp.float32) + b1a_ref[...]
    g = jnp.dot(xn, w1g_ref[...], preferred_element_type=jnp.float32) + b1g_ref[...]
    act = a * jax.nn.silu(g)                                         # GLU, SiLU gate
    acc_s[...] += jnp.dot(act.astype(jnp.bfloat16), w2_ref[...],
                          preferred_element_type=jnp.float32)

    @pl.when(j == pl.num_programs(2) - 1)
    def _():
        out_ref[0] = (x_ref[0] + acc_s[...] + b2_ref[...]).astype(out_ref.dtype)


def ffn_block(x, lp, cfg):
    B, N, C = x.shape
    T, HC, hidden = cfg['T'], cfg['HC'], cfg['hidden']
    nt, nh = N // T, hidden // HC
    return pl.pallas_call(
        _ffn_kernel,
        grid=(B, nt, nh),
        in_specs=[
            pl.BlockSpec((1, T, C), lambda b, i, j: (b, i, 0)),       # x (residual)
            pl.BlockSpec((1, C), lambda b, i, j: (0, 0)),             # ff ln w
            pl.BlockSpec((1, C), lambda b, i, j: (0, 0)),             # ff ln b
            pl.BlockSpec((C, HC), lambda b, i, j: (0, j)),            # w1 (value half) chunk
            pl.BlockSpec((C, HC), lambda b, i, j: (0, j)),            # w1 (gate half)  chunk
            pl.BlockSpec((1, HC), lambda b, i, j: (0, j)),            # b1 value chunk
            pl.BlockSpec((1, HC), lambda b, i, j: (0, j)),            # b1 gate chunk
            pl.BlockSpec((HC, C), lambda b, i, j: (j, 0)),            # w2 chunk
            pl.BlockSpec((1, C), lambda b, i, j: (0, 0)),             # b2
        ],
        out_specs=pl.BlockSpec((1, T, C), lambda b, i, j: (b, i, 0)),
        out_shape=jax.ShapeDtypeStruct((B, N, C), jnp.float32),
        scratch_shapes=[pltpu.VMEM((T, C), jnp.bfloat16),             # LN(x) cache
                        pltpu.VMEM((T, C), jnp.float32)],             # o2 accumulator
        compiler_params=pltpu.CompilerParams(
            dimension_semantics=("parallel", "parallel", "arbitrary"),
            vmem_limit_bytes=cfg['vmem_limit']),
    )(x, lp['ff_ln_w'], lp['ff_ln_b'], lp['ff_w1a'], lp['ff_w1g'],
      lp['ff_b1a'], lp['ff_b1g'], lp['ff_w2'], lp['ff_b2'])


# -------------------- positional bias diagonal tiles (JAX glue) --------------
# DynamicPositionBias MLP on the (2N-1, 1) relative-position table; bias[i,j]
# depends only on rel = i - j, so with T = TQ = TK the per-(q_tile, k_tile)
# bias block depends only on the tile-diagonal offset d = qi - kj.  We
# precompute the n_tiles distinct (H, T, T) tiles (bf16), with the causal mask
# folded into the d == 0 tile, instead of a full (H, N, N) fp32 bias.

def build_bias_tiles(params, N, T, dtype=jnp.bfloat16):
    pos = jnp.arange(-(N - 1), N, dtype=jnp.float32)[:, None]        # (2N-1, 1)
    h = jax.nn.relu(pos @ params['pb_w0'] + params['pb_b0'])
    h = jax.nn.relu(h @ params['pb_w1'] + params['pb_b1'])
    table = h @ params['pb_w2'] + params['pb_b2']                    # (2N-1, H)
    nt = N // T
    ii = jnp.arange(T)[:, None]
    jj = jnp.arange(T)[None, :]
    d = jnp.arange(nt)[:, None, None]
    rel = d * T + ii - jj                                            # query - key
    tiles = table[rel + (N - 1)]                                     # (nt, T, T, H)
    tiles = jnp.transpose(tiles, (0, 3, 1, 2))                       # (nt, H, T, T)
    tiles = tiles.at[0].add(jnp.where(jj > ii, MASK_VALUE, 0.0)[None])
    return tiles.astype(dtype)


# --------------------------------- parameters --------------------------------

def init_params(key, dim, depth, heads, dim_head, ff_mult=4, temperature=15.5):
    pdim = dim // 4
    HD = heads * dim_head
    hidden = dim * ff_mult
    keys = jax.random.split(key, 3 + depth * 5)

    def nrm(k, shape, scale=0.02, dtype=jnp.float32):
        return (scale * jax.random.normal(k, shape)).astype(dtype)

    params = {
        'dim': dim, 'depth': depth, 'heads': heads, 'dim_head': dim_head,
        'ff_mult': ff_mult,
        'temperature': jnp.full((1, 1), temperature, jnp.float32),
        # DynamicPositionBias(dim//4, heads, depth=2): Linear(1,p)+ReLU,
        # Linear(p,p)+ReLU, Linear(p,heads)
        'pb_w0': nrm(keys[0], (1, pdim), 0.5),
        'pb_b0': jnp.zeros((pdim,), jnp.float32),
        'pb_w1': nrm(keys[1], (pdim, pdim), 0.5),
        'pb_b1': jnp.zeros((pdim,), jnp.float32),
        'pb_w2': nrm(keys[2], (pdim, heads), 0.5),
        'pb_b2': jnp.zeros((heads,), jnp.float32),
        'layers': [],
    }
    ki = 3
    for _ in range(depth):
        lp = {
            'attn_ln_w': jnp.ones((1, dim), jnp.float32),
            'attn_ln_b': jnp.zeros((1, dim), jnp.float32),
            # qkv columns laid out [q | k | v], (head, head_dim)-major inside
            # each.  NOTE: importing real torch weights ('h d qkv' interleave)
            # requires a column permutation.  Big weights stored bf16.
            'w_qkv': nrm(keys[ki], (dim, 3 * HD), dtype=jnp.bfloat16),   # bias=False
            'w_out': nrm(keys[ki + 1], (HD, dim), dtype=jnp.bfloat16),   # bias=False
            'ff_ln_w': jnp.ones((1, dim), jnp.float32),
            'ff_ln_b': jnp.zeros((1, dim), jnp.float32),
            # GLU proj split into value / gate halves so the hidden dim can be
            # streamed in chunks (torch stores them concatenated).
            'ff_w1a': nrm(keys[ki + 2], (dim, hidden), dtype=jnp.bfloat16),
            'ff_w1g': nrm(keys[ki + 3], (dim, hidden), dtype=jnp.bfloat16),
            'ff_b1a': jnp.zeros((1, hidden), jnp.float32),
            'ff_b1g': jnp.zeros((1, hidden), jnp.float32),
            'ff_w2': nrm(keys[ki + 4], (hidden, dim), dtype=jnp.bfloat16),
            'ff_b2': jnp.zeros((1, dim), jnp.float32),
        }
        params['layers'].append(lp)
        ki += 5
    return params


# -------------------------------- full forward -------------------------------

def transformer_forward(x, params):
    B, N, C = x.shape
    H, Dh = params['heads'], params['dim_head']
    depth = params['depth']
    HD = H * Dh
    hidden = C * params['ff_mult']
    T = _pick_seq_tile(N)
    HC = _pick_hidden_chunk(hidden)
    cfg = dict(H=H, Dh=Dh, HD=HD, T=T, hidden=hidden, HC=HC,
               vmem_limit=_vmem_limit_bytes())

    diag_bias = build_bias_tiles(params, N, T)

    caches = []
    # TODO(synk): optionally stack per-layer weights and run depth as a leading
    # 'arbitrary' grid axis so the residual stream stays VMEM-resident.
    for lp in params['layers']:
        q_hat, k_hat, kv = qkv_project(x, lp, params['temperature'], cfg)
        x = attention_block(x, q_hat, k_hat, kv, diag_bias, lp['w_out'], cfg)
        x = ffn_block(x, lp, cfg)
        caches.append(kv)

    # stack per-layer bf16 caches and reshape once to torch layout
    # (depth, 2, B, H, N, Dh); kept in bf16 to halve cache HBM traffic.
    cache = jnp.stack(caches, axis=0)                                # (depth,2,B,N,HD)
    cache = cache.reshape(depth, 2, B, N, H, Dh).transpose(0, 1, 2, 4, 3, 5)
    cached_kvs = {'cache_lengths': jnp.full((B,), N, jnp.int32), 'cache': cache}
    # TODO(synk): cache-attachment / variable-length (padding-mask) decode path
    # of the torch module is not implemented (cache=None, length=None only).
    return x, None, cached_kvs                        # intermediate_logits=None


if __name__ == "__main__":
    dim, depth, heads, dim_head = 32, 2, 4, 8
    B, N = 2, 8
    key = jax.random.PRNGKey(0)
    kx, kp = jax.random.split(key)
    x = jax.random.normal(kx, (B, N, dim), dtype=jnp.float32)
    params = init_params(kp, dim, depth, heads, dim_head)

    fwd = jax.jit(functools.partial(transformer_forward, params=params))
    out, inter_logits, cache = fwd(x)
    jax.block_until_ready(out)
    jax.block_until_ready(cache['cache'])

    assert out.shape == (B, N, dim)
    assert cache['cache'].shape == (depth, 2, B, heads, N, dim_head)
    assert inter_logits is None
    assert bool(jnp.all(jnp.isfinite(out)))
    print("KERNEL_OK")
</pallas_src>

<mosaic_0001>
module attributes {stable_mosaic.version = 11 : i64} {
  func.func @_qkv_kernel(%arg0: i32, %arg1: i32, %arg2: memref<1x8x32xf32, #tpu.memory_space<vmem>>, %arg3: memref<1x32xf32, #tpu.memory_space<vmem>>, %arg4: memref<1x32xf32, #tpu.memory_space<vmem>>, %arg5: memref<32x96xbf16, #tpu.memory_space<vmem>>, %arg6: memref<1x1xf32, #tpu.memory_space<smem>>, %arg7: memref<1x8x32xbf16, #tpu.memory_space<vmem>>, %arg8: memref<1x8x32xbf16, #tpu.memory_space<vmem>>, %arg9: memref<2x1x8x32xbf16, #tpu.memory_space<vmem>>) attributes {dimension_semantics = [#tpu.dimension_semantics<parallel>, #tpu.dimension_semantics<parallel>], iteration_bounds = array<i64: 2, 1>, scalar_prefetch = 0 : i64, scratch_operands = 0 : i64, tpu.core_type = #tpu.core_type<tc>, window_params = [{transform_indices = @transform_0, window_bounds = array<i64: 1, 8, 32>}, {pipeline_mode = #tpu.pipeline_mode<synchronous>, transform_indices = @transform_1, window_bounds = array<i64: 1, 32>}, {pipeline_mode = #tpu.pipeline_mode<synchronous>, transform_indices = @transform_2, window_bounds = array<i64: 1, 32>}, {pipeline_mode = #tpu.pipeline_mode<synchronous>, transform_indices = @transform_3, window_bounds = array<i64: 32, 96>}, {transform_indices = @transform_4, window_bounds = array<i64: 1, 1>}, {transform_indices = @transform_5, window_bounds = array<i64: 1, 8, 32>}, {transform_indices = @transform_6, window_bounds = array<i64: 1, 8, 32>}, {transform_indices = @transform_7, window_bounds = array<i64: 2, 1, 8, 32>}]} {
    %c0 = arith.constant 0 : index
    %c0_0 = arith.constant 0 : index
    %c0_1 = arith.constant 0 : index
    %0 = vector.load %arg2[%c0, %c0_0, %c0_1] : memref<1x8x32xf32, #tpu.memory_space<vmem>>, vector<1x8x32xf32>
    %1 = vector.shape_cast %0 : vector<1x8x32xf32> to vector<8x32xf32>
    %c0_2 = arith.constant 0 : index
    %c0_3 = arith.constant 0 : index
    %2 = vector.load %arg3[%c0_2, %c0_3] : memref<1x32xf32, #tpu.memory_space<vmem>>, vector<1x32xf32>
    %c0_4 = arith.constant 0 : index
    %c0_5 = arith.constant 0 : index
    %3 = vector.load %arg4[%c0_4, %c0_5] : memref<1x32xf32, #tpu.memory_space<vmem>>, vector<1x32xf32>
    %cst = arith.constant dense<0.000000e+00> : vector<8xf32>
    %4 = vector.multi_reduction <add>, %1, %cst [1] : vector<8x32xf32> to vector<8xf32>
    %5 = vector.shape_cast %4 : vector<8xf32> to vector<8x1xf32>
    %cst_6 = arith.constant 3.200000e+01 : f32
    %6 = vector.broadcast %cst_6 : f32 to vector<8x1xf32>
    %7 = arith.divf %5, %6 : vector<8x1xf32>
    %8 = vector.broadcast %7 : vector<8x1xf32> to vector<8x32xf32>
    %9 = arith.subf %1, %8 : vector<8x32xf32>
    %10 = arith.mulf %9, %9 : vector<8x32xf32>
    %cst_7 = arith.constant dense<0.000000e+00> : vector<8xf32>
    %11 = vector.multi_reduction <add>, %10, %cst_7 [1] : vector<8x32xf32> to vector<8xf32>
    %12 = vector.shape_cast %11 : vector<8xf32> to vector<8x1xf32>
    %cst_8 = arith.constant 3.200000e+01 : f32
    %13 = vector.broadcast %cst_8 : f32 to vector<8x1xf32>
    %14 = arith.divf %12, %13 : vector<8x1xf32>
    %15 = vector.broadcast %7 : vector<8x1xf32> to vector<8x32xf32>
    %16 = arith.subf %1, %15 : vector<8x32xf32>
    %cst_9 = arith.constant 9.99999974E-6 : f32
    %17 = vector.broadcast %cst_9 : f32 to vector<8x1xf32>
    %18 = arith.addf %14, %17 : vector<8x1xf32>
    %19 = math.rsqrt %18 : vector<8x1xf32>
    %20 = vector.broadcast %19 : vector<8x1xf32> to vector<8x32xf32>
    %21 = arith.mulf %16, %20 : vector<8x32xf32>
    %22 = vector.broadcast %2 : vector<1x32xf32> to vector<8x32xf32>
    %23 = arith.mulf %21, %22 : vector<8x32xf32>
    %24 = vector.broadcast %3 : vector<1x32xf32> to vector<8x32xf32>
    %25 = arith.addf %23, %24 : vector<8x32xf32>
    %26 = arith.truncf %25 : vector<8x32xf32> to vector<8x32xbf16>
    %c0_10 = arith.constant 0 : index
    %c0_11 = arith.constant 0 : index
    %27 = vector.load %arg5[%c0_10, %c0_11] : memref<32x96xbf16, #tpu.memory_space<vmem>>, vector<32x96xbf16>
    %cst_12 = arith.constant dense<0.000000e+00> : vector<8x96xf32>
    %28 = tpu.matmul %26, %27, %cst_12 {dimension_numbers = #tpu.dot_dimension_numbers<[1], [0], [0], [1], [0, 0, 1, 1], [], []>} : vector<8x32xbf16>, vector<32x96xbf16>, vector<8x96xf32> -> vector<8x96xf32>
    %29 = vector.extract_strided_slice %28 {offsets = [0, 0], sizes = [8, 32], strides = [1, 1]} : vector<8x96xf32> to vector<8x32xf32>
    %30 = vector.extract_strided_slice %28 {offsets = [0, 32], sizes = [8, 32], strides = [1, 1]} : vector<8x96xf32> to vector<8x32xf32>
    %31 = vector.extract_strided_slice %28 {offsets = [0, 64], sizes = [8, 32], strides = [1, 1]} : vector<8x96xf32> to vector<8x32xf32>
    %32 = arith.truncf %30 : vector<8x32xf32> to vector<8x32xbf16>
    %c0_13 = arith.constant 0 : index
    %c0_14 = arith.constant 0 : index
    %c0_15 = arith.constant 0 : index
    %c0_16 = arith.constant 0 : index
    %33 = vector.load %arg9[%c0_13, %c0_14, %c0_15, %c0_16] : memref<2x1x8x32xbf16, #tpu.memory_space<vmem>>, vector<1x1x8x32xbf16>
    %34 = vector.shape_cast %33 : vector<1x1x8x32xbf16> to vector<8x32xbf16>
    %35 = vector.shape_cast %32 : vector<8x32xbf16> to vector<1x1x8x32xbf16>
    tpu.vector_store %arg9[%c0_13, %c0_14, %c0_15, %c0_16], %35 {strides = array<i32>} : memref<2x1x8x32xbf16, #tpu.memory_space<vmem>>, vector<1x1x8x32xbf16>,
    %36 = arith.truncf %31 : vector<8x32xf32> to vector<8x32xbf16>
    %c1 = arith.constant 1 : index
    %c0_17 = arith.constant 0 : index
    %c0_18 = arith.constant 0 : index
    %c0_19 = arith.constant 0 : index
    %37 = vector.load %arg9[%c1, %c0_17, %c0_18, %c0_19] : memref<2x1x8x32xbf16, #tpu.memory_space<vmem>>, vector<1x1x8x32xbf16>
    %38 = vector.shape_cast %37 : vector<1x1x8x32xbf16> to vector<8x32xbf16>
    %39 = vector.shape_cast %36 : vector<8x32xbf16> to vector<1x1x8x32xbf16>
    tpu.vector_store %arg9[%c1, %c0_17, %c0_18, %c0_19], %39 {strides = array<i32>} : memref<2x1x8x32xbf16, #tpu.memory_space<vmem>>, vector<1x1x8x32xbf16>,
    %c0_20 = arith.constant 0 : index
    %c0_21 = arith.constant 0 : index
    %40 = memref.load %arg6[%c0_20, %c0_21] : memref<1x1xf32, #tpu.memory_space<smem>>
    %41 = vector.shape_cast %29 : vector<8x32xf32> to vector<8x4x8xf32>
    %42 = vector.shape_cast %30 : vector<8x32xf32> to vector<8x4x8xf32>
    %43 = arith.mulf %41, %41 : vector<8x4x8xf32>
    %cst_22 = arith.constant dense<0.000000e+00> : vector<8x4xf32>
    %44 = vector.multi_reduction <add>, %43, %cst_22 [2] : vector<8x4x8xf32> to vector<8x4xf32>
    %45 = vector.shape_cast %44 : vector<8x4xf32> to vector<8x4x1xf32>
    %cst_23 = arith.constant 1.000000e-24 : f32
    %46 = vector.broadcast %cst_23 : f32 to vector<8x4x1xf32>
    %47 = arith.maximumf %45, %46 : vector<8x4x1xf32>
    %48 = math.rsqrt %47 : vector<8x4x1xf32>
    %49 = arith.mulf %42, %42 : vector<8x4x8xf32>
    %cst_24 = arith.constant dense<0.000000e+00> : vector<8x4xf32>
    %50 = vector.multi_reduction <add>, %49, %cst_24 [2] : vector<8x4x8xf32> to vector<8x4xf32>
    %51 = vector.shape_cast %50 : vector<8x4xf32> to vector<8x4x1xf32>
    %cst_25 = arith.constant 1.000000e-24 : f32
    %52 = vector.broadcast %cst_25 : f32 to vector<8x4x1xf32>
    %53 = arith.maximumf %51, %52 : vector<8x4x1xf32>
    %54 = math.rsqrt %53 : vector<8x4x1xf32>
    %55 = vector.broadcast %40 : f32 to vector<8x4x1xf32>
    %56 = arith.mulf %48, %55 : vector<8x4x1xf32>
    %57 = vector.broadcast %56 : vector<8x4x1xf32> to vector<8x4x8xf32>
    %58 = arith.mulf %41, %57 : vector<8x4x8xf32>
    %59 = vector.shape_cast %58 : vector<8x4x8xf32> to vector<8x32xf32>
    %60 = arith.truncf %59 : vector<8x32xf32> to vector<8x32xbf16>
    %c0_26 = arith.constant 0 : index
    %c0_27 = arith.constant 0 : index
    %c0_28 = arith.constant 0 : index
    %61 = vector.load %arg7[%c0_26, %c0_27, %c0_28] : memref<1x8x32xbf16, #tpu.memory_space<vmem>>, vector<1x8x32xbf16>
    %62 = vector.shape_cast %61 : vector<1x8x32xbf16> to vector<8x32xbf16>
    %63 = vector.shape_cast %60 : vector<8x32xbf16> to vector<1x8x32xbf16>
    tpu.vector_store %arg7[%c0_26, %c0_27, %c0_28], %63 {strides = array<i32>} : memref<1x8x32xbf16, #tpu.memory_space<vmem>>, vector<1x8x32xbf16>,
    %64 = vector.broadcast %54 : vector<8x4x1xf32> to vector<8x4x8xf32>
    %65 = arith.mulf %42, %64 : vector<8x4x8xf32>
    %66 = vector.shape_cast %65 : vector<8x4x8xf32> to vector<8x32xf32>
    %67 = arith.truncf %66 : vector<8x32xf32> to vector<8x32xbf16>
    %c0_29 = arith.constant 0 : index
    %c0_30 = arith.constant 0 : index
    %c0_31 = arith.constant 0 : index
    %68 = vector.load %arg8[%c0_29, %c0_30, %c0_31] : memref<1x8x32xbf16, #tpu.memory_space<vmem>>, vector<1x8x32xbf16>
    %69 = vector.shape_cast %68 : vector<1x8x32xbf16> to vector<8x32xbf16>
    %70 = vector.shape_cast %67 : vector<8x32xbf16> to vector<1x8x32xbf16>
    tpu.vector_store %arg8[%c0_29, %c0_30, %c0_31], %70 {strides = array<i32>} : memref<1x8x32xbf16, #tpu.memory_space<vmem>>, vector<1x8x32xbf16>,
    return
  }
  func.func @transform_0(%arg0: i32, %arg1: i32) -> (i32, i32, i32) {
    %c0_i32 = arith.constant 0 : i32
    %c0_i32_0 = arith.constant 0 : i32
    return %arg0, %arg1, %c0_i32 : i32, i32, i32
  }
  func.func @transform_1(%arg0: i32, %arg1: i32) -> (i32, i32) {
    %c0_i32 = arith.constant 0 : i32
    %c0_i32_0 = arith.constant 0 : i32
    %c0_i32_1 = arith.constant 0 : i32
    return %c0_i32, %c0_i32_0 : i32, i32
  }
  func.func @transform_2(%arg0: i32, %arg1: i32) -> (i32, i32) {
    %c0_i32 = arith.constant 0 : i32
    %c0_i32_0 = arith.constant 0 : i32
    %c0_i32_1 = arith.constant 0 : i32
    return %c0_i32, %c0_i32_0 : i32, i32
  }
  func.func @transform_3(%arg0: i32, %arg1: i32) -> (i32, i32) {
    %c0_i32 = arith.constant 0 : i32
    %c0_i32_0 = arith.constant 0 : i32
    %c0_i32_1 = arith.constant 0 : i32
    return %c0_i32, %c0_i32_0 : i32, i32
  }
  func.func @transform_4(%arg0: i32, %arg1: i32) -> (i32, i32) {
    %c0_i32 = arith.constant 0 : i32
    %c0_i32_0 = arith.constant 0 : i32
    %c0_i32_1 = arith.constant 0 : i32
    return %c0_i32, %c0_i32_0 : i32, i32
  }
  func.func @transform_5(%arg0: i32, %arg1: i32) -> (i32, i32, i32) {
    %c0_i32 = arith.constant 0 : i32
    %c0_i32_0 = arith.constant 0 : i32
    return %arg0, %arg1, %c0_i32 : i32, i32, i32
  }
  func.func @transform_6(%arg0: i32, %arg1: i32) -> (i32, i32, i32) {
    %c0_i32 = arith.constant 0 : i32
    %c0_i32_0 = arith.constant 0 : i32
    return %arg0, %arg1, %c0_i32 : i32, i32, i32
  }
  func.func @transform_7(%arg0: i32, %arg1: i32) -> (i32, i32, i32, i32) {
    %c0_i32 = arith.constant 0 : i32
    %c0_i32_0 = arith.constant 0 : i32
    %c0_i32_1 = arith.constant 0 : i32
    return %c0_i32, %arg0, %arg1, %c0_i32_0 : i32, i32, i32, i32
  }
}

module attributes {stable_mosaic.version = 11 : i64} {
  func.func @_attn_kernel(%arg0: i32, %arg1: i32, %arg2: memref<1x8x32xf32, #tpu.memory_space<vmem>>, %arg3: memref<1x8x32xbf16, #tpu.memory_space<vmem>>, %arg4: memref<1x8x32xbf16, #tpu.memory_space<vmem>>, %arg5: memref<1x1x8x32xbf16, #tpu.memory_space<vmem>>, %arg6: memref<1x4x8x8xbf16, #tpu.memory_space<vmem>>, %arg7: memref<32x32xbf16, #tpu.memory_space<vmem>>, %arg8: memref<1x8x32xf32, #tpu.memory_space<vmem>>) attributes {dimension_semantics = [#tpu.dimension_semantics<parallel>, #tpu.dimension_semantics<parallel>], iteration_bounds = array<i64: 2, 1>, scalar_prefetch = 0 : i64, scratch_operands = 0 : i64, tpu.core_type = #tpu.core_type<tc>, window_params = [{transform_indices = @transform_0, window_bounds = array<i64: 1, 8, 32>}, {transform_indices = @transform_1, window_bounds = array<i64: 1, 8, 32>}, {transform_indices = @transform_2, window_bounds = array<i64: 1, 8, 32>}, {transform_indices = @transform_3, window_bounds = array<i64: 1, 1, 8, 32>}, {pipeline_mode = #tpu.pipeline_mode<synchronous>, transform_indices = @transform_4, window_bounds = array<i64: 1, 4, 8, 8>}, {pipeline_mode = #tpu.pipeline_mode<synchronous>, transform_indices = @transform_5, window_bounds = array<i64: 32, 32>}, {transform_indices = @transform_6, window_bounds = array<i64: 1, 8, 32>}]} {
    %c0 = arith.constant 0 : index
    %c0_0 = arith.constant 0 : index
    %c0_1 = arith.constant 0 : index
    %0 = vector.load %arg3[%c0, %c0_0, %c0_1] : memref<1x8x32xbf16, #tpu.memory_space<vmem>>, vector<1x8x32xbf16>
    %1 = vector.shape_cast %0 : vector<1x8x32xbf16> to vector<8x32xbf16>
    %2 = vector.shape_cast %1 : vector<8x32xbf16> to vector<8x4x8xbf16>
    %3 = tpu.transpose %2, [1, 0, 2] : vector<8x4x8xbf16> -> vector<4x8x8xbf16>
    %cst = arith.constant 0xFF800000 : f32
    %4 = vector.broadcast %cst : f32 to vector<4x8x1xf32>
    %cst_2 = arith.constant 0.000000e+00 : f32
    %5 = vector.broadcast %cst_2 : f32 to vector<4x8x1xf32>
    %cst_3 = arith.constant 0.000000e+00 : f32
    %6 = vector.broadcast %cst_3 : f32 to vector<4x8x8xf32>
    %c1_i32 = arith.constant 1 : i32
    %7 = arith.addi %arg1, %c1_i32 : i32
    %c0_i32 = arith.constant 0 : i32
    %8 = arith.subi %7, %c0_i32 : i32
    %9 = arith.addi %c0_i32, %8 : i32
    %c1_i32_4 = arith.constant 1 : i32
    %10:3 = scf.for %arg9 = %c0_i32 to %9 step %c1_i32_4 iter_args(%arg10 = %4, %arg11 = %5, %arg12 = %6) -> (vector<4x8x1xf32>, vector<4x8x1xf32>, vector<4x8x8xf32>)  : i32 {
      %c8_i32 = arith.constant 8 : i32
      %25 = arith.muli %arg9, %c8_i32 : i32
      %26 = tpu.assume_multiple %25, 8 : i32
      %c0_14 = arith.constant 0 : index
      %27 = arith.index_cast %26 : i32 to index
      %c0_15 = arith.constant 0 : index
      %28 = vector.load %arg4[%c0_14, %27, %c0_15] : memref<1x8x32xbf16, #tpu.memory_space<vmem>>, vector<1x8x32xbf16>
      %29 = vector.shape_cast %28 : vector<1x8x32xbf16> to vector<8x32xbf16>
      %c0_16 = arith.constant 0 : index
      %c0_17 = arith.constant 0 : index
      %30 = arith.index_cast %26 : i32 to index
      %c0_18 = arith.constant 0 : index
      %31 = vector.load %arg5[%c0_16, %c0_17, %30, %c0_18] : memref<1x1x8x32xbf16, #tpu.memory_space<vmem>>, vector<1x1x8x32xbf16>
      %32 = vector.shape_cast %31 : vector<1x1x8x32xbf16> to vector<8x32xbf16>
      %33 = vector.shape_cast %29 : vector<8x32xbf16> to vector<8x4x8xbf16>
      %34 = tpu.transpose %33, [1, 0, 2] : vector<8x4x8xbf16> -> vector<4x8x8xbf16>
      %35 = vector.shape_cast %32 : vector<8x32xbf16> to vector<8x4x8xbf16>
      %36 = tpu.transpose %35, [1, 0, 2] : vector<8x4x8xbf16> -> vector<4x8x8xbf16>
      "tpu.trace_start"() <{level = 10 : i32, message = "hqd,hkd->hqk"}> : () -> ()
      %cst_19 = arith.constant dense<0.000000e+00> : vector<4x8x8xf32>
      %37 = tpu.matmul %3, %34, %cst_19 {dimension_numbers = #tpu.dot_dimension_numbers<[2], [2], [1], [1], [0, 0, 0, 1, 1, 1], [0], [0]>} : vector<4x8x8xbf16>, vector<4x8x8xbf16>, vector<4x8x8xf32> -> vector<4x8x8xf32>
      "tpu.trace_stop"() : () -> ()
      %38 = arith.subi %arg1, %arg9 : i32
      %39 = arith.index_cast %38 : i32 to index
      %c0_20 = arith.constant 0 : index
      %c0_21 = arith.constant 0 : index
      %c0_22 = arith.constant 0 : index
      %40 = vector.load %arg6[%39, %c0_20, %c0_21, %c0_22] : memref<1x4x8x8xbf16, #tpu.memory_space<vmem>>, vector<1x4x8x8xbf16>
      %41 = vector.shape_cast %40 : vector<1x4x8x8xbf16> to vector<4x8x8xbf16>
      %42 = arith.extf %41 : vector<4x8x8xbf16> to vector<4x8x8xf32>
      %43 = arith.addf %37, %42 : vector<4x8x8xf32>
      %cst_23 = arith.constant dense<0xFF800000> : vector<4x8xf32>
      %44 = vector.multi_reduction <maximumf>, %43, %cst_23 [2] : vector<4x8x8xf32> to vector<4x8xf32>
      %45 = vector.shape_cast %44 : vector<4x8xf32> to vector<4x8x1xf32>
      %46 = arith.maximumf %arg10, %45 : vector<4x8x1xf32>
      %47 = arith.subf %arg10, %46 : vector<4x8x1xf32>
      %48 = math.exp %47 : vector<4x8x1xf32>
      %49 = vector.broadcast %46 : vector<4x8x1xf32> to vector<4x8x8xf32>
      %50 = arith.subf %43, %49 : vector<4x8x8xf32>
      %51 = math.exp %50 : vector<4x8x8xf32>
      %52 = arith.mulf %48, %arg11 : vector<4x8x1xf32>
      %cst_24 = arith.constant dense<0.000000e+00> : vector<4x8xf32>
      %53 = vector.multi_reduction <add>, %51, %cst_24 [2] : vector<4x8x8xf32> to vector<4x8xf32>
      %54 = vector.shape_cast %53 : vector<4x8xf32> to vector<4x8x1xf32>
      %55 = arith.addf %52, %54 : vector<4x8x1xf32>
      %56 = vector.broadcast %48 : vector<4x8x1xf32> to vector<4x8x8xf32>
      %57 = arith.mulf %56, %arg12 : vector<4x8x8xf32>
      %58 = arith.truncf %51 : vector<4x8x8xf32> to vector<4x8x8xbf16>
      "tpu.trace_start"() <{level = 10 : i32, message = "hqk,hkd->hqd"}> : () -> ()
      %cst_25 = arith.constant dense<0.000000e+00> : vector<4x8x8xf32>
      %59 = tpu.matmul %58, %36, %cst_25 {dimension_numbers = #tpu.dot_dimension_numbers<[2], [1], [1], [2], [0, 0, 0, 1, 1, 2], [0], [0]>} : vector<4x8x8xbf16>, vector<4x8x8xbf16>, vector<4x8x8xf32> -> vector<4x8x8xf32>
      "tpu.trace_stop"() : () -> ()
      %60 = arith.addf %57, %59 : vector<4x8x8xf32>
      scf.yield %46, %55, %60 : vector<4x8x1xf32>, vector<4x8x1xf32>, vector<4x8x8xf32>
    }
    %11 = tpu.reciprocal %10#1 {approx = true} : vector<4x8x1xf32> -> vector<4x8x1xf32>
    %12 = vector.broadcast %11 : vector<4x8x1xf32> to vector<4x8x8xf32>
    %13 = arith.mulf %10#2, %12 : vector<4x8x8xf32>
    %14 = tpu.transpose %13, [1, 0, 2] : vector<4x8x8xf32> -> vector<8x4x8xf32>
    %15 = vector.shape_cast %14 : vector<8x4x8xf32> to vector<8x32xf32>
    %16 = arith.truncf %15 : vector<8x32xf32> to vector<8x32xbf16>
    %c0_5 = arith.constant 0 : index
    %c0_6 = arith.constant 0 : index
    %17 = vector.load %arg7[%c0_5, %c0_6] : memref<32x32xbf16, #tpu.memory_space<vmem>>, vector<32x32xbf16>
    %cst_7 = arith.constant dense<0.000000e+00> : vector<8x32xf32>
    %18 = tpu.matmul %16, %17, %cst_7 {dimension_numbers = #tpu.dot_dimension_numbers<[1], [0], [0], [1], [0, 0, 1, 1], [], []>} : vector<8x32xbf16>, vector<32x32xbf16>, vector<8x32xf32> -> vector<8x32xf32>
    %c0_8 = arith.constant 0 : index
    %c0_9 = arith.constant 0 : index
    %c0_10 = arith.constant 0 : index
    %19 = vector.load %arg2[%c0_8, %c0_9, %c0_10] : memref<1x8x32xf32, #tpu.memory_space<vmem>>, vector<1x8x32xf32>
    %20 = vector.shape_cast %19 : vector<1x8x32xf32> to vector<8x32xf32>
    %21 = arith.addf %20, %18 : vector<8x32xf32>
    %c0_11 = arith.constant 0 : index
    %c0_12 = arith.constant 0 : index
    %c0_13 = arith.constant 0 : index
    %22 = vector.load %arg8[%c0_11, %c0_12, %c0_13] : memref<1x8x32xf32, #tpu.memory_space<vmem>>, vector<1x8x32xf32>
    %23 = vector.shape_cast %22 : vector<1x8x32xf32> to vector<8x32xf32>
    %24 = vector.shape_cast %21 : vector<8x32xf32> to vector<1x8x32xf32>
    tpu.vector_store %arg8[%c0_11, %c0_12, %c0_13], %24 {strides = array<i32>} : memref<1x8x32xf32, #tpu.memory_space<vmem>>, vector<1x8x32xf32>,
    return
  }
  func.func @transform_0(%arg0: i32, %arg1: i32) -> (i32, i32, i32) {
    %c0_i32 = arith.constant 0 : i32
    %c0_i32_0 = arith.constant 0 : i32
    return %arg0, %arg1, %c0_i32 : i32, i32, i32
  }
  func.func @transform_1(%arg0: i32, %arg1: i32) -> (i32, i32, i32) {
    %c0_i32 = arith.constant 0 : i32
    %c0_i32_0 = arith.constant 0 : i32
    return %arg0, %arg1, %c0_i32 : i32, i32, i32
  }
  func.func @transform_2(%arg0: i32, %arg1: i32) -> (i32, i32, i32) {
    %c0_i32 = arith.constant 0 : i32
    %c0_i32_0 = arith.constant 0 : i32
    %c0_i32_1 = arith.constant 0 : i32
    return %arg0, %c0_i32, %c0_i32_0 : i32, i32, i32
  }
  func.func @transform_3(%arg0: i32, %arg1: i32) -> (i32, i32, i32, i32) {
    %c1_i32 = arith.constant 1 : i32
    %c0_i32 = arith.constant 0 : i32
    %c0_i32_0 = arith.constant 0 : i32
    %c0_i32_1 = arith.constant 0 : i32
    return %c1_i32, %arg0, %c0_i32, %c0_i32_0 : i32, i32, i32, i32
  }
  func.func @transform_4(%arg0: i32, %arg1: i32) -> (i32, i32, i32, i32) {
    %c0_i32 = arith.constant 0 : i32
    %c0_i32_0 = arith.constant 0 : i32
    %c0_i32_1 = arith.constant 0 : i32
    %c0_i32_2 = arith.constant 0 : i32
    %c0_i32_3 = arith.constant 0 : i32
    return %c0_i32, %c0_i32_0, %c0_i32_1, %c0_i32_2 : i32, i32, i32, i32
  }
  func.func @transform_5(%arg0: i32, %arg1: i32) -> (i32, i32) {
    %c0_i32 = arith.constant 0 : i32
    %c0_i32_0 = arith.constant 0 : i32
    %c0_i32_1 = arith.constant 0 : i32
    return %c0_i32, %c0_i32_0 : i32, i32
  }
  func.func @transform_6(%arg0: i32, %arg1: i32) -> (i32, i32, i32) {
    %c0_i32 = arith.constant 0 : i32
    %c0_i32_0 = arith.constant 0 : i32
    return %arg0, %arg1, %c0_i32 : i32, i32, i32
  }
}

module attributes {stable_mosaic.version = 11 : i64} {
  func.func @_qkv_kernel(%arg0: i32, %arg1: i32, %arg2: memref<1x8x32xf32, #tpu.memory_space<vmem>>, %arg3: memref<1x32xf32, #tpu.memory_space<vmem>>, %arg4: memref<1x32xf32, #tpu.memory_space<vmem>>, %arg5: memref<32x96xbf16, #tpu.memory_space<vmem>>, %arg6: memref<1x1xf32, #tpu.memory_space<smem>>, %arg7: memref<1x8x32xbf16, #tpu.memory_space<vmem>>, %arg8: memref<1x8x32xbf16, #tpu.memory_space<vmem>>, %arg9: memref<2x1x8x32xbf16, #tpu.memory_space<vmem>>) attributes {dimension_semantics = [#tpu.dimension_semantics<parallel>, #tpu.dimension_semantics<parallel>], iteration_bounds = array<i64: 2, 1>, scalar_prefetch = 0 : i64, scratch_operands = 0 : i64, tpu.core_type = #tpu.core_type<tc>, window_params = [{transform_indices = @transform_0, window_bounds = array<i64: 1, 8, 32>}, {pipeline_mode = #tpu.pipeline_mode<synchronous>, transform_indices = @transform_1, window_bounds = array<i64: 1, 32>}, {pipeline_mode = #tpu.pipeline_mode<synchronous>, transform_indices = @transform_2, window_bounds = array<i64: 1, 32>}, {pipeline_mode = #tpu.pipeline_mode<synchronous>, transform_indices = @transform_3, window_bounds = array<i64: 32, 96>}, {transform_indices = @transform_4, window_bounds = array<i64: 1, 1>}, {transform_indices = @transform_5, window_bounds = array<i64: 1, 8, 32>}, {transform_indices = @transform_6, window_bounds = array<i64: 1, 8, 32>}, {transform_indices = @transform_7, window_bounds = array<i64: 2, 1, 8, 32>}]} {
    %c0 = arith.constant 0 : index
    %c0_0 = arith.constant 0 : index
    %c0_1 = arith.constant 0 : index
    %0 = vector.load %arg2[%c0, %c0_0, %c0_1] : memref<1x8x32xf32, #tpu.memory_space<vmem>>, vector<1x8x32xf32>
    %1 = vector.shape_cast %0 : vector<1x8x32xf32> to vector<8x32xf32>
    %c0_2 = arith.constant 0 : index
    %c0_3 = arith.constant 0 : index
    %2 = vector.load %arg3[%c0_2, %c0_3] : memref<1x32xf32, #tpu.memory_space<vmem>>, vector<1x32xf32>
    %c0_4 = arith.constant 0 : index
    %c0_5 = arith.constant 0 : index
    %3 = vector.load %arg4[%c0_4, %c0_5] : memref<1x32xf32, #tpu.memory_space<vmem>>, vector<1x32xf32>
    %cst = arith.constant dense<0.000000e+00> : vector<8xf32>
    %4 = vector.multi_reduction <add>, %1, %cst [1] : vector<8x32xf32> to vector<8xf32>
    %5 = vector.shape_cast %4 : vector<8xf32> to vector<8x1xf32>
    %cst_6 = arith.constant 3.200000e+01 : f32
    %6 = vector.broadcast %cst_6 : f32 to vector<8x1xf32>
    %7 = arith.divf %5, %6 : vector<8x1xf32>
    %8 = vector.broadcast %7 : vector<8x1xf32> to vector<8x32xf32>
    %9 = arith.subf %1, %8 : vector<8x32xf32>
    %10 = arith.mulf %9, %9 : vector<8x32xf32>
    %cst_7 = arith.constant dense<0.000000e+00> : vector<8xf32>
    %11 = vector.multi_reduction <add>, %10, %cst_7 [1] : vector<8x32xf32> to vector<8xf32>
    %12 = vector.shape_cast %11 : vector<8xf32> to vector<8x1xf32>
    %cst_8 = arith.constant 3.200000e+01 : f32
    %13 = vector.broadcast %cst_8 : f32 to vector<8x1xf32>
    %14 = arith.divf %12, %13 : vector<8x1xf32>
    %15 = vector.broadcast %7 : vector<8x1xf32> to vector<8x32xf32>
    %16 = arith.subf %1, %15 : vector<8x32xf32>
    %cst_9 = arith.constant 9.99999974E-6 : f32
    %17 = vector.broadcast %cst_9 : f32 to vector<8x1xf32>
    %18 = arith.addf %14, %17 : vector<8x1xf32>
    %19 = math.rsqrt %18 : vector<8x1xf32>
    %20 = vector.broadcast %19 : vector<8x1xf32> to vector<8x32xf32>
    %21 = arith.mulf %16, %20 : vector<8x32xf32>
    %22 = vector.broadcast %2 : vector<1x32xf32> to vector<8x32xf32>
    %23 = arith.mulf %21, %22 : vector<8x32xf32>
    %24 = vector.broadcast %3 : vector<1x32xf32> to vector<8x32xf32>
    %25 = arith.addf %23, %24 : vector<8x32xf32>
    %26 = arith.truncf %25 : vector<8x32xf32> to vector<8x32xbf16>
    %c0_10 = arith.constant 0 : index
    %c0_11 = arith.constant 0 : index
    %27 = vector.load %arg5[%c0_10, %c0_11] : memref<32x96xbf16, #tpu.memory_space<vmem>>, vector<32x96xbf16>
    %cst_12 = arith.constant dense<0.000000e+00> : vector<8x96xf32>
    %28 = tpu.matmul %26, %27, %cst_12 {dimension_numbers = #tpu.dot_dimension_numbers<[1], [0], [0], [1], [0, 0, 1, 1], [], []>} : vector<8x32xbf16>, vector<32x96xbf16>, vector<8x96xf32> -> vector<8x96xf32>
    %29 = vector.extract_strided_slice %28 {offsets = [0, 0], sizes = [8, 32], strides = [1, 1]} : vector<8x96xf32> to vector<8x32xf32>
    %30 = vector.extract_strided_slice %28 {offsets = [0, 32], sizes = [8, 32], strides = [1, 1]} : vector<8x96xf32> to vector<8x32xf32>
    %31 = vector.extract_strided_slice %28 {offsets = [0, 64], sizes = [8, 32], strides = [1, 1]} : vector<8x96xf32> to vector<8x32xf32>
    %32 = arith.truncf %30 : vector<8x32xf32> to vector<8x32xbf16>
    %c0_13 = arith.constant 0 : index
    %c0_14 = arith.constant 0 : index
    %c0_15 = arith.constant 0 : index
    %c0_16 = arith.constant 0 : index
    %33 = vector.load %arg9[%c0_13, %c0_14, %c0_15, %c0_16] : memref<2x1x8x32xbf16, #tpu.memory_space<vmem>>, vector<1x1x8x32xbf16>
    %34 = vector.shape_cast %33 : vector<1x1x8x32xbf16> to vector<8x32xbf16>
    %35 = vector.shape_cast %32 : vector<8x32xbf16> to vector<1x1x8x32xbf16>
    tpu.vector_store %arg9[%c0_13, %c0_14, %c0_15, %c0_16], %35 {strides = array<i32>} : memref<2x1x8x32xbf16, #tpu.memory_space<vmem>>, vector<1x1x8x32xbf16>,
    %36 = arith.truncf %31 : vector<8x32xf32> to vector<8x32xbf16>
    %c1 = arith.constant 1 : index
    %c0_17 = arith.constant 0 : index
    %c0_18 = arith.constant 0 : index
    %c0_19 = arith.constant 0 : index
    %37 = vector.load %arg9[%c1, %c0_17, %c0_18, %c0_19] : memref<2x1x8x32xbf16, #tpu.memory_space<vmem>>, vector<1x1x8x32xbf16>
    %38 = vector.shape_cast %37 : vector<1x1x8x32xbf16> to vector<8x32xbf16>
    %39 = vector.shape_cast %36 : vector<8x32xbf16> to vector<1x1x8x32xbf16>
    tpu.vector_store %arg9[%c1, %c0_17, %c0_18, %c0_19], %39 {strides = array<i32>} : memref<2x1x8x32xbf16, #tpu.memory_space<vmem>>, vector<1x1x8x32xbf16>,
    %c0_20 = arith.constant 0 : index
    %c0_21 = arith.constant 0 : index
    %40 = memref.load %arg6[%c0_20, %c0_21] : memref<1x1xf32, #tpu.memory_space<smem>>
    %41 = vector.shape_cast %29 : vector<8x32xf32> to vector<8x4x8xf32>
    %42 = vector.shape_cast %30 : vector<8x32xf32> to vector<8x4x8xf32>
    %43 = arith.mulf %41, %41 : vector<8x4x8xf32>
    %cst_22 = arith.constant dense<0.000000e+00> : vector<8x4xf32>
    %44 = vector.multi_reduction <add>, %43, %cst_22 [2] : vector<8x4x8xf32> to vector<8x4xf32>
    %45 = vector.shape_cast %44 : vector<8x4xf32> to vector<8x4x1xf32>
    %cst_23 = arith.constant 1.000000e-24 : f32
    %46 = vector.broadcast %cst_23 : f32 to vector<8x4x1xf32>
    %47 = arith.maximumf %45, %46 : vector<8x4x1xf32>
    %48 = math.rsqrt %47 : vector<8x4x1xf32>
    %49 = arith.mulf %42, %42 : vector<8x4x8xf32>
    %cst_24 = arith.constant dense<0.000000e+00> : vector<8x4xf32>
    %50 = vector.multi_reduction <add>, %49, %cst_24 [2] : vector<8x4x8xf32> to vector<8x4xf32>
    %51 = vector.shape_cast %50 : vector<8x4xf32> to vector<8x4x1xf32>
    %cst_25 = arith.constant 1.000000e-24 : f32
    %52 = vector.broadcast %cst_25 : f32 to vector<8x4x1xf32>
    %53 = arith.maximumf %51, %52 : vector<8x4x1xf32>
    %54 = math.rsqrt %53 : vector<8x4x1xf32>
    %55 = vector.broadcast %40 : f32 to vector<8x4x1xf32>
    %56 = arith.mulf %48, %55 : vector<8x4x1xf32>
    %57 = vector.broadcast %56 : vector<8x4x1xf32> to vector<8x4x8xf32>
    %58 = arith.mulf %41, %57 : vector<8x4x8xf32>
    %59 = vector.shape_cast %58 : vector<8x4x8xf32> to vector<8x32xf32>
    %60 = arith.truncf %59 : vector<8x32xf32> to vector<8x32xbf16>
    %c0_26 = arith.constant 0 : index
    %c0_27 = arith.constant 0 : index
    %c0_28 = arith.constant 0 : index
    %61 = vector.load %arg7[%c0_26, %c0_27, %c0_28] : memref<1x8x32xbf16, #tpu.memory_space<vmem>>, vector<1x8x32xbf16>
    %62 = vector.shape_cast %61 : vector<1x8x32xbf16> to vector<8x32xbf16>
    %63 = vector.shape_cast %60 : vector<8x32xbf16> to vector<1x8x32xbf16>
    tpu.vector_store %arg7[%c0_26, %c0_27, %c0_28], %63 {strides = array<i32>} : memref<1x8x32xbf16, #tpu.memory_space<vmem>>, vector<1x8x32xbf16>,
    %64 = vector.broadcast %54 : vector<8x4x1xf32> to vector<8x4x8xf32>
    %65 = arith.mulf %42, %64 : vector<8x4x8xf32>
    %66 = vector.shape_cast %65 : vector<8x4x8xf32> to vector<8x32xf32>
    %67 = arith.truncf %66 : vector<8x32xf32> to vector<8x32xbf16>
    %c0_29 = arith.constant 0 : index
    %c0_30 = arith.constant 0 : index
    %c0_31 = arith.constant 0 : index
    %68 = vector.load %arg8[%c0_29, %c0_30, %c0_31] : memref<1x8x32xbf16, #tpu.memory_space<vmem>>, vector<1x8x32xbf16>
    %69 = vector.shape_cast %68 : vector<1x8x32xbf16> to vector<8x32xbf16>
    %70 = vector.shape_cast %67 : vector<8x32xbf16> to vector<1x8x32xbf16>
    tpu.vector_store %arg8[%c0_29, %c0_30, %c0_31], %70 {strides = array<i32>} : memref<1x8x32xbf16, #tpu.memory_space<vmem>>, vector<1x8x32xbf16>,
    return
  }
  func.func @transform_0(%arg0: i32, %arg1: i32) -> (i32, i32, i32) {
    %c0_i32 = arith.constant 0 : i32
    %c0_i32_0 = arith.constant 0 : i32
    return %arg0, %arg1, %c0_i32 : i32, i32, i32
  }
  func.func @transform_1(%arg0: i32, %arg1: i32) -> (i32, i32) {
    %c0_i32 = arith.constant 0 : i32
    %c0_i32_0 = arith.constant 0 : i32
    %c0_i32_1 = arith.constant 0 : i32
    return %c0_i32, %c0_i32_0 : i32, i32
  }
  func.func @transform_2(%arg0: i32, %arg1: i32) -> (i32, i32) {
    %c0_i32 = arith.constant 0 : i32
    %c0_i32_0 = arith.constant 0 : i32
    %c0_i32_1 = arith.constant 0 : i32
    return %c0_i32, %c0_i32_0 : i32, i32
  }
  func.func @transform_3(%arg0: i32, %arg1: i32) -> (i32, i32) {
    %c0_i32 = arith.constant 0 : i32
    %c0_i32_0 = arith.constant 0 : i32
    %c0_i32_1 = arith.constant 0 : i32
    return %c0_i32, %c0_i32_0 : i32, i32
  }
  func.func @transform_4(%arg0: i32, %arg1: i32) -> (i32, i32) {
    %c0_i32 = arith.constant 0 : i32
    %c0_i32_0 = arith.constant 0 : i32
    %c0_i32_1 = arith.constant 0 : i32
    return %c0_i32, %c0_i32_0 : i32, i32
  }
  func.func @transform_5(%arg0: i32, %arg1: i32) -> (i32, i32, i32) {
    %c0_i32 = arith.constant 0 : i32
    %c0_i32_0 = arith.constant 0 : i32
    return %arg0, %arg1, %c0_i32 : i32, i32, i32
  }
  func.func @transform_6(%arg0: i32, %arg1: i32) -> (i32, i32, i32) {
    %c0_i32 = arith.constant 0 : i32
    %c0_i32_0 = arith.constant 0 : i32
    return %arg0, %arg1, %c0_i32 : i32, i32, i32
  }
  func.func @transform_7(%arg0: i32, %arg1: i32) -> (i32, i32, i32, i32) {
    %c0_i32 = arith.constant 0 : i32
    %c0_i32_0 = arith.constant 0 : i32
    %c0_i32_1 = arith.constant 0 : i32
    return %c0_i32, %arg0, %arg1, %c0_i32_0 : i32, i32, i32, i32
  }
}

module attributes {stable_mosaic.version = 11 : i64} {
  func.func @_ffn_kernel(%arg0: i32, %arg1: i32, %arg2: i32, %arg3: memref<1x8x32xf32, #tpu.memory_space<vmem>>, %arg4: memref<1x32xf32, #tpu.memory_space<vmem>>, %arg5: memref<1x32xf32, #tpu.memory_space<vmem>>, %arg6: memref<32x128xbf16, #tpu.memory_space<vmem>>, %arg7: memref<32x128xbf16, #tpu.memory_space<vmem>>, %arg8: memref<1x128xf32, #tpu.memory_space<vmem>>, %arg9: memref<1x128xf32, #tpu.memory_space<vmem>>, %arg10: memref<128x32xbf16, #tpu.memory_space<vmem>>, %arg11: memref<1x32xf32, #tpu.memory_space<vmem>>, %arg12: memref<1x8x32xf32, #tpu.memory_space<vmem>>, %arg13: memref<8x32xbf16, #tpu.memory_space<vmem>>, %arg14: memref<8x32xf32, #tpu.memory_space<vmem>>) attributes {dimension_semantics = [#tpu.dimension_semantics<parallel>, #tpu.dimension_semantics<parallel>, #tpu.dimension_semantics<arbitrary>], iteration_bounds = array<i64: 2, 1, 1>, scalar_prefetch = 0 : i64, scratch_operands = 2 : i64, tpu.core_type = #tpu.core_type<tc>, window_params = [{transform_indices = @transform_0, window_bounds = array<i64: 1, 8, 32>}, {pipeline_mode = #tpu.pipeline_mode<synchronous>, transform_indices = @transform_1, window_bounds = array<i64: 1, 32>}, {pipeline_mode = #tpu.pipeline_mode<synchronous>, transform_indices = @transform_2, window_bounds = array<i64: 1, 32>}, {transform_indices = @transform_3, window_bounds = array<i64: 32, 128>}, {transform_indices = @transform_4, window_bounds = array<i64: 32, 128>}, {transform_indices = @transform_5, window_bounds = array<i64: 1, 128>}, {transform_indices = @transform_6, window_bounds = array<i64: 1, 128>}, {transform_indices = @transform_7, window_bounds = array<i64: 128, 32>}, {pipeline_mode = #tpu.pipeline_mode<synchronous>, transform_indices = @transform_8, window_bounds = array<i64: 1, 32>}, {transform_indices = @transform_9, window_bounds = array<i64: 1, 8, 32>}]} {
    %c0_i32 = arith.constant 0 : i32
    %0 = arith.cmpi eq, %arg2, %c0_i32 : i32
    %1 = arith.extui %0 : i1 to i32
    %c0_i32_0 = arith.constant 0 : i32
    %2 = arith.cmpi ne, %1, %c0_i32_0 : i32
    scf.if %2 {
      %c0_21 = arith.constant 0 : index
      %c0_22 = arith.constant 0 : index
      %c0_23 = arith.constant 0 : index
      %30 = vector.load %arg3[%c0_21, %c0_22, %c0_23] : memref<1x8x32xf32, #tpu.memory_space<vmem>>, vector<1x8x32xf32>
      %31 = vector.shape_cast %30 : vector<1x8x32xf32> to vector<8x32xf32>
      %c0_24 = arith.constant 0 : index
      %c0_25 = arith.constant 0 : index
      %32 = vector.load %arg4[%c0_24, %c0_25] : memref<1x32xf32, #tpu.memory_space<vmem>>, vector<1x32xf32>
      %c0_26 = arith.constant 0 : index
      %c0_27 = arith.constant 0 : index
      %33 = vector.load %arg5[%c0_26, %c0_27] : memref<1x32xf32, #tpu.memory_space<vmem>>, vector<1x32xf32>
      %cst_28 = arith.constant dense<0.000000e+00> : vector<8xf32>
      %34 = vector.multi_reduction <add>, %31, %cst_28 [1] : vector<8x32xf32> to vector<8xf32>
      %35 = vector.shape_cast %34 : vector<8xf32> to vector<8x1xf32>
      %cst_29 = arith.constant 3.200000e+01 : f32
      %36 = vector.broadcast %cst_29 : f32 to vector<8x1xf32>
      %37 = arith.divf %35, %36 : vector<8x1xf32>
      %38 = vector.broadcast %37 : vector<8x1xf32> to vector<8x32xf32>
      %39 = arith.subf %31, %38 : vector<8x32xf32>
      %40 = arith.mulf %39, %39 : vector<8x32xf32>
      %cst_30 = arith.constant dense<0.000000e+00> : vector<8xf32>
      %41 = vector.multi_reduction <add>, %40, %cst_30 [1] : vector<8x32xf32> to vector<8xf32>
      %42 = vector.shape_cast %41 : vector<8xf32> to vector<8x1xf32>
      %cst_31 = arith.constant 3.200000e+01 : f32
      %43 = vector.broadcast %cst_31 : f32 to vector<8x1xf32>
      %44 = arith.divf %42, %43 : vector<8x1xf32>
      %45 = vector.broadcast %37 : vector<8x1xf32> to vector<8x32xf32>
      %46 = arith.subf %31, %45 : vector<8x32xf32>
      %cst_32 = arith.constant 9.99999974E-6 : f32
      %47 = vector.broadcast %cst_32 : f32 to vector<8x1xf32>
      %48 = arith.addf %44, %47 : vector<8x1xf32>
      %49 = math.rsqrt %48 : vector<8x1xf32>
      %50 = vector.broadcast %49 : vector<8x1xf32> to vector<8x32xf32>
      %51 = arith.mulf %46, %50 : vector<8x32xf32>
      %52 = vector.broadcast %32 : vector<1x32xf32> to vector<8x32xf32>
      %53 = arith.mulf %51, %52 : vector<8x32xf32>
      %54 = vector.broadcast %33 : vector<1x32xf32> to vector<8x32xf32>
      %55 = arith.addf %53, %54 : vector<8x32xf32>
      %56 = arith.truncf %55 : vector<8x32xf32> to vector<8x32xbf16>
      %c0_33 = arith.constant 0 : index
      %c0_34 = arith.constant 0 : index
      %57 = vector.load %arg13[%c0_33, %c0_34] : memref<8x32xbf16, #tpu.memory_space<vmem>>, vector<8x32xbf16>
      tpu.vector_store %arg13[%c0_33, %c0_34], %56 {strides = array<i32>} : memref<8x32xbf16, #tpu.memory_space<vmem>>, vector<8x32xbf16>,
      %cst_35 = arith.constant 0.000000e+00 : f32
      %58 = vector.broadcast %cst_35 : f32 to vector<8x32xf32>
      %c0_36 = arith.constant 0 : index
      %c0_37 = arith.constant 0 : index
      %59 = vector.load %arg14[%c0_36, %c0_37] : memref<8x32xf32, #tpu.memory_space<vmem>>, vector<8x32xf32>
      tpu.vector_store %arg14[%c0_36, %c0_37], %58 {strides = array<i32>} : memref<8x32xf32, #tpu.memory_space<vmem>>, vector<8x32xf32>,
    } else {
    }
    %c0 = arith.constant 0 : index
    %c0_1 = arith.constant 0 : index
    %3 = vector.load %arg13[%c0, %c0_1] : memref<8x32xbf16, #tpu.memory_space<vmem>>, vector<8x32xbf16>
    %c0_2 = arith.constant 0 : index
    %c0_3 = arith.constant 0 : index
    %4 = vector.load %arg6[%c0_2, %c0_3] : memref<32x128xbf16, #tpu.memory_space<vmem>>, vector<32x128xbf16>
    %cst = arith.constant dense<0.000000e+00> : vector<8x128xf32>
    %5 = tpu.matmul %3, %4, %cst {dimension_numbers = #tpu.dot_dimension_numbers<[1], [0], [0], [1], [0, 0, 1, 1], [], []>} : vector<8x32xbf16>, vector<32x128xbf16>, vector<8x128xf32> -> vector<8x128xf32>
    %c0_4 = arith.constant 0 : index
    %c0_5 = arith.constant 0 : index
    %6 = vector.load %arg8[%c0_4, %c0_5] : memref<1x128xf32, #tpu.memory_space<vmem>>, vector<1x128xf32>
    %7 = vector.broadcast %6 : vector<1x128xf32> to vector<8x128xf32>
    %8 = arith.addf %5, %7 : vector<8x128xf32>
    %c0_6 = arith.constant 0 : index
    %c0_7 = arith.constant 0 : index
    %9 = vector.load %arg7[%c0_6, %c0_7] : memref<32x128xbf16, #tpu.memory_space<vmem>>, vector<32x128xbf16>
    %cst_8 = arith.constant dense<0.000000e+00> : vector<8x128xf32>
    %10 = tpu.matmul %3, %9, %cst_8 {dimension_numbers = #tpu.dot_dimension_numbers<[1], [0], [0], [1], [0, 0, 1, 1], [], []>} : vector<8x32xbf16>, vector<32x128xbf16>, vector<8x128xf32> -> vector<8x128xf32>
    %c0_9 = arith.constant 0 : index
    %c0_10 = arith.constant 0 : index
    %11 = vector.load %arg9[%c0_9, %c0_10] : memref<1x128xf32, #tpu.memory_space<vmem>>, vector<1x128xf32>
    %12 = vector.broadcast %11 : vector<1x128xf32> to vector<8x128xf32>
    %13 = arith.addf %10, %12 : vector<8x128xf32>
    %14 = arith.negf %13 : vector<8x128xf32>
    %15 = math.exp %14 : vector<8x128xf32>
    %cst_11 = arith.constant 1.000000e+00 : f32
    %16 = vector.broadcast %cst_11 : f32 to vector<8x128xf32>
    %17 = arith.addf %16, %15 : vector<8x128xf32>
    %18 = arith.divf %16, %17 : vector<8x128xf32>
    %19 = arith.mulf %13, %18 : vector<8x128xf32>
    %20 = arith.mulf %8, %19 : vector<8x128xf32>
    %c0_12 = arith.constant 0 : index
    %c0_13 = arith.constant 0 : index
    %21 = vector.load %arg14[%c0_12, %c0_13] : memref<8x32xf32, #tpu.memory_space<vmem>>, vector<8x32xf32>
    %22 = arith.truncf %20 : vector<8x128xf32> to vector<8x128xbf16>
    %c0_14 = arith.constant 0 : index
    %c0_15 = arith.constant 0 : index
    %23 = vector.load %arg10[%c0_14, %c0_15] : memref<128x32xbf16, #tpu.memory_space<vmem>>, vector<128x32xbf16>
    %cst_16 = arith.constant dense<0.000000e+00> : vector<8x32xf32>
    %24 = tpu.matmul %22, %23, %cst_16 {dimension_numbers = #tpu.dot_dimension_numbers<[1], [0], [0], [1], [0, 0, 1, 1], [], []>} : vector<8x128xbf16>, vector<128x32xbf16>, vector<8x32xf32> -> vector<8x32xf32>
    %25 = arith.addf %21, %24 : vector<8x32xf32>
    %c0_17 = arith.constant 0 : index
    %c0_18 = arith.constant 0 : index
    %26 = vector.load %arg14[%c0_17, %c0_18] : memref<8x32xf32, #tpu.memory_space<vmem>>, vector<8x32xf32>
    tpu.vector_store %arg14[%c0_17, %c0_18], %25 {strides = array<i32>} : memref<8x32xf32, #tpu.memory_space<vmem>>, vector<8x32xf32>,
    %c0_i32_19 = arith.constant 0 : i32
    %27 = arith.cmpi eq, %arg2, %c0_i32_19 : i32
    %28 = arith.extui %27 : i1 to i32
    %c0_i32_20 = arith.constant 0 : i32
    %29 = arith.cmpi ne, %28, %c0_i32_20 : i32
    scf.if %29 {
      %c0_21 = arith.constant 0 : index
      %c0_22 = arith.constant 0 : index
      %c0_23 = arith.constant 0 : index
      %30 = vector.load %arg3[%c0_21, %c0_22, %c0_23] : memref<1x8x32xf32, #tpu.memory_space<vmem>>, vector<1x8x32xf32>
      %31 = vector.shape_cast %30 : vector<1x8x32xf32> to vector<8x32xf32>
      %c0_24 = arith.constant 0 : index
      %c0_25 = arith.constant 0 : index
      %32 = vector.load %arg14[%c0_24, %c0_25] : memref<8x32xf32, #tpu.memory_space<vmem>>, vector<8x32xf32>
      %33 = arith.addf %31, %32 : vector<8x32xf32>
      %c0_26 = arith.constant 0 : index
      %c0_27 = arith.constant 0 : index
      %34 = vector.load %arg11[%c0_26, %c0_27] : memref<1x32xf32, #tpu.memory_space<vmem>>, vector<1x32xf32>
      %35 = vector.broadcast %34 : vector<1x32xf32> to vector<8x32xf32>
      %36 = arith.addf %33, %35 : vector<8x32xf32>
      %c0_28 = arith.constant 0 : index
      %c0_29 = arith.constant 0 : index
      %c0_30 = arith.constant 0 : index
      %37 = vector.load %arg12[%c0_28, %c0_29, %c0_30] : memref<1x8x32xf32, #tpu.memory_space<vmem>>, vector<1x8x32xf32>
      %38 = vector.shape_cast %37 : vector<1x8x32xf32> to vector<8x32xf32>
      %39 = vector.shape_cast %36 : vector<8x32xf32> to vector<1x8x32xf32>
      tpu.vector_store %arg12[%c0_28, %c0_29, %c0_30], %39 {strides = array<i32>} : memref<1x8x32xf32, #tpu.memory_space<vmem>>, vector<1x8x32xf32>,
    } else {
    }
    return
  }
  func.func @transform_0(%arg0: i32, %arg1: i32, %arg2: i32) -> (i32, i32, i32) {
    %c0_i32 = arith.constant 0 : i32
    %c0_i32_0 = arith.constant 0 : i32
    return %arg0, %arg1, %c0_i32 : i32, i32, i32
  }
  func.func @transform_1(%arg0: i32, %arg1: i32, %arg2: i32) -> (i32, i32) {
    %c0_i32 = arith.constant 0 : i32
    %c0_i32_0 = arith.constant 0 : i32
    %c0_i32_1 = arith.constant 0 : i32
    return %c0_i32, %c0_i32_0 : i32, i32
  }
  func.func @transform_2(%arg0: i32, %arg1: i32, %arg2: i32) -> (i32, i32) {
    %c0_i32 = arith.constant 0 : i32
    %c0_i32_0 = arith.constant 0 : i32
    %c0_i32_1 = arith.constant 0 : i32
    return %c0_i32, %c0_i32_0 : i32, i32
  }
  func.func @transform_3(%arg0: i32, %arg1: i32, %arg2: i32) -> (i32, i32) {
    %c0_i32 = arith.constant 0 : i32
    %c0_i32_0 = arith.constant 0 : i32
    return %c0_i32, %arg2 : i32, i32
  }
  func.func @transform_4(%arg0: i32, %arg1: i32, %arg2: i32) -> (i32, i32) {
    %c0_i32 = arith.constant 0 : i32
    %c0_i32_0 = arith.constant 0 : i32
    return %c0_i32, %arg2 : i32, i32
  }
  func.func @transform_5(%arg0: i32, %arg1: i32, %arg2: i32) -> (i32, i32) {
    %c0_i32 = arith.constant 0 : i32
    %c0_i32_0 = arith.constant 0 : i32
    return %c0_i32, %arg2 : i32, i32
  }
  func.func @transform_6(%arg0: i32, %arg1: i32, %arg2: i32) -> (i32, i32) {
    %c0_i32 = arith.constant 0 : i32
    %c0_i32_0 = arith.constant 0 : i32
    return %c0_i32, %arg2 : i32, i32
  }
  func.func @transform_7(%arg0: i32, %arg1: i32, %arg2: i32) -> (i32, i32) {
    %c0_i32 = arith.constant 0 : i32
    %c0_i32_0 = arith.constant 0 : i32
    return %arg2, %c0_i32 : i32, i32
  }
  func.func @transform_8(%arg0: i32, %arg1: i32, %arg2: i32) -> (i32, i32) {
    %c0_i32 = arith.constant 0 : i32
    %c0_i32_0 = arith.constant 0 : i32
    %c0_i32_1 = arith.constant 0 : i32
    return %c0_i32, %c0_i32_0 : i32, i32
  }
  func.func @transform_9(%arg0: i32, %arg1: i32, %arg2: i32) -> (i32, i32, i32) {
    %c0_i32 = arith.constant 0 : i32
    %c0_i32_0 = arith.constant 0 : i32
    return %arg0, %arg1, %c0_i32 : i32, i32, i32
  }
}

module attributes {stable_mosaic.version = 11 : i64} {
  func.func @_ffn_kernel(%arg0: i32, %arg1: i32, %arg2: i32, %arg3: memref<1x8x32xf32, #tpu.memory_space<vmem>>, %arg4: memref<1x32xf32, #tpu.memory_space<vmem>>, %arg5: memref<1x32xf32, #tpu.memory_space<vmem>>, %arg6: memref<32x128xbf16, #tpu.memory_space<vmem>>, %arg7: memref<32x128xbf16, #tpu.memory_space<vmem>>, %arg8: memref<1x128xf32, #tpu.memory_space<vmem>>, %arg9: memref<1x128xf32, #tpu.memory_space<vmem>>, %arg10: memref<128x32xbf16, #tpu.memory_space<vmem>>, %arg11: memref<1x32xf32, #tpu.memory_space<vmem>>, %arg12: memref<1x8x32xf32, #tpu.memory_space<vmem>>, %arg13: memref<8x32xbf16, #tpu.memory_space<vmem>>, %arg14: memref<8x32xf32, #tpu.memory_space<vmem>>) attributes {dimension_semantics = [#tpu.dimension_semantics<parallel>, #tpu.dimension_semantics<parallel>, #tpu.dimension_semantics<arbitrary>], iteration_bounds = array<i64: 2, 1, 1>, scalar_prefetch = 0 : i64, scratch_operands = 2 : i64, tpu.core_type = #tpu.core_type<tc>, window_params = [{transform_indices = @transform_0, window_bounds = array<i64: 1, 8, 32>}, {pipeline_mode = #tpu.pipeline_mode<synchronous>, transform_indices = @transform_1, window_bounds = array<i64: 1, 32>}, {pipeline_mode = #tpu.pipeline_mode<synchronous>, transform_indices = @transform_2, window_bounds = array<i64: 1, 32>}, {transform_indices = @transform_3, window_bounds = array<i64: 32, 128>}, {transform_indices = @transform_4, window_bounds = array<i64: 32, 128>}, {transform_indices = @transform_5, window_bounds = array<i64: 1, 128>}, {transform_indices = @transform_6, window_bounds = array<i64: 1, 128>}, {transform_indices = @transform_7, window_bounds = array<i64: 128, 32>}, {pipeline_mode = #tpu.pipeline_mode<synchronous>, transform_indices = @transform_8, window_bounds = array<i64: 1, 32>}, {transform_indices = @transform_9, window_bounds = array<i64: 1, 8, 32>}]} {
    %c0_i32 = arith.constant 0 : i32
    %0 = arith.cmpi eq, %arg2, %c0_i32 : i32
    %1 = arith.extui %0 : i1 to i32
    %c0_i32_0 = arith.constant 0 : i32
    %2 = arith.cmpi ne, %1, %c0_i32_0 : i32
    scf.if %2 {
      %c0_21 = arith.constant 0 : index
      %c0_22 = arith.constant 0 : index
      %c0_23 = arith.constant 0 : index
      %30 = vector.load %arg3[%c0_21, %c0_22, %c0_23] : memref<1x8x32xf32, #tpu.memory_space<vmem>>, vector<1x8x32xf32>
      %31 = vector.shape_cast %30 : vector<1x8x32xf32> to vector<8x32xf32>
      %c0_24 = arith.constant 0 : index
      %c0_25 = arith.constant 0 : index
      %32 = vector.load %arg4[%c0_24, %c0_25] : memref<1x32xf32, #tpu.memory_space<vmem>>, vector<1x32xf32>
      %c0_26 = arith.constant 0 : index
      %c0_27 = arith.constant 0 : index
      %33 = vector.load %arg5[%c0_26, %c0_27] : memref<1x32xf32, #tpu.memory_space<vmem>>, vector<1x32xf32>
      %cst_28 = arith.constant dense<0.000000e+00> : vector<8xf32>
      %34 = vector.multi_reduction <add>, %31, %cst_28 [1] : vector<8x32xf32> to vector<8xf32>
      %35 = vector.shape_cast %34 : vector<8xf32> to vector<8x1xf32>
      %cst_29 = arith.constant 3.200000e+01 : f32
      %36 = vector.broadcast %cst_29 : f32 to vector<8x1xf32>
      %37 = arith.divf %35, %36 : vector<8x1xf32>
      %38 = vector.broadcast %37 : vector<8x1xf32> to vector<8x32xf32>
      %39 = arith.subf %31, %38 : vector<8x32xf32>
      %40 = arith.mulf %39, %39 : vector<8x32xf32>
      %cst_30 = arith.constant dense<0.000000e+00> : vector<8xf32>
      %41 = vector.multi_reduction <add>, %40, %cst_30 [1] : vector<8x32xf32> to vector<8xf32>
      %42 = vector.shape_cast %41 : vector<8xf32> to vector<8x1xf32>
      %cst_31 = arith.constant 3.200000e+01 : f32
      %43 = vector.broadcast %cst_31 : f32 to vector<8x1xf32>
      %44 = arith.divf %42, %43 : vector<8x1xf32>
      %45 = vector.broadcast %37 : vector<8x1xf32> to vector<8x32xf32>
      %46 = arith.subf %31, %45 : vector<8x32xf32>
      %cst_32 = arith.constant 9.99999974E-6 : f32
      %47 = vector.broadcast %cst_32 : f32 to vector<8x1xf32>
      %48 = arith.addf %44, %47 : vector<8x1xf32>
      %49 = math.rsqrt %48 : vector<8x1xf32>
      %50 = vector.broadcast %49 : vector<8x1xf32> to vector<8x32xf32>
      %51 = arith.mulf %46, %50 : vector<8x32xf32>
      %52 = vector.broadcast %32 : vector<1x32xf32> to vector<8x32xf32>
      %53 = arith.mulf %51, %52 : vector<8x32xf32>
      %54 = vector.broadcast %33 : vector<1x32xf32> to vector<8x32xf32>
      %55 = arith.addf %53, %54 : vector<8x32xf32>
      %56 = arith.truncf %55 : vector<8x32xf32> to vector<8x32xbf16>
      %c0_33 = arith.constant 0 : index
      %c0_34 = arith.constant 0 : index
      %57 = vector.load %arg13[%c0_33, %c0_34] : memref<8x32xbf16, #tpu.memory_space<vmem>>, vector<8x32xbf16>
      tpu.vector_store %arg13[%c0_33, %c0_34], %56 {strides = array<i32>} : memref<8x32xbf16, #tpu.memory_space<vmem>>, vector<8x32xbf16>,
      %cst_35 = arith.constant 0.000000e+00 : f32
      %58 = vector.broadcast %cst_35 : f32 to vector<8x32xf32>
      %c0_36 = arith.constant 0 : index
      %c0_37 = arith.constant 0 : index
      %59 = vector.load %arg14[%c0_36, %c0_37] : memref<8x32xf32, #tpu.memory_space<vmem>>, vector<8x32xf32>
      tpu.vector_store %arg14[%c0_36, %c0_37], %58 {strides = array<i32>} : memref<8x32xf32, #tpu.memory_space<vmem>>, vector<8x32xf32>,
    } else {
    }
    %c0 = arith.constant 0 : index
    %c0_1 = arith.constant 0 : index
    %3 = vector.load %arg13[%c0, %c0_1] : memref<8x32xbf16, #tpu.memory_space<vmem>>, vector<8x32xbf16>
    %c0_2 = arith.constant 0 : index
    %c0_3 = arith.constant 0 : index
    %4 = vector.load %arg6[%c0_2, %c0_3] : memref<32x128xbf16, #tpu.memory_space<vmem>>, vector<32x128xbf16>
    %cst = arith.constant dense<0.000000e+00> : vector<8x128xf32>
    %5 = tpu.matmul %3, %4, %cst {dimension_numbers = #tpu.dot_dimension_numbers<[1], [0], [0], [1], [0, 0, 1, 1], [], []>} : vector<8x32xbf16>, vector<32x128xbf16>, vector<8x128xf32> -> vector<8x128xf32>
    %c0_4 = arith.constant 0 : index
    %c0_5 = arith.constant 0 : index
    %6 = vector.load %arg8[%c0_4, %c0_5] : memref<1x128xf32, #tpu.memory_space<vmem>>, vector<1x128xf32>
    %7 = vector.broadcast %6 : vector<1x128xf32> to vector<8x128xf32>
    %8 = arith.addf %5, %7 : vector<8x128xf32>
    %c0_6 = arith.constant 0 : index
    %c0_7 = arith.constant 0 : index
    %9 = vector.load %arg7[%c0_6, %c0_7] : memref<32x128xbf16, #tpu.memory_space<vmem>>, vector<32x128xbf16>
    %cst_8 = arith.constant dense<0.000000e+00> : vector<8x128xf32>
    %10 = tpu.matmul %3, %9, %cst_8 {dimension_numbers = #tpu.dot_dimension_numbers<[1], [0], [0], [1], [0, 0, 1, 1], [], []>} : vector<8x32xbf16>, vector<32x128xbf16>, vector<8x128xf32> -> vector<8x128xf32>
    %c0_9 = arith.constant 0 : index
    %c0_10 = arith.constant 0 : index
    %11 = vector.load %arg9[%c0_9, %c0_10] : memref<1x128xf32, #tpu.memory_space<vmem>>, vector<1x128xf32>
    %12 = vector.broadcast %11 : vector<1x128xf32> to vector<8x128xf32>
    %13 = arith.addf %10, %12 : vector<8x128xf32>
    %14 = arith.negf %13 : vector<8x128xf32>
    %15 = math.exp %14 : vector<8x128xf32>
    %cst_11 = arith.constant 1.000000e+00 : f32
    %16 = vector.broadcast %cst_11 : f32 to vector<8x128xf32>
    %17 = arith.addf %16, %15 : vector<8x128xf32>
    %18 = arith.divf %16, %17 : vector<8x128xf32>
    %19 = arith.mulf %13, %18 : vector<8x128xf32>
    %20 = arith.mulf %8, %19 : vector<8x128xf32>
    %c0_12 = arith.constant 0 : index
    %c0_13 = arith.constant 0 : index
    %21 = vector.load %arg14[%c0_12, %c0_13] : memref<8x32xf32, #tpu.memory_space<vmem>>, vector<8x32xf32>
    %22 = arith.truncf %20 : vector<8x128xf32> to vector<8x128xbf16>
    %c0_14 = arith.constant 0 : index
    %c0_15 = arith.constant 0 : index
    %23 = vector.load %arg10[%c0_14, %c0_15] : memref<128x32xbf16, #tpu.memory_space<vmem>>, vector<128x32xbf16>
    %cst_16 = arith.constant dense<0.000000e+00> : vector<8x32xf32>
    %24 = tpu.matmul %22, %23, %cst_16 {dimension_numbers = #tpu.dot_dimension_numbers<[1], [0], [0], [1], [0, 0, 1, 1], [], []>} : vector<8x128xbf16>, vector<128x32xbf16>, vector<8x32xf32> -> vector<8x32xf32>
    %25 = arith.addf %21, %24 : vector<8x32xf32>
    %c0_17 = arith.constant 0 : index
    %c0_18 = arith.constant 0 : index
    %26 = vector.load %arg14[%c0_17, %c0_18] : memref<8x32xf32, #tpu.memory_space<vmem>>, vector<8x32xf32>
    tpu.vector_store %arg14[%c0_17, %c0_18], %25 {strides = array<i32>} : memref<8x32xf32, #tpu.memory_space<vmem>>, vector<8x32xf32>,
    %c0_i32_19 = arith.constant 0 : i32
    %27 = arith.cmpi eq, %arg2, %c0_i32_19 : i32
    %28 = arith.extui %27 : i1 to i32
    %c0_i32_20 = arith.constant 0 : i32
    %29 = arith.cmpi ne, %28, %c0_i32_20 : i32
    scf.if %29 {
      %c0_21 = arith.constant 0 : index
      %c0_22 = arith.constant 0 : index
      %c0_23 = arith.constant 0 : index
      %30 = vector.load %arg3[%c0_21, %c0_22, %c0_23] : memref<1x8x32xf32, #tpu.memory_space<vmem>>, vector<1x8x32xf32>
      %31 = vector.shape_cast %30 : vector<1x8x32xf32> to vector<8x32xf32>
      %c0_24 = arith.constant 0 : index
      %c0_25 = arith.constant 0 : index
      %32 = vector.load %arg14[%c0_24, %c0_25] : memref<8x32xf32, #tpu.memory_space<vmem>>, vector<8x32xf32>
      %33 = arith.addf %31, %32 : vector<8x32xf32>
      %c0_26 = arith.constant 0 : index
      %c0_27 = arith.constant 0 : index
      %34 = vector.load %arg11[%c0_26, %c0_27] : memref<1x32xf32, #tpu.memory_space<vmem>>, vector<1x32xf32>
      %35 = vector.broadcast %34 : vector<1x32xf32> to vector<8x32xf32>
      %36 = arith.addf %33, %35 : vector<8x32xf32>
      %c0_28 = arith.constant 0 : index
      %c0_29 = arith.constant 0 : index
      %c0_30 = arith.constant 0 : index
      %37 = vector.load %arg12[%c0_28, %c0_29, %c0_30] : memref<1x8x32xf32, #tpu.memory_space<vmem>>, vector<1x8x32xf32>
      %38 = vector.shape_cast %37 : vector<1x8x32xf32> to vector<8x32xf32>
      %39 = vector.shape_cast %36 : vector<8x32xf32> to vector<1x8x32xf32>
      tpu.vector_store %arg12[%c0_28, %c0_29, %c0_30], %39 {strides = array<i32>} : memref<1x8x32xf32, #tpu.memory_space<vmem>>, vector<1x8x32xf32>,
    } else {
    }
    return
  }
  func.func @transform_0(%arg0: i32, %arg1: i32, %arg2: i32) -> (i32, i32, i32) {
    %c0_i32 = arith.constant 0 : i32
    %c0_i32_0 = arith.constant 0 : i32
    return %arg0, %arg1, %c0_i32 : i32, i32, i32
  }
  func.func @transform_1(%arg0: i32, %arg1: i32, %arg2: i32) -> (i32, i32) {
    %c0_i32 = arith.constant 0 : i32
    %c0_i32_0 = arith.constant 0 : i32
    %c0_i32_1 = arith.constant 0 : i32
    return %c0_i32, %c0_i32_0 : i32, i32
  }
  func.func @transform_2(%arg0: i32, %arg1: i32, %arg2: i32) -> (i32, i32) {
    %c0_i32 = arith.constant 0 : i32
    %c0_i32_0 = arith.constant 0 : i32
    %c0_i32_1 = arith.constant 0 : i32
    return %c0_i32, %c0_i32_0 : i32, i32
  }
  func.func @transform_3(%arg0: i32, %arg1: i32, %arg2: i32) -> (i32, i32) {
    %c0_i32 = arith.constant 0 : i32
    %c0_i32_0 = arith.constant 0 : i32
    return %c0_i32, %arg2 : i32, i32
  }
  func.func @transform_4(%arg0: i32, %arg1: i32, %arg2: i32) -> (i32, i32) {
    %c0_i32 = arith.constant 0 : i32
    %c0_i32_0 = arith.constant 0 : i32
    return %c0_i32, %arg2 : i32, i32
  }
  func.func @transform_5(%arg0: i32, %arg1: i32, %arg2: i32) -> (i32, i32) {
    %c0_i32 = arith.constant 0 : i32
    %c0_i32_0 = arith.constant 0 : i32
    return %c0_i32, %arg2 : i32, i32
  }
  func.func @transform_6(%arg0: i32, %arg1: i32, %arg2: i32) -> (i32, i32) {
    %c0_i32 = arith.constant 0 : i32
    %c0_i32_0 = arith.constant 0 : i32
    return %c0_i32, %arg2 : i32, i32
  }
  func.func @transform_7(%arg0: i32, %arg1: i32, %arg2: i32) -> (i32, i32) {
    %c0_i32 = arith.constant 0 : i32
    %c0_i32_0 = arith.constant 0 : i32
    return %arg2, %c0_i32 : i32, i32
  }
  func.func @transform_8(%arg0: i32, %arg1: i32, %arg2: i32) -> (i32, i32) {
    %c0_i32 = arith.constant 0 : i32
    %c0_i32_0 = arith.constant 0 : i32
    %c0_i32_1 = arith.constant 0 : i32
    return %c0_i32, %c0_i32_0 : i32, i32
  }
  func.func @transform_9(%arg0: i32, %arg1: i32, %arg2: i32) -> (i32, i32, i32) {
    %c0_i32 = arith.constant 0 : i32
    %c0_i32_0 = arith.constant 0 : i32
    return %arg0, %arg1, %c0_i32 : i32, i32, i32
  }
}

</mosaic_0001>

<bundles_post_ra>
// kernel: transformer_forward.6
= control target key start
LH: loop header
LB: loop body
LE: loop exit
PB: predicated region body
PF: predicated region fallthrough
CT: control target
= control target key end

     0   :  { %s2128_s0 = inlined_call_operand.hbm [shape: f32[2,8,32], index: 0, kind: input, shape index: {}]   ;;  %s2129_s1 = inlined_call_operand.vmem [shape: f32[1,32], index: 1, kind: input, shape index: {}]   ;;  %s2130_s2 = inlined_call_operand.vmem [shape: f32[1,32], index: 2, kind: input, shape index: {}]   ;;  %s2131_s3 = inlined_call_operand.hbm [shape: bf16[32,96], index: 3, kind: input, shape index: {}]   ;;  %s2132_s4 = inlined_call_operand.<no memory space> [shape: f32[1,1], index: 4, kind: input, shape index: {}]   ;;  %s2133_s5 = inlined_call_operand.vmem [shape: bf16[2,8,32], index: 5, kind: output, shape index: {0}]   ;;  %s2134_s6 = inlined_call_operand.vmem [shape: bf16[2,8,32], index: 6, kind: output, shape index: {1}]   ;;  %s2135_s7 = inlined_call_operand.vmem [shape: bf16[2,2,8,32], index: 7, kind: output, shape index: {2}]  }
   0x1   :  { %13 = sst [smem:[#allocation2]] %s2132_s4 }
   0x2   :  { %14 = vsyncpa [#allocation4], 0 }
   0x3   :  { %16 = vsyncpa [#allocation4 + $0x1], 0 }
   0x4   :  { %17 = vsyncpa [#allocation6], 0  ;;  %s1555_s26 = smov 0   ;;  %s1557_s27 = smov 0  }
   0x5   :  { %s1559_s28 = smov 0   ;;  %s1561_s29 = smov 0  }
   0x6   :  { %s1563_s30 = smov 0   ;;  %s1565_s8 = smov 0  }
   0x7 LB: > { %s1221_s4 = sadd.s32 4294967295, %s1496_s8   ;;  %p1223_p0 = scmp.ge.s32.totalorder %s1496_s8, 1  ;;  %s1496_s8 = sphi %s1565_s8, %s23_s8   ;;  %s1492_s30 = sphi %s1563_s30, %s2161_s30   ;;  %s1488_s29 = sphi %s1561_s29, %s2160_s29   ;;  %s1484_s28 = sphi %s1559_s28, %s2159_s28   ;;  %s1480_s27 = sphi %s1557_s27, %s2158_s27   ;;  %s1476_s26 = sphi %s1555_s26, %s2157_s26  }
   0x8   : > { %p1587_p1 = scmp.eq.s32.totalorder %s1221_s4, 0  ;;  %p236_p2 = scmp.lt.s32.totalorder %s1496_s8, 3 }
   0x9   : > { %s253_s12 = sshll.u32 %s2131_s3, 4  ;;  %s1498_s14 = smov [#allocation5]   ;;  %s254_s12 = int_to_ptr.hbm [resolvable:$true] %s253_s12 }
   0xa   : > { %p1595_p3 = pnand %p1223_p0, %p236_p2  ;;  %s255_s15 = sshll.u32 %s1498_s14, 4  ;;  %s256_s15 = int_to_ptr.vmem [resolvable:$true] %s255_s15 }
   0xb   : > { %s1499_s16 = smov 64   ;;  %s1500_s17 = smov 4  }
   0xc   : > { %p1256_p4 = pneg %p1595_p3  ;;  %s35_s18 = sadd.s32 1, %s1492_s30 }
   0xd   : > { %p37_p6 = scmp.ge.s32.totalorder %s35_s18, 2  ;;  %p51_p7 = scmp.ne.s32.totalorder %s1484_s28, %s1480_s27 }
   0xe   : > { %p1257_p5 = pnand %p1256_p4, %p1587_p1  ;;  %p52_p8 = scmp.eq.s32.totalorder %s1496_s8, 0 }
   0xf   : > { %s2163_s18 = smov (%p37_p6, %s35_s18), 0  ;;  %s44_s19 = sadd.s32 1, %s1484_s28 }
  0x10   : > { %1259 = dma.hbm_to_vmem [thread:$0]  (!%p1257_p5), %s254_s12, 256, %s256_s15, [#allocation6], %s1499_s16, %s1499_s16, %s1500_s17  }
  0x11   : > { %p57_p9 = scmp.ne.s32.totalorder %s1480_s27, %s1476_s26  ;;  %s39_s20 = ssub.s32 %s1492_s30, %s2163_s18 }
  0x12   : > { %p223_p10 = scmp.eq.s32.totalorder %s1221_s4, 1  ;;  %p42_p11 = scmp.eq.s32.totalorder %s39_s20, 0 }
  0x13   : > { %p1616_p12 = por %p1587_p1, %p57_p9  ;;  %p1620_p13 = por %p52_p8, %p51_p7 }
  0x14   : > { %p1624_p0 = por %p223_p10, %p51_p7  ;;  %s272_s25 = sand.u32 1, %s1484_s28  }
  0x15   : > { %s1629_s24 = scalar_select %p42_p11, %s1484_s28, %s44_s19  }
  0x16   : > { %s1227_s26 = sshll.u32 %s1492_s30, 3  ;;  %p1265_p2 = scmp.lt.s32.totalorder %s1496_s8, 2 }
  0x17   : > { %s1226_s4 = sshll.u32 %s272_s25, 3  ;;  %s281_s12 = scalar_lea.hbm %s2128_s0, %s1227_s26 }
  0x18   : > { %s283_s14 = sshll.u32 %s281_s12, 4  ;;  %s276_s15 = scalar_lea.vmem [#allocation3], %s1226_s4  ;;  %s284_s14 = int_to_ptr.hbm [resolvable:$true] %s283_s14 }
  0x19   : > { %s285_s16 = sshll.u32 %s276_s15, 4  ;;  %p1261_p4 = pnand %p1265_p2, %p1620_p13  ;;  %s286_s16 = int_to_ptr.vmem [resolvable:$true] %s285_s16 }
  0x1a   : > { %s273_s17 = scalar_lea.sflag [#allocation4], %s272_s25  ;;  %294 = sbr.rel (%p1595_p3) target bundleno = 979 (0x3d3), region = 40 }
  0x1b   : > { %1263 = dma.hbm_to_vmem [thread:$0]  (!%p1261_p4), %s284_s14, 128, %s286_s16, %s273_s17  }
  0x1c   : > { %s296_s19 = sand.u32 (!%p1595_p3), 1, %s1480_s27  }
  0x1d   : > { %s1642_s20 = sshll.u32 (!%p1595_p3), %s296_s19, 3  ;;  %s297_s10 = scalar_lea.sflag (!%p1595_p3), [#allocation4], %s296_s19 }
  0x1e   : > { %s300_s26 = scalar_lea.vmem (!%p1595_p3), [#allocation3], %s1642_s20 }
  0x1f   : > { %1467 = dma.done.wait (%p1616_p12), %s297_s10, 128  }
  0x20   : > { %1469 = vsyncadd (%p1616_p12), %s297_s10, 4294967168 }
  0x21   : > { %1471 = dma.done.wait (%p1587_p1), [#allocation6], 256  }
  0x22   : > { %1473 = vsyncadd (%p1587_p1), [#allocation6], 4294967040  ;;  %vm368_vm0 = vcmask 261120   ;;  %v365_v0 = vld [vmem:[%s300_s26] sm:$0xff]  ;;  %v1501_v2 = vmov 32.0   ;;  %v1249_v14 = vld [vmem:[#allocation5 + $0x8] sm:$0xff] }
  0x23   : > { %v369_v1 = vsel %vm368_vm0, %v365_v0, 0.0  ;;  %1346 = vrcp.f32 %v1501_v2  ;;  %432 = vmatpush.bf16.msra.mxu0 %v1249_v14  ;;  %v1248_v15 = vld [vmem:[#allocation5] sm:$0xff]  ;;  %v1344_v25 = vld [vmem:[%s2129_s1] ss:$0 sm:$0xff]  ;;  %s1502_s25 = smov 96   ;;  %s1503_s4 = smov 120  }
  0x24   : > { %370 = vadd.xlane.f32.xlu0 %v369_v1  ;;  %v1345_v28 = vld [vmem:[%s2130_s2] ss:$0 sm:$0xff]  ;;  %s1504_s11 = smov 112   ;;  %s1505_s12 = smov 104   ;;  %v1506_v35 = vmov 1983009808  }
  0x25   : > { %v468_v36 = vunpack.c.l.s4 %v1506_v35  ;;  %vm463_vm5 = vcmask 1047556   ;;  %v1507_v44 = vmov 1934713408   ;;  %vm595_vm6 = vcmask 60416   ;;  %s451_s14 = sld [smem:[#allocation2]]  ;;  %s1508_s15 = smov 16  }
  0x26   : > { %v492_v45 = vunpack.c.l.s4 %v1507_v44  ;;  %s1509_s16 = smov 8   ;;  %s1510_s17 = smov 24  }
  0x27   : > { %433 = vmatpush.bf16.msra.mxu0 %v1248_v15  ;;  %v1672_v41 = vunpack.c.0.s8 %v468_v36  ;;  %s1511_s19 = smov 64   ;;  %s2085_s10 = scalar_lea.vmem [#allocation7], %s1642_s20 }
  0x28   : > { %v1679_v49 = vunpack.c.0.s8 %v492_v45  ;;  %p350_p1 = scmp.lt.s32.totalorder %s1488_s29, 1 }
  0x29   : > { %v1347_v3 = vpop.eup %1346 }
  0x2a   : > { %v373_v4 = vmul.f32 32.0, %v1347_v3  ;;  %vm377_vm1 = vweird.f32 %v1347_v3  ;;  %s351_s26 = scalar_select %p350_p1, %s1488_s29, 1 }
  0x2c   : > { %v374_v5 = vsub.f32 1.0, %v373_v4  ;;  %s1232_s9 = sshll.u32 %s351_s26, 2 }
  0x2d   : > { %s356_s21 = scalar_lea.vmem %s2133_s5, %s1232_s9 }
  0x2e   : > { %v375_v6 = vmul.f32 %v1347_v3, %v374_v5 }
  0x30   : > { %v376_v7 = vadd.f32 %v1347_v3, %v375_v6 }
  0x32   : > { %v378_v8 = vsel %vm377_vm1, %v1347_v3, %v376_v7 }
  0x97   : > { %v371_v9 = vpop.xlane.xlu0 %370 }
  0x98   : > { %v379_v10 = vmul.f32 %v378_v8, %v371_v9 }
  0x9a   : > { %v380_v11 = vsub.f32 %v365_v0, %v379_v10 }
  0x9c   : > { %v381_v12 = vmul.f32 %v380_v11, %v380_v11 }
  0x9e   : > { %v382_v13 = vsel %vm368_vm0, %v381_v12, 0.0 }
  0x9f   : > { %383 = vadd.xlane.f32.xlu0 %v382_v13 }
 0x112   : > { %v384_v16 = vpop.xlane.xlu0 %383 }
 0x113   : > { %v385_v17 = vmul.f32 %v384_v16, %v378_v8 }
 0x115   : > { %v386_v18 = vadd.f32 1e-05, %v385_v17 }
 0x117   : > { %1348 = vrsqrt.f32 %v386_v18  ;;  %vm393_vm3 = vweird.f32 %v386_v18 }
 0x11d   : > { %v1349_v19 = vpop.eup %1348 }
 0x11e   : > { %v388_v20 = vmul.f32 %v1349_v19, %v386_v18  ;;  %vm394_vm2 = vweird.f32 %v1349_v19 }
 0x11f   : > { %vm395_vm4 = vmor %vm393_vm3, %vm394_vm2 }
 0x120   : > { %v389_v21 = vmul.f32 %v1349_v19, %v388_v20 }
 0x122   : > { %v390_v22 = vmul.f32 0.5, %v389_v21 }
 0x124   : > { %v391_v23 = vsub.f32 1.5, %v390_v22 }
 0x126   : > { %v392_v24 = vmul.f32 %v1349_v19, %v391_v23 }
 0x128   : > { %v396_v26 = vsel %vm395_vm4, %v1349_v19, %v392_v24 }
 0x129   : > { %v397_v27 = vmul.f32 %v396_v26, %v380_v11 }
 0x12b   : > { %v401_v29 = vmul.f32 %v1344_v25, %v397_v27 }
 0x12d   : > { %v405_v30 = vadd.f32 %v1345_v28, %v401_v29 }
 0x12f   : > { %v406_v31 = vpack.c.bf16 %v405_v30, %v405_v30 }
 0x131   : > { %1242 = vmatmul.msk.bf16.vlgmr.msra.gmra.mxu0 %vm368_vm0, %v406_v31 }
 0x1ae   : > { %v1662_v32 = vpop.f32.mrf.mxu0 }
 0x1af   : > { %519 = vrot.lane.b32.xlu0 %v1662_v32, %s1502_s25  ;;  %453 = vrot.lane.b32.xlu2 %v1662_v32, %s1503_s4  ;;  %v465_v57 = vrot.slane %v1662_v32, 4  ;;  %s363_s4 = scalar_lea.vmem %s2134_s6, %s1232_s9 }
 0x1b0   : > { %456 = vrot.lane.b32.xlu1 %v1662_v32, %s1504_s11  ;;  %s1245_s11 = sshll.u32 (%p1624_p0), %s1488_s29, 2 }
 0x1b6   : > { %v437_v33 = vpop.f32.mrf.mxu0 }
 0x1b8   : > { %459 = vrot.lane.b32.xlu1 %v1662_v32, %s1505_s12 }
 0x209   : > { %v454_v38 = vpop.permute.xlu2 %453 }
 0x20a   : > { %v477_v56 = vrot.slane %v454_v38, 4 }
 0x221   : > { %v520_v28 = vpop.permute.xlu0 %519 }
 0x222   : > { %v457_v34 = vpop.permute.xlu1 %456  ;;  %v533_v29 = vrot.slane %v520_v28, 4 }
 0x223   : > { %523 = vrot.lane.b32.xlu2 %v457_v34, %s1502_s25  ;;  %v462_v37 = vrot.slane %v457_v34, 4  ;;  %v466_v59 = vsel %vm463_vm5, %v457_v34, %v465_v57 }
 0x224   : > { %v474_v61 = vperm.slane %v466_v59, %v1672_v41 }
 0x225   : > { %v464_v42 = vsel %vm463_vm5, %v462_v37, %v1662_v32 }
 0x226   : > { %v470_v47 = vperm.slane %v464_v42, %v1672_v41  ;;  %v501_v63 = vrot.slane %v474_v61, 4 }
 0x228   : > { %v489_v4 = vrot.slane %v470_v47, 4 }
 0x22a   : > { %v460_v39 = vpop.permute.xlu1 %459 }
 0x22b   : > { %v475_v40 = vrot.slane %v460_v39, 4  ;;  %521 = vrot.lane.b32.xlu2 %v454_v38, %s1502_s25  ;;  %525 = vrot.lane.b32.xlu1 %v460_v39, %s1502_s25  ;;  %v478_v58 = vsel %vm463_vm5, %v460_v39, %v477_v56 }
 0x22c   : > { %v486_v60 = vperm.slane %v478_v58, %v1672_v41 }
 0x22d   : > { %v476_v43 = vsel %vm463_vm5, %v475_v40, %v454_v38 }
 0x22e   : > { %v482_v46 = vperm.slane %v476_v43, %v1672_v41  ;;  %v499_v62 = vrot.slane %v486_v60, 4  ;;  %v502_v0 = vsel %vm463_vm5, %v486_v60, %v501_v63 }
 0x22f   : > { %v1700_v2 = vperm.slane %v502_v0, %v1679_v49 }
 0x230   : > { %v487_v48 = vrot.slane %v482_v46, 4  ;;  %v500_v1 = vsel %vm463_vm5, %v499_v62, %v474_v61  ;;  %v490_v7 = vsel %vm463_vm5, %v482_v46, %v489_v4 }
 0x231   : > { %v1703_v3 = vperm.slane %v500_v1, %v1679_v49  ;;  %v593_v5 = vmul.f32 %v1700_v2, %v1700_v2  ;;  %v517_v8 = vrot.slane %v1700_v2, 4  ;;  %v1713_v10 = vperm.slane %v490_v7, %v1679_v49 }
 0x232   : > { %v488_v50 = vsel %vm463_vm5, %v487_v48, %v470_v47 }
 0x233   : > { %v1683_v51 = vperm.slane %v488_v50, %v1679_v49  ;;  %v591_v6 = vmul.f32 %v1703_v3, %v1703_v3  ;;  %v614_v9 = vsel %vm595_vm6, %v593_v5, 0.0  ;;  %v1717_v12 = vsel %vm463_vm5, 0.0, %v517_v8 }
 0x234   : > { %v589_v13 = vmul.f32 %v1713_v10, %v1713_v10  ;;  %v594_v14 = vmul.f32 %v1717_v12, %v1717_v12  ;;  %v513_v15 = vrot.slane %v1713_v10, 4  ;;  %v515_v21 = vrot.slane %v1703_v3, 4 }
 0x235   : > { %v511_v52 = vrot.slane %v1683_v51, 4  ;;  %v608_v11 = vsel %vm595_vm6, %v591_v6, 0.0  ;;  %v587_v19 = vmul.f32 %v1683_v51, %v1683_v51 }
 0x236   : > { %v602_v16 = vsel %vm595_vm6, %v589_v13, 0.0  ;;  %v617_v17 = vsel %vm595_vm6, %v594_v14, 0.0  ;;  %v1727_v18 = vsel %vm463_vm5, 0.0, %v513_v15  ;;  %v1737_v24 = vsel %vm463_vm5, 0.0, %v515_v21 }
 0x237   : > { %v1687_v53 = vsel %vm463_vm5, 0.0, %v511_v52  ;;  %v590_v20 = vmul.f32 %v1727_v18, %v1727_v18  ;;  %v596_v22 = vsel %vm595_vm6, %v587_v19, 0.0  ;;  %v592_v25 = vmul.f32 %v1737_v24, %v1737_v24 }
 0x238   : > { %v588_v54 = vmul.f32 %v1687_v53, %v1687_v53 }
 0x239   : > { %v605_v23 = vsel %vm595_vm6, %v590_v20, 0.0  ;;  %v611_v26 = vsel %vm595_vm6, %v592_v25, 0.0 }
 0x23a   : > { %v599_v55 = vsel %vm595_vm6, %v588_v54, 0.0 }
 0x23b   : > { %600 = vadd.xlane.f32.xlu0 %v599_v55 }
 0x254   : > { %615 = vadd.xlane.f32.xlu2 %v614_v9 }
 0x255   : > { %609 = vadd.xlane.f32.xlu1 %v608_v11 }
 0x25c   : > { %603 = vadd.xlane.f32.xlu2 %v602_v16 }
 0x25d   : > { %618 = vadd.xlane.f32.xlu1 %v617_v17 }
 0x264   : > { %597 = vadd.xlane.f32.xlu2 %v596_v22 }
 0x265   : > { %606 = vadd.xlane.f32.xlu1 %v605_v23 }
 0x26d   : > { %612 = vadd.xlane.f32.xlu1 %v611_v26 }
 0x27d   : > { %v524_v27 = vpop.permute.xlu2 %523 }
 0x27e   : > { %v531_v30 = vrot.slane %v524_v27, 4  ;;  %v534_v31 = vsel %vm463_vm5, %v524_v27, %v533_v29 }
 0x27f   : > { %v542_v35 = vperm.slane %v534_v31, %v1672_v41 }
 0x280   : > { %v532_v34 = vsel %vm463_vm5, %v531_v30, %v520_v28 }
 0x281   : > { %v538_v37 = vperm.slane %v532_v34, %v1672_v41  ;;  %v569_v42 = vrot.slane %v542_v35, 4 }
 0x283   : > { %v557_v45 = vrot.slane %v538_v37, 4 }
 0x285   : > { %v522_v33 = vpop.permute.xlu2 %521 }
 0x286   : > { %v545_v36 = vrot.slane %v522_v33, 4 }
 0x29d   : > { %v526_v38 = vpop.permute.xlu1 %525 }
 0x29e   : > { %v543_v39 = vrot.slane %v526_v38, 4  ;;  %v546_v40 = vsel %vm463_vm5, %v526_v38, %v545_v36 }
 0x29f   : > { %v554_v43 = vperm.slane %v546_v40, %v1672_v41 }
 0x2a0   : > { %v544_v44 = vsel %vm463_vm5, %v543_v39, %v522_v33 }
 0x2a1   : > { %v550_v46 = vperm.slane %v544_v44, %v1672_v41  ;;  %v567_v47 = vrot.slane %v554_v43, 4  ;;  %v570_v48 = vsel %vm463_vm5, %v554_v43, %v569_v42 }
 0x2a2   : > { %v1752_v50 = vperm.slane %v570_v48, %v1679_v49 }
 0x2a3   : > { %v555_v52 = vrot.slane %v550_v46, 4  ;;  %v568_v54 = vsel %vm463_vm5, %v567_v47, %v542_v35  ;;  %v558_v55 = vsel %vm463_vm5, %v550_v46, %v557_v45 }
 0x2a4   : > { %v714_v56 = vmul.f32 %v1752_v50, %v1752_v50  ;;  %v1759_v57 = vperm.slane %v558_v55, %v1679_v49  ;;  %v585_v58 = vrot.slane %v1752_v50, 4  ;;  %v1763_v59 = vperm.slane %v568_v54, %v1679_v49 }
 0x2a5   : > { %v556_v60 = vsel %vm463_vm5, %v555_v52, %v538_v37 }
 0x2a6   : > { %v734_v61 = vsel %vm595_vm6, %v714_v56, 0.0  ;;  %v710_v62 = vmul.f32 %v1759_v57, %v1759_v57  ;;  %v1770_v63 = vsel %vm463_vm5, 0.0, %v585_v58  ;;  %v1773_v0 = vperm.slane %v556_v60, %v1679_v49 }
 0x2a7   : > { %735 = vadd.xlane.f32.xlu0 %v734_v61  ;;  %v715_v1 = vmul.f32 %v1770_v63, %v1770_v63  ;;  %v581_v4 = vrot.slane %v1759_v57, 4  ;;  %v583_v5 = vrot.slane %v1763_v59, 4  ;;  %v712_v21 = vmul.f32 %v1763_v59, %v1763_v59 }
 0x2a8   : > { %v722_v6 = vsel %vm595_vm6, %v710_v62, 0.0  ;;  %v579_v7 = vrot.slane %v1773_v0, 4  ;;  %v708_v22 = vmul.f32 %v1773_v0, %v1773_v0 }
 0x2a9   : > { %723 = vadd.xlane.f32.xlu2 %v722_v6  ;;  %v737_v8 = vsel %vm595_vm6, %v715_v1, 0.0  ;;  %v1783_v9 = vsel %vm463_vm5, 0.0, %v581_v4  ;;  %v1789_v13 = vsel %vm463_vm5, 0.0, %v583_v5  ;;  %v728_v23 = vsel %vm595_vm6, %v712_v21, 0.0 }
 0x2aa   : > { %738 = vadd.xlane.f32.xlu1 %v737_v8  ;;  %v1786_v11 = vsel %vm463_vm5, 0.0, %v579_v7  ;;  %v711_v15 = vmul.f32 %v1783_v9, %v1783_v9  ;;  %v713_v17 = vmul.f32 %v1789_v13, %v1789_v13  ;;  %v716_v25 = vsel %vm595_vm6, %v708_v22, 0.0 }
 0x2ab   : > { %v709_v14 = vmul.f32 %v1786_v11, %v1786_v11 }
 0x2ac   : > { %v725_v19 = vsel %vm595_vm6, %v711_v15, 0.0  ;;  %v731_v20 = vsel %vm595_vm6, %v713_v17, 0.0 }
 0x2ad   : > { %v719_v16 = vsel %vm595_vm6, %v709_v14, 0.0 }
 0x2ae   : > { %v601_v26 = vpop.xlane.xlu0 %600 }
 0x2af   : > { %720 = vadd.xlane.f32.xlu0 %v719_v16  ;;  %v621_v27 = vmax.f32 %v601_v26, 1e-24 }
 0x2b1   : > { %726 = vadd.xlane.f32.xlu2 %v725_v19  ;;  %1350 = vrsqrt.f32 %v621_v27  ;;  %vm644_vm8 = vweird.f32 %v621_v27 }
 0x2b2   : > { %732 = vadd.xlane.f32.xlu1 %v731_v20 }
 0x2b7   : > { %729 = vadd.xlane.f32.xlu0 %v728_v23  ;;  %v1811_v33 = vpop.eup %1350  ;;  %v1853_v23 = vstv %s451_s14 }
 0x2b8   : > { %v639_v39 = vmul.f32 %v1811_v33, %v621_v27  ;;  %vm645_vm7 = vweird.f32 %v1811_v33 }
 0x2b9   : > { %717 = vadd.xlane.f32.xlu2 %v716_v25  ;;  %vm1857_vm9 = vmor %vm644_vm8, %vm645_vm7 }
 0x2ba   : > { %v640_v43 = vmul.f32 %v1811_v33, %v639_v39 }
 0x2bc   : > { %v641_v58 = vmul.f32 0.5, %v640_v43 }
 0x2be   : > { %v642_v5 = vsub.f32 1.5, %v641_v58 }
 0x2c0   : > { %v643_v21 = vmul.f32 %v1811_v33, %v642_v5 }
 0x2c2   : > { %v647_v43 = vsel %vm1857_vm9, %v1811_v33, %v643_v21 }
 0x2c7   : > { %v616_v28 = vpop.xlane.xlu2 %615 }
 0x2c8   : > { %v1806_v29 = vmax.f32 %v616_v28, 1e-24  ;;  %v610_v30 = vpop.xlane.xlu1 %609 }
 0x2c9   : > { %v1809_v31 = vmax.f32 %v610_v30, 1e-24 }
 0x2ca   : > { %1352 = vrsqrt.f32 %v1806_v29  ;;  %vm694_vm11 = vweird.f32 %v1806_v29 }
 0x2cb   : > { %1354 = vrsqrt.f32 %v1809_v31  ;;  %vm674_vm8 = vweird.f32 %v1809_v31 }
 0x2cf   : > { %v604_v34 = vpop.xlane.xlu2 %603 }
 0x2d0   : > { %v1814_v35 = vmax.f32 %v604_v34, 1e-24  ;;  %v619_v36 = vpop.xlane.xlu1 %618  ;;  %v1818_v38 = vpop.eup %1352 }
 0x2d1   : > { %v1816_v37 = vmax.f32 %v619_v36, 1e-24  ;;  %v689_v40 = vmul.f32 %v1818_v38, %v1806_v29  ;;  %v1825_v42 = vpop.eup %1354  ;;  %vm695_vm10 = vweird.f32 %v1818_v38 }
 0x2d2   : > { %1356 = vrsqrt.f32 %v1814_v35  ;;  %v669_v54 = vmul.f32 %v1825_v42, %v1809_v31  ;;  %vm675_vm13 = vweird.f32 %v1825_v42  ;;  %vm654_vm14 = vweird.f32 %v1814_v35  ;;  %vm1871_vm0 = vmor %vm694_vm11, %vm695_vm10 }
 0x2d3   : > { %1358 = vrsqrt.f32 %v1816_v37  ;;  %v690_v52 = vmul.f32 %v1818_v38, %v689_v40  ;;  %vm704_vm3 = vweird.f32 %v1816_v37  ;;  %vm1899_vm11 = vmor %vm674_vm8, %vm675_vm13 }
 0x2d4   : > { %v670_v4 = vmul.f32 %v1825_v42, %v669_v54 }
 0x2d5   : > { %v691_v1 = vmul.f32 0.5, %v690_v52 }
 0x2d6   : > { %v671_v17 = vmul.f32 0.5, %v670_v4 }
 0x2d7   : > { %v598_v44 = vpop.xlane.xlu2 %597  ;;  %v692_v16 = vsub.f32 1.5, %v691_v1  ;;  %v830_v1 = vmul.f32 %v1853_v23, %v647_v43 }
 0x2d8   : > { %v1828_v45 = vpop.eup %1356  ;;  %v1830_v46 = vmax.f32 %v598_v44, 1e-24  ;;  %v607_v47 = vpop.xlane.xlu1 %606  ;;  %v672_v39 = vsub.f32 1.5, %v671_v17 }
 0x2d9   : > { %v1832_v48 = vpop.eup %1358  ;;  %v649_v55 = vmul.f32 %v1828_v45, %v1814_v35  ;;  %v623_v56 = vmax.f32 %v607_v47, 1e-24  ;;  %v693_v36 = vmul.f32 %v1818_v38, %v692_v16  ;;  %vm655_vm12 = vweird.f32 %v1828_v45 }
 0x2da   : > { %v699_v60 = vmul.f32 %v1832_v48, %v1816_v37  ;;  %1360 = vrsqrt.f32 %v1830_v46  ;;  %vm705_vm15 = vweird.f32 %v1832_v48  ;;  %v673_v35 = vmul.f32 %v1825_v42, %v672_v39  ;;  %vm1881_vm2 = vmor %vm654_vm14, %vm655_vm12 }
 0x2db   : > { %1362 = vrsqrt.f32 %v623_v56  ;;  %v650_v61 = vmul.f32 %v1828_v45, %v649_v55  ;;  %v697_v55 = vsel %vm1871_vm0, %v1818_v38, %v693_v36  ;;  %vm664_vm4 = vweird.f32 %v623_v56  ;;  %vm1886_vm6 = vmor %vm704_vm3, %vm705_vm15 }
 0x2dc   : > { %v700_v62 = vmul.f32 %v1832_v48, %v699_v60  ;;  %vm634_vm9 = vweird.f32 %v1830_v46 }
 0x2dd   : > { %v651_v7 = vmul.f32 0.5, %v650_v61 }
 0x2de   : > { %v701_v8 = vmul.f32 0.5, %v700_v62 }
 0x2df   : > { %v652_v26 = vsub.f32 1.5, %v651_v7 }
 0x2e0   : > { %v1845_v6 = vpop.eup %1360  ;;  %v613_v14 = vpop.xlane.xlu1 %612  ;;  %v702_v28 = vsub.f32 1.5, %v701_v8  ;;  %v677_v8 = vsel %vm1899_vm11, %v1825_v42, %v673_v35 }
 0x2e1   : > { %v1363_v15 = vpop.eup %1362  ;;  %v629_v19 = vmul.f32 %v1845_v6, %v1830_v46  ;;  %v1849_v20 = vmax.f32 %v613_v14, 1e-24  ;;  %v653_v52 = vmul.f32 %v1828_v45, %v652_v26  ;;  %vm635_vm7 = vweird.f32 %v1845_v6 }
 0x2e2   : > { %v659_v22 = vmul.f32 %v1363_v15, %v623_v56  ;;  %v703_v33 = vmul.f32 %v1832_v48, %v702_v28  ;;  %vm665_vm1 = vweird.f32 %v1363_v15  ;;  %v835_v46 = vmul.f32 %v1853_v23, %v697_v55  ;;  %vm636_vm12 = vmor %vm634_vm9, %vm635_vm7 }
 0x2e3   : > { %v630_v25 = vmul.f32 %v1845_v6, %v629_v19  ;;  %1364 = vrsqrt.f32 %v1849_v20  ;;  %vm666_vm10 = vmor %vm664_vm4, %vm665_vm1  ;;  %v657_v56 = vsel %vm1881_vm2, %v1828_v45, %v653_v52  ;;  %vm684_vm14 = vweird.f32 %v1849_v20 }
 0x2e4   : > { %v660_v30 = vmul.f32 %v1363_v15, %v659_v22  ;;  %v707_v4 = vsel %vm1886_vm6, %v1832_v48, %v703_v33  ;;  %v831_v45 = vmul.f32 %v1853_v23, %v657_v56  ;;  %v843_v21 = vmul.f32 %v835_v46, %v1700_v2 }
 0x2e5   : > { %v631_v40 = vmul.f32 0.5, %v630_v25  ;;  %v836_v17 = vmul.f32 %v1853_v23, %v707_v4  ;;  %v833_v22 = vmul.f32 %v1853_v23, %v677_v8 }
 0x2e6   : > { %v661_v27 = vmul.f32 0.5, %v660_v30  ;;  %v857_v30 = vrot.slane %v843_v21, 4 }
 0x2e7   : > { %v632_v44 = vsub.f32 1.5, %v631_v40  ;;  %v844_v28 = vmul.f32 %v836_v17, %v1717_v12  ;;  %v841_v34 = vmul.f32 %v833_v22, %v1703_v3 }
 0x2e8   : > { %v662_v54 = vsub.f32 1.5, %v661_v27 }
 0x2e9   : > { %v1365_v29 = vpop.eup %1364  ;;  %v633_v61 = vmul.f32 %v1845_v6, %v632_v44  ;;  %v858_v12 = vsel %vm463_vm5, %v857_v30, %v841_v34 }
 0x2ea   : > { %v663_v62 = vmul.f32 %v1363_v15, %v662_v54  ;;  %v679_v38 = vmul.f32 %v1365_v29, %v1849_v20  ;;  %vm685_vm13 = vweird.f32 %v1365_v29  ;;  %v863_v20 = vrot.slane %v844_v28, 4 }
 0x2eb   : > { %v637_v14 = vsel %vm636_vm12, %v1845_v6, %v633_v61  ;;  %v839_v6 = vmul.f32 %v831_v45, %v1713_v10  ;;  %vm686_vm15 = vmor %vm684_vm14, %vm685_vm13  ;;  %v1941_v3 = vperm.slane %v858_v12, %v1672_v41 }
 0x2ec   : > { %v667_v5 = vsel %vm666_vm10, %v1363_v15, %v663_v62  ;;  %v680_v31 = vmul.f32 %v1365_v29, %v679_v38  ;;  %v838_v15 = vmul.f32 %v830_v1, %v1687_v53  ;;  %v829_v25 = vmul.f32 %v1853_v23, %v637_v14 }
 0x2ed   : > { %v832_v7 = vmul.f32 %v1853_v23, %v667_v5  ;;  %v845_v40 = vrot.slane %v839_v6, 4 }
 0x2ee   : > { %v681_v16 = vmul.f32 0.5, %v680_v31  ;;  %v837_v2 = vmul.f32 %v829_v25, %v1683_v51 }
 0x2ef   : > { %v840_v48 = vmul.f32 %v832_v7, %v1727_v18 }
 0x2f0   : > { %v682_v19 = vsub.f32 1.5, %v681_v16  ;;  %v846_v43 = vsel %vm463_vm5, %v845_v40, %v837_v2 }
 0x2f1   : > { %v851_v42 = vrot.slane %v840_v48, 4 }
 0x2f2   : > { %v683_v26 = vmul.f32 %v1365_v29, %v682_v19 }
 0x2f3   : > { %v852_v18 = vsel %vm463_vm5, %v851_v42, %v838_v15 }
 0x2f4   : > { %v687_v53 = vsel %vm686_vm15, %v1365_v29, %v683_v26  ;;  %v1930_v39 = vperm.slane %v852_v18, %v1672_v41 }
 0x2f5   : > { %v834_v36 = vmul.f32 %v1853_v23, %v687_v53  ;;  %v1944_v23 = vperm.slane %v846_v43, %v1672_v41 }
 0x2f6   : > { %v869_v51 = vrot.slane %v1930_v39, 4 }
 0x2f7   : > { %v842_v10 = vmul.f32 %v834_v36, %v1737_v24 }
 0x2f8   : > { %v870_v24 = vsel %vm463_vm5, %v869_v51, %v1944_v23 }
 0x2f9   : > { %v864_v27 = vsel %vm463_vm5, %v863_v20, %v842_v10  ;;  %v1955_v54 = vperm.slane %v870_v24, %v1679_v49 }
 0x2fa   : > { %v1937_v44 = vperm.slane %v864_v27, %v1672_v41 }
 0x2fc   : > { %v881_v47 = vrot.slane %v1937_v44, 4 }
 0x2fe   : > { %v882_v52 = vsel %vm463_vm5, %v881_v47, %v1941_v3 }
 0x2ff   : > { %v1952_v33 = vperm.slane %v882_v52, %v1679_v49 }
 0x301   : > { %v893_v29 = vrot.slane %v1952_v33, 4 }
 0x303   : > { %v1960_v55 = vsel %vm463_vm5, %v893_v29, %v1955_v54 }
 0x31a   : > { %v736_v35 = vpop.xlane.xlu0 %735 }
 0x31b   : > { %v1962_v58 = vmax.f32 %v736_v35, 1e-24 }
 0x31c   : > { %v724_v60 = vpop.xlane.xlu2 %723 }
 0x31d   : > { %1366 = vrsqrt.f32 %v1962_v58  ;;  %v1965_v61 = vmax.f32 %v724_v60, 1e-24  ;;  %v739_v62 = vpop.xlane.xlu1 %738  ;;  %vm814_vm2 = vweird.f32 %v1962_v58 }
 0x31e   : > { %v747_v38 = vmax.f32 %v739_v62, 1e-24 }
 0x31f   : > { %1368 = vrsqrt.f32 %v1965_v61 }
 0x320   : > { %1370 = vrsqrt.f32 %v747_v38  ;;  %vm824_vm1 = vweird.f32 %v747_v38 }
 0x322   : > { %v721_v1 = vpop.xlane.xlu0 %720 }
 0x323   : > { %v1968_v37 = vpop.eup %1366  ;;  %v1970_v56 = vmax.f32 %v721_v1, 1e-24 }
 0x324   : > { %v809_v4 = vmul.f32 %v1968_v37, %v1962_v58  ;;  %v727_v5 = vpop.xlane.xlu2 %726  ;;  %vm815_vm4 = vweird.f32 %v1968_v37 }
 0x325   : > { %v1974_v31 = vpop.eup %1368  ;;  %1372 = vrsqrt.f32 %v1970_v56  ;;  %v743_v46 = vmax.f32 %v727_v5, 1e-24  ;;  %v733_v7 = vpop.xlane.xlu1 %732  ;;  %vm764_vm7 = vweird.f32 %v1970_v56  ;;  %vm2009_vm9 = vmor %vm814_vm2, %vm815_vm4  ;;  %vm774_vm2 = vweird.f32 %v1965_v61 }
 0x326   : > { %v1371_v8 = vpop.eup %1370  ;;  %v1977_v14 = vmax.f32 %v733_v7, 1e-24  ;;  %v810_v45 = vmul.f32 %v1968_v37, %v809_v4  ;;  %v769_v17 = vmul.f32 %v1974_v31, %v1965_v61  ;;  %vm775_vm14 = vweird.f32 %v1974_v31 }
 0x327   : > { %v819_v16 = vmul.f32 %v1371_v8, %v747_v38  ;;  %1374 = vrsqrt.f32 %v743_v46  ;;  %vm825_vm0 = vweird.f32 %v1371_v8  ;;  %vm784_vm10 = vweird.f32 %v743_v46 }
 0x328   : > { %1376 = vrsqrt.f32 %v1977_v14  ;;  %v811_v25 = vmul.f32 0.5, %v810_v45  ;;  %v770_v28 = vmul.f32 %v1974_v31, %v769_v17  ;;  %vm1996_vm3 = vmor %vm824_vm1, %vm825_vm0  ;;  %vm804_vm13 = vweird.f32 %v1977_v14 }
 0x329   : > { %v820_v48 = vmul.f32 %v1371_v8, %v819_v16 }
 0x32a   : > { %v730_v15 = vpop.xlane.xlu0 %729  ;;  %v812_v20 = vsub.f32 1.5, %v811_v25  ;;  %v771_v43 = vmul.f32 0.5, %v770_v28 }
 0x32b   : > { %v1983_v19 = vpop.eup %1372  ;;  %v821_v21 = vmul.f32 0.5, %v820_v48  ;;  %v1985_v22 = vmax.f32 %v730_v15, 1e-24 }
 0x32c   : > { %v759_v42 = vmul.f32 %v1983_v19, %v1970_v56  ;;  %v718_v26 = vpop.xlane.xlu2 %717  ;;  %v813_v60 = vmul.f32 %v1968_v37, %v812_v20  ;;  %v772_v1 = vsub.f32 1.5, %v771_v43  ;;  %vm765_vm11 = vweird.f32 %v1983_v19 }
 0x32d   : > { %v1375_v6 = vpop.eup %1374  ;;  %v822_v18 = vsub.f32 1.5, %v821_v21  ;;  %1378 = vrsqrt.f32 %v1985_v22  ;;  %v1992_v2 = vmax.f32 %v718_v26, 1e-24  ;;  %vm2029_vm0 = vmor %vm764_vm7, %vm765_vm11  ;;  %vm794_vm4 = vweird.f32 %v1985_v22 }
 0x32e   : > { %v1377_v53 = vpop.eup %1376  ;;  %v760_v30 = vmul.f32 %v1983_v19, %v759_v42  ;;  %v779_v34 = vmul.f32 %v1375_v6, %v743_v46  ;;  %vm785_vm6 = vweird.f32 %v1375_v6  ;;  %v817_v58 = vsel %vm2009_vm9, %v1968_v37, %v813_v60 }
 0x32f   : > { %v823_v36 = vmul.f32 %v1371_v8, %v822_v18  ;;  %v799_v40 = vmul.f32 %v1377_v53, %v1977_v14  ;;  %1380 = vrsqrt.f32 %v1992_v2  ;;  %vm805_vm8 = vweird.f32 %v1377_v53  ;;  %vm786_vm12 = vmor %vm784_vm10, %vm785_vm6 }
 0x330   : > { %v761_v10 = vmul.f32 0.5, %v760_v30  ;;  %v780_v12 = vmul.f32 %v1375_v6, %v779_v34  ;;  %vm806_vm15 = vmor %vm804_vm13, %vm805_vm8  ;;  %v773_v46 = vmul.f32 %v1974_v31, %v772_v1  ;;  %v927_v28 = vmul.f32 %v817_v58, %v1752_v50 }
 0x331   : > { %v800_v27 = vmul.f32 %v1377_v53, %v799_v40  ;;  %v827_v52 = vsel %vm1996_vm3, %v1371_v8, %v823_v36  ;;  %vm776_vm3 = vmor %vm774_vm2, %vm775_vm14  ;;  %vm754_vm8 = vweird.f32 %v1992_v2  ;;  %vm444_vm10 = vcmask 257024  }
 0x332   : > { %v781_v47 = vmul.f32 0.5, %v780_v12  ;;  %v762_v29 = vsub.f32 1.5, %v761_v10  ;;  %v928_v7 = vmul.f32 %v827_v52, %v1770_v63  ;;  %vm915_vm11 = vcmask 130048  }
 0x333   : > { %v1379_v24 = vpop.eup %1378  ;;  %v801_v35 = vmul.f32 0.5, %v800_v27  ;;  %v871_v27 = vrot.slane %v1944_v23, 4 }
 0x334   : > { %v782_v62 = vsub.f32 1.5, %v781_v47  ;;  %v789_v38 = vmul.f32 %v1379_v24, %v1985_v22  ;;  %v763_v45 = vmul.f32 %v1983_v19, %v762_v29  ;;  %v947_v26 = vrot.slane %v928_v7, 4 }
 0x335   : > { %v802_v4 = vsub.f32 1.5, %v801_v35  ;;  %v1381_v48 = vpop.eup %1380  ;;  %vm795_vm1 = vweird.f32 %v1379_v24  ;;  %v883_v22 = vrot.slane %v1941_v3, 4  ;;  %v872_v23 = vsel %vm463_vm5, %v1930_v39, %v871_v27 }
 0x336   : > { %v783_v8 = vmul.f32 %v1375_v6, %v782_v62  ;;  %v790_v16 = vmul.f32 %v1379_v24, %v789_v38  ;;  %v749_v42 = vmul.f32 %v1381_v48, %v1992_v2  ;;  %vm796_vm6 = vmor %vm794_vm4, %vm795_vm1  ;;  %vm755_vm7 = vweird.f32 %v1381_v48 }
 0x337   : > { %v803_v17 = vmul.f32 %v1377_v53, %v802_v4  ;;  %vm756_vm9 = vmor %vm754_vm8, %vm755_vm7 }
 0x338   : > { %v787_v15 = vsel %vm786_vm12, %v1375_v6, %v783_v8  ;;  %v791_v63 = vmul.f32 0.5, %v790_v16  ;;  %v750_v18 = vmul.f32 %v1381_v48, %v749_v42  ;;  %vm917_vm12 = vcmask 195584  }
 0x339   : > { %v924_v21 = vmul.f32 %v787_v15, %v1783_v9  ;;  %v807_v25 = vsel %vm806_vm15, %v1377_v53, %v803_v17  ;;  %v767_v9 = vsel %vm2029_vm0, %v1983_v19, %v763_v45  ;;  %v941_v19 = vrot.slane %v927_v28, 4 }
 0x33a   : > { %v926_v14 = vmul.f32 %v807_v25, %v1789_v13  ;;  %v792_v6 = vsub.f32 1.5, %v791_v63  ;;  %v777_v13 = vsel %vm776_vm3, %v1974_v31, %v773_v46  ;;  %v751_v50 = vmul.f32 0.5, %v750_v18 }
 0x33b   : > { %v935_v56 = vrot.slane %v924_v21, 4  ;;  %v922_v61 = vmul.f32 %v767_v9, %v1786_v11  ;;  %v923_v10 = vmul.f32 %v777_v13, %v1759_v57 }
 0x33c   : > { %v948_v53 = vsel %vm463_vm5, %v947_v26, %v926_v14  ;;  %v793_v30 = vmul.f32 %v1379_v24, %v792_v6  ;;  %v752_v20 = vsub.f32 1.5, %v751_v50 }
 0x33d   : > { %v952_v34 = vperm.slane %v948_v53, %v1672_v41  ;;  %v936_v12 = vsel %vm463_vm5, %v935_v56, %v922_v61 }
 0x33e   : > { %v797_v36 = vsel %vm796_vm6, %v1379_v24, %v793_v30  ;;  %v753_v43 = vmul.f32 %v1381_v48, %v752_v20  ;;  %v940_v57 = vperm.slane %v936_v12, %v1672_v41  ;;  %v929_v24 = vrot.slane %v923_v10, 4 }
 0x33f   : > { %v925_v40 = vmul.f32 %v797_v36, %v1763_v59  ;;  %v884_v59 = vsel %vm463_vm5, %v1937_v44, %v883_v22  ;;  %v965_v51 = vrot.slane %v952_v34, 4 }
 0x340   : > { %v757_v47 = vsel %vm756_vm9, %v1381_v48, %v753_v43  ;;  %v892_v2 = vperm.slane %v884_v59, %v1679_v49  ;;  %v953_v1 = vrot.slane %v940_v57, 4  ;;  %v895_v48 = vrot.slane %v1955_v54, 4 }
 0x341   : > { %v942_v31 = vsel %vm463_vm5, %v941_v19, %v925_v40  ;;  %v921_v3 = vmul.f32 %v757_v47, %v1773_v0  ;;  %v880_v0 = vperm.slane %v872_v23, %v1679_v49 }
 0x342   : > { %v946_v11 = vperm.slane %v942_v31, %v1672_v41  ;;  %v897_v5 = vrot.slane %v892_v2, 4  ;;  %v896_v21 = vsel %vm463_vm5, %v1952_v33, %v895_v48  ;;  %v439_v33 = vpack.c.bf16 %v1662_v32, %v1662_v32 }
 0x343   : > { %v930_v60 = vsel %vm463_vm5, %v929_v24, %v921_v3  ;;  %v899_v63 = vrot.slane %v880_v0, 4 }
 0x344   : > { %v967_v52 = vrot.slane %v946_v11, 4  ;;  %v966_v29 = vsel %vm463_vm5, %v965_v51, %v946_v11  ;;  %v934_v62 = vperm.slane %v930_v60, %v1672_v41  ;;  %v898_v15 = vsel %vm463_vm5, %v897_v5, %v880_v0 }
 0x345   : > { %v972_v35 = vperm.slane %v966_v29, %v1679_v49 }
 0x346   : > { %v968_v44 = vsel %vm463_vm5, %v952_v34, %v967_v52  ;;  %v955_v7 = vrot.slane %v934_v62, 4  ;;  %v954_v8 = vsel %vm463_vm5, %v953_v1, %v934_v62 }
 0x347   : > { %v976_v38 = vperm.slane %v968_v44, %v1679_v49  ;;  %v977_v4 = vrot.slane %v972_v35, 4  ;;  %v960_v45 = vperm.slane %v954_v8, %v1679_v49 }
 0x348   : > { %v956_v17 = vsel %vm463_vm5, %v940_v57, %v955_v7 }
 0x349   : > { %v981_v16 = vrot.slane %v976_v38, 4  ;;  %v964_v39 = vperm.slane %v956_v17, %v1679_v49  ;;  %v979_v41 = vrot.slane %v960_v45, 4  ;;  %v978_v58 = vsel %vm463_vm5, %v977_v4, %v960_v45 }
 0x34a   : > { %v900_v49 = vsel %vm463_vm5, %v892_v2, %v899_v63 }
 0x34b   : > { %v982_v46 = vsel %vm463_vm5, %v981_v16, %v964_v39  ;;  %v980_v25 = vsel %vm463_vm5, %v972_v35, %v979_v41  ;;  %v983_v42 = vrot.slane %v964_v39, 4 }
 0x34c   : > { %v1329_v26 = vpack.i.bf16 %v982_v46, %v898_v15  ;;  %v1334_v37 = vpack.i.bf16 %v980_v25, %v896_v21 }
 0x34d   : > { %v984_v54 = vsel %vm463_vm5, %v976_v38, %v983_v42  ;;  %vm913_vm5 = vcmask 64512  }
 0x34e   : > { %1330 = vrot.lane.b32.xlu2 %v1329_v26, %s1508_s15  ;;  %1335 = vrot.lane.b32.xlu0 %v1334_v37, %s1509_s16  ;;  %v1339_v14 = vpack.i.bf16 %v984_v54, %v900_v49  ;;  %s1031_s15 = scalar_lea.vmem (%p1624_p0), %s2135_s7, %s1245_s11 }
 0x350   : > { %1340 = vrot.lane.b32.xlu1 %v1339_v14, %s1510_s17 }
 0x356   : > { %446 = vrot.lane.b32.xlu2 %v439_v33, %s1511_s19  ;;  %441 = vrot.lane.b32.xlu0 %v439_v33, %s1502_s25 }
 0x3a8   : > { %v1331_v6 = vpop.permute.xlu2 %1330 }
 0x3a9   : > { %v1333_v32 = vunpack.i.h.bf16 %v1331_v6  ;;  %v1332_v53 = vunpack.i.l.bf16 %v1331_v6 }
 0x3b0   : > { %v447_v28 = vpop.permute.xlu2 %446 }
 0x3b1   : > { %1243 = vst.msk [vmem:[%s2085_s10 + $0x4] sm:$0xf] %vm444_vm10, %v447_v28 }
 0x3b8   : > { %v1050_v31 = vld [vmem:[%s2085_s10 + $0x4] sm:$0xf] (%p1624_p0) }
 0x3b9   : > { %1051 = vst [vmem:[%s1031_s15 + $0x8] sm:$0xf] (%p1624_p0), %v1050_v31 }
 0x3c0   : > { %v1336_v9 = vpop.permute.xlu0 %1335 }
 0x3c1   : > { %v1338_v18 = vunpack.i.h.bf16 %v1336_v9  ;;  %v1337_v56 = vunpack.i.l.bf16 %v1336_v9 }
 0x3c2   : > { %v1341_v30 = vpop.permute.xlu1 %1340 }
 0x3c3   : > { %v914_v13 = vsel %vm913_vm5, %v1960_v55, %v1337_v56  ;;  %v997_v50 = vsel %vm913_vm5, %v978_v58, %v1338_v18  ;;  %v1343_v61 = vunpack.i.h.bf16 %v1341_v30  ;;  %v1342_v34 = vunpack.i.l.bf16 %v1341_v30 }
 0x3c4   : > { %v916_v36 = vsel %vm915_vm11, %v914_v13, %v1332_v53  ;;  %v998_v19 = vsel %vm915_vm11, %v997_v50, %v1333_v32 }
 0x3c5   : > { %v918_v40 = vsel %vm917_vm12, %v916_v36, %v1342_v34  ;;  %v999_v20 = vsel %vm917_vm12, %v998_v19, %v1343_v61 }
 0x3c6   : > { %v919_v10 = vpack.c.bf16 %v918_v40, %v918_v40  ;;  %v1000_v12 = vpack.c.bf16 %v999_v20, %v999_v20  ;;  %1028 = sbr.rel (!%p1624_p0) target bundleno = 979 (0x3d3), region = 60 }
 0x3c8   : > { %920 = vst.msk [vmem:[%s356_s21] sm:$0xf] %vm444_vm10, %v919_v10  ;;  %v442_v55 = vpop.permute.xlu0 %441 }
 0x3c9   : > { %1001 = vst.msk [vmem:[%s363_s4] sm:$0xf] %vm444_vm10, %v1000_v12 }
 0x3ca   : > { %445 = vst.msk [vmem:[%s2085_s10] sm:$0xf] %vm444_vm10, %v442_v55 }
 0x3d1   : > { %v1048_v22 = vld [vmem:[%s2085_s10] sm:$0xf] }
 0x3d2   : > { %1049 = vst [vmem:[%s1031_s15] sm:$0xf] %v1048_v22 }
 0x3d3 PF: > { %s23_s8 = sadd.s32 1, %s1496_s8   ;;  %s2157_s26 = smov %s1480_s27 }
 0x3d4   : > { %p20_p3 = scmp.ge.s32.totalorder %s23_s8, 4   ;;  %s2158_s27 = smov %s1484_s28 }
 0x3d5   : > { %s2159_s28 = smov %s1629_s24  ;;  %s2160_s29 = smov %s1492_s30 }
 0x3d6   : > { %s2161_s30 = smov %s2163_s18  ;;  %22 = sbr.rel (!%p20_p3) target bundleno = 7 (0x7), region = 150 }
 0x3db   :  { %1109 = vsyncpa [#allocation4], 1 }
 0x3dc   :  { %1111 = vsyncpa [#allocation4 + $0x1], 1 }
 0x3dd   :  { %1112 = vsyncpa [#allocation6], 1 }

// kernel: transformer_forward.7
= control target key start
LH: loop header
LB: loop body
LE: loop exit
PB: predicated region body
PF: predicated region fallthrough
CT: control target
= control target key end

     0   :  { %s1697_s21 = smov 0   ;;  %s1699_s22 = smov 0   ;;  %s2113_s0 = inlined_call_operand.vmem [shape: f32[2,8,32], index: 0, kind: input, shape index: {}]   ;;  %s2114_s1 = inlined_call_operand.vmem [shape: bf16[2,8,32], index: 1, kind: input, shape index: {}]   ;;  %s2115_s2 = inlined_call_operand.vmem [shape: bf16[2,8,32], index: 2, kind: input, shape index: {}]   ;;  %s2116_s3 = inlined_call_operand.vmem [shape: bf16[2,2,8,32], index: 3, kind: input, shape index: {}]   ;;  %s2117_s4 = inlined_call_operand.vmem [shape: bf16[1,4,8,8], index: 4, kind: input, shape index: {}]   ;;  %s2118_s5 = inlined_call_operand.vmem [shape: bf16[32,32], index: 5, kind: input, shape index: {}]   ;;  %s2119_s6 = inlined_call_operand.vmem [shape: f32[2,8,32], index: 6, kind: output, shape index: {}]  }
   0x1   :  { %s1701_s23 = smov 0  }
   0x2 LB: > { %s28_s24 = sadd.s32 1, %s1593_s22  ;;  %p1317_p0 = scmp.ge.s32.totalorder %s1597_s23, 1  ;;  %s1597_s23 = sphi %s1701_s23, %s16_s23   ;;  %s1593_s22 = sphi %s1699_s22, %s2134_s22   ;;  %s1589_s21 = sphi %s1697_s21, %s2133_s21  }
   0x3   : > { %p30_p1 = scmp.ge.s32.totalorder %s28_s24, 2  ;;  %p263_p2 = scmp.lt.s32.totalorder %s1597_s23, 3 }
   0x5   : > { %s2136_s24 = smov (%p30_p1, %s28_s24), 0  ;;  %p264_p3 = pnand %p1317_p0, %p263_p2 }
   0x6   : > { %p313_p4 = scmp.lt.s32.totalorder (!%p264_p3), %s1589_s21, 1  ;;  %s1651_s15 = smov (!%p264_p3), 120  }
   0x7   : > { %267 = sbr.rel (%p264_p3) target bundleno = 1023 (0x3ff), region = 44  ;;  %s1652_s19 = smov (!%p264_p3), 104  }
   0x8   : > { %s1653_s20 = smov (!%p264_p3), 112  }
   0xc   : > { %s2138_s21 = smov (!%p313_p4, %s1589_s21), 1  ;;  %v1654_v1 = vmov 1983009808   ;;  %v1655_v10 = vmov 1934713408   ;;  %vm375_vm0 = vcmask 1047556  }
   0xd   : > { %s1715_s25 = sshll.u32 %s2138_s21, 2  ;;  %s1318_s26 = sshll.u32 %s2138_s21, 3  ;;  %v366_v2 = vunpack.c.l.s4 %v1654_v1  ;;  %v380_v11 = vunpack.c.l.s4 %v1655_v10  ;;  %v1801_v10 = vmov 0.0  }
   0xe   : > { %s326_s29 = scalar_lea.vmem %s2114_s1, %s1715_s25  ;;  %s330_s8 = scalar_lea.vmem %s2115_s2, %s1715_s25 }
   0xf   : > { %s1208_s11 = scalar_lea.vmem %s2116_s3, %s1715_s25  ;;  %v344_v0 = vld [vmem:[%s326_s29] sm:$0xf]  ;;  %s1732_s14 = scalar_lea.vmem %s2113_s0, %s1318_s26  ;;  %v1739_v6 = vunpack.c.0.s8 %v366_v2  ;;  %v1743_v18 = vunpack.c.0.s8 %v380_v11  ;;  %v1803_v11 = vmov 0.0  }
  0x10   : > { %346 = vrot.lane.b32.xlu0 %v344_v0, %s1651_s15  ;;  %s1737_s18 = scalar_lea.vmem %s2119_s6, %s1318_s26  ;;  %350 = vrot.lane.b32.xlu1 %v344_v0, %s1652_s19  ;;  %v355_v4 = vshrl.u32 %v344_v0, 16  ;;  %s1819_s21 = smov 0  }
  0x18   : > { %348 = vrot.lane.b32.xlu0 %v344_v0, %s1653_s20 }
  0x82   : > { %v347_v3 = vpop.permute.xlu0 %346  ;;  %v351_v8 = vpop.permute.xlu1 %350 }
  0x83   : > { %v356_v5 = vshrl.u32 %v347_v3, 16  ;;  %v354_v7 = vpack.i.b16 %v347_v3, %v344_v0  ;;  %v362_v13 = vshrl.u32 %v351_v8, 16 }
  0x85   : > { %v357_v9 = vpack.i.b16 %v356_v5, %v355_v4  ;;  %v368_v12 = vperm.slane %v354_v7, %v1739_v6  ;;  %v1795_v7 = vmov 0.0  }
  0x87   : > { %v395_v15 = vperm.slane %v357_v9, %v1739_v6  ;;  %v377_v19 = vrot.slane %v368_v12, 4  ;;  %v1799_v9 = vmov 0.0  }
  0x89   : > { %v403_v22 = vrot.slane %v395_v15, 4 }
  0x8a   : > { %v349_v14 = vpop.permute.xlu0 %348 }
  0x8b   : > { %v360_v16 = vpack.i.b16 %v351_v8, %v349_v14  ;;  %v361_v17 = vshrl.u32 %v349_v14, 16  ;;  %v1797_v8 = vmov 0.0   ;;  %v1809_v14 = vmov 0.0  }
  0x8d   : > { %v363_v20 = vpack.i.b16 %v362_v13, %v361_v17  ;;  %v373_v21 = vperm.slane %v360_v16, %v1739_v6  ;;  %v1807_v13 = vmov 0.0   ;;  %v1813_v16 = vmov -inf  }
  0x8e   : > { %v1815_v17 = vmov -inf  }
  0x8f   : > { %v374_v23 = vrot.slane %v373_v21, 4  ;;  %v378_v24 = vsel %vm375_vm0, %v373_v21, %v377_v19  ;;  %v400_v25 = vperm.slane %v363_v20, %v1739_v6  ;;  %v1817_v19 = vmov -inf  }
  0x90   : > { %v386_v26 = vperm.slane %v378_v24, %v1743_v18 }
  0x91   : > { %v376_v27 = vsel %vm375_vm0, %v374_v23, %v368_v12  ;;  %v401_v28 = vrot.slane %v400_v25, 4  ;;  %v404_v29 = vsel %vm375_vm0, %v400_v25, %v403_v22  ;;  %v1805_v12 = vmov 0.0  }
  0x92   : > { %v382_v30 = vperm.slane %v376_v27, %v1743_v18  ;;  %v389_v31 = vrot.slane %v386_v26, 4  ;;  %v412_v32 = vperm.slane %v404_v29, %v1743_v18 }
  0x93   : > { %v402_v33 = vsel %vm375_vm0, %v401_v28, %v395_v15  ;;  %v1811_v15 = vmov -inf  }
  0x94   : > { %v387_v34 = vrot.slane %v382_v30, 4  ;;  %v390_v35 = vsel %vm375_vm0, 0, %v389_v31  ;;  %v408_v36 = vperm.slane %v402_v33, %v1743_v18  ;;  %v415_v37 = vrot.slane %v412_v32, 4 }
  0x95   : > { %v422_v38 = vrot.slane %v390_v35, 4  ;;  %v417_v42 = vsel %vm375_vm0, %v389_v31, %v382_v30 }
  0x96   : > { %v388_v39 = vsel %vm375_vm0, 0, %v387_v34  ;;  %v413_v40 = vrot.slane %v408_v36, 4  ;;  %v416_v41 = vsel %vm375_vm0, 0, %v415_v37  ;;  %v436_v47 = vsel %vm375_vm0, %v415_v37, %v408_v36 }
  0x97   : > { %v423_v43 = vsel %vm375_vm0, %v422_v38, %v388_v39  ;;  %v441_v44 = vrot.slane %v416_v41, 4  ;;  %v421_v49 = vperm.slane %v417_v42, %v1739_v6  ;;  %v440_v53 = vperm.slane %v436_v47, %v1739_v6 }
  0x98   : > { %v414_v45 = vsel %vm375_vm0, 0, %v413_v40  ;;  %v427_v46 = vperm.slane %v423_v43, %v1739_v6 }
  0x99   : > { %v442_v48 = vsel %vm375_vm0, %v441_v44, %v414_v45 }
  0x9a   : > { %v428_v50 = vrot.slane %v427_v46, 4  ;;  %v446_v51 = vperm.slane %v442_v48, %v1739_v6 }
  0x9c   : > { %v429_v52 = vsel %vm375_vm0, %v428_v50, %v421_v49  ;;  %v447_v54 = vrot.slane %v446_v51, 4 }
  0x9d   : > { %v1769_v55 = vperm.slane %v429_v52, %v1743_v18 }
  0x9e   : > { %v448_v56 = vsel %vm375_vm0, %v447_v54, %v440_v53 }
  0x9f   : > { %v434_v57 = vrot.slane %v1769_v55, 4  ;;  %v1774_v58 = vperm.slane %v448_v56, %v1743_v18  ;;  %v458_v59 = vshrl.u32 %v1769_v55, 16 }
  0xa1   : > { %v1778_v60 = vsel %vm375_vm0, 0, %v434_v57  ;;  %v453_v61 = vrot.slane %v1774_v58, 4  ;;  %v457_v62 = vpack.i.b16 %v1774_v58, %v1769_v55  ;;  %v459_v63 = vshrl.u32 %v1774_v58, 16 }
  0xa2   : > { %v464_v3 = vshrl.u32 %v1778_v60, 16 }
  0xa3   : > { %v1785_v0 = vsel %vm375_vm0, 0, %v453_v61  ;;  %v1787_v1 = vpack.i.b16 %v459_v63, %v458_v59 }
  0xa4   : > { %v463_v2 = vpack.i.b16 %v1785_v0, %v1778_v60  ;;  %v465_v4 = vshrl.u32 %v1785_v0, 16 }
  0xa6   : > { %v1793_v5 = vpack.i.b16 %v465_v4, %v464_v3 }
  0xa7 LB: >> { %s1323_s26 = sshll.u32 %s1649_s21, 3  ;;  %s1656_s9 = smov 120   ;;  %vm749_vm1 = vcmask 64512   ;;  %vm897_vm2 = vcmask 1043456   ;;  %s1649_s21 = sphi %s1819_s21, %s471_s21   ;;  %v1645_v19 = vphi %v1817_v19, %v2132_v19   ;;  %v1641_v17 = vphi %v1815_v17, %v2131_v17   ;;  %v1637_v16 = vphi %v1813_v16, %v2130_v16   ;;  %v1633_v15 = vphi %v1811_v15, %v2129_v15   ;;  %v1629_v14 = vphi %v1809_v14, %v2128_v14   ;;  %v1625_v13 = vphi %v1807_v13, %v2127_v13   ;;  %v1621_v12 = vphi %v1805_v12, %v2126_v12   ;;  %v1617_v11 = vphi %v1803_v11, %v2125_v11   ;;  %v1613_v10 = vphi %v1801_v10, %v2124_v10   ;;  %v1609_v9 = vphi %v1799_v9, %v2123_v9   ;;  %v1605_v8 = vphi %v1797_v8, %v2122_v8   ;;  %v1601_v7 = vphi %v1795_v7, %v2121_v7  }
  0xa8   : >> { %s487_s27 = sshra.s32 %s1323_s26, 3  ;;  %s1657_s10 = smov 104  }
  0xa9   : >> { %s1324_s28 = sshll.u32 %s487_s27, 2  ;;  %s1658_s12 = smov 112  }
  0xaa   : >> { %s490_s7 = scalar_lea.vmem %s330_s8, %s1324_s28  ;;  %s1216_s16 = scalar_lea.vmem %s1208_s11, %s1324_s28 }
  0xab   : >> { %v491_v20 = vld [vmem:[%s490_s7] sm:$0xf]  ;;  %v1879_v41 = vld [vmem:[%s1216_s16 + $0x8] sm:$0xf]  ;;  %s737_s17 = ssub.s32 0, %s1649_s21  ;;  %s471_s21 = sadd.s32 1, %s1649_s21  }
  0xac   : >> { %496 = vrot.lane.b32.xlu0 %v491_v20, %s1656_s9  ;;  %500 = vrot.lane.b32.xlu1 %v491_v20, %s1657_s10  ;;  %v505_v22 = vshrl.u32 %v491_v20, 16  ;;  %s1348_s19 = sshll.u32 %s737_s17, 4  ;;  %p2019_p5 = scmp.ge.s32.totalorder %s471_s21, 1 }
  0xad   : >> { %619 = vrot.lane.b32.xlu2 %v1879_v41, %s1658_s12  ;;  %s740_s27 = scalar_lea.vmem %s2117_s4, %s1348_s19  ;;  %s1659_s25 = smov (%p2019_p5), 24   ;;  %vm1108_vm3 = vcmask (%p2019_p5), 130048   ;;  %vm1110_vm4 = vcmask (%p2019_p5), 195584   ;;  %vm1129_vm5 = vcmask (%p2019_p5), 261120  }
  0xae   : > { %s1660_s8 = smov (%p2019_p5), 8   ;;  %s1661_s11 = smov (%p2019_p5), 16  }
  0xb4   : >> { %498 = vrot.lane.b32.xlu0 %v491_v20, %s1658_s12  ;;  %617 = vrot.lane.b32.xlu1 %v1879_v41, %s1656_s9 }
  0xb5   : >> { %621 = vrot.lane.b32.xlu2 %v1879_v41, %s1657_s10 }
 0x11e   : >> { %v497_v21 = vpop.permute.xlu0 %496  ;;  %v501_v25 = vpop.permute.xlu1 %500 }
 0x11f   : >> { %v506_v23 = vshrl.u32 %v497_v21, 16  ;;  %v504_v24 = vpack.i.b16 %v497_v21, %v491_v20  ;;  %v512_v28 = vshrl.u32 %v501_v25, 16 }
 0x121   : >> { %v507_v26 = vpack.i.b16 %v506_v23, %v505_v22  ;;  %v518_v27 = vperm.slane %v504_v24, %v1739_v6 }
 0x123   : >> { %v544_v30 = vperm.slane %v507_v26, %v1739_v6  ;;  %v526_v33 = vrot.slane %v518_v27, 4 }
 0x125   : >> { %v552_v36 = vrot.slane %v544_v30, 4 }
 0x126   : >> { %v499_v29 = vpop.permute.xlu0 %498 }
 0x127   : >> { %v510_v31 = vpack.i.b16 %v501_v25, %v499_v29  ;;  %v511_v32 = vshrl.u32 %v499_v29, 16 }
 0x129   : >> { %v513_v34 = vpack.i.b16 %v512_v28, %v511_v32  ;;  %v523_v35 = vperm.slane %v510_v31, %v1739_v6 }
 0x12b   : >> { %v524_v37 = vrot.slane %v523_v35, 4  ;;  %v527_v38 = vsel %vm375_vm0, %v523_v35, %v526_v33  ;;  %v549_v39 = vperm.slane %v513_v34, %v1739_v6 }
 0x12c   : >> { %v535_v40 = vperm.slane %v527_v38, %v1743_v18 }
 0x12d   : >> { %v525_v42 = vsel %vm375_vm0, %v524_v37, %v518_v27  ;;  %v550_v43 = vrot.slane %v549_v39, 4  ;;  %v553_v44 = vsel %vm375_vm0, %v549_v39, %v552_v36 }
 0x12e   : >> { %v531_v45 = vperm.slane %v525_v42, %v1743_v18  ;;  %v538_v46 = vrot.slane %v535_v40, 4  ;;  %v561_v47 = vperm.slane %v553_v44, %v1743_v18 }
 0x12f   : >> { %v551_v48 = vsel %vm375_vm0, %v550_v43, %v544_v30 }
 0x130   : >> { %v536_v49 = vrot.slane %v531_v45, 4  ;;  %v539_v50 = vsel %vm375_vm0, 0, %v538_v46  ;;  %v557_v51 = vperm.slane %v551_v48, %v1743_v18  ;;  %v564_v52 = vrot.slane %v561_v47, 4  ;;  %v620_v48 = vpop.permute.xlu2 %619 }
 0x131   : >> { %v571_v53 = vrot.slane %v539_v50, 4  ;;  %v566_v59 = vsel %vm375_vm0, %v538_v46, %v531_v45  ;;  %v618_v50 = vpop.permute.xlu1 %617 }
 0x132   : >> { %v537_v54 = vsel %vm375_vm0, 0, %v536_v49  ;;  %v562_v56 = vrot.slane %v557_v51, 4  ;;  %v565_v57 = vsel %vm375_vm0, 0, %v564_v52  ;;  %v585_v20 = vsel %vm375_vm0, %v564_v52, %v557_v51 }
 0x133   : >> { %v590_v61 = vrot.slane %v565_v57, 4  ;;  %v572_v63 = vsel %vm375_vm0, %v571_v53, %v537_v54  ;;  %v570_v22 = vperm.slane %v566_v59, %v1739_v6  ;;  %v589_v26 = vperm.slane %v585_v20, %v1739_v6 }
 0x134   : >> { %v563_v3 = vsel %vm375_vm0, 0, %v562_v56  ;;  %v576_v4 = vperm.slane %v572_v63, %v1739_v6  ;;  %v626_v49 = vshrl.u32 %v1879_v41, 16  ;;  %v625_v51 = vpack.i.b16 %v618_v50, %v1879_v41  ;;  %v1352_v56 = vld [vmem:[%s740_s27] sm:$0xff]  }
 0x135   : >> { %v591_v21 = vsel %vm375_vm0, %v590_v61, %v563_v3  ;;  %v627_v52 = vshrl.u32 %v618_v50, 16  ;;  %v632_v57 = vshrl.u32 %v620_v48, 16  ;;  %v1353_v20 = vunpack.c.l.bf16 %v1352_v56 }
 0x136   : >> { %v577_v23 = vrot.slane %v576_v4, 4  ;;  %v595_v24 = vperm.slane %v591_v21, %v1739_v6  ;;  %v639_v54 = vperm.slane %v625_v51, %v1739_v6 }
 0x137   : >> { %v628_v53 = vpack.i.b16 %v627_v52, %v626_v49 }
 0x138   : >> { %v578_v25 = vsel %vm375_vm0, %v577_v23, %v570_v22  ;;  %v596_v27 = vrot.slane %v595_v24, 4  ;;  %v622_v61 = vpop.permute.xlu2 %621  ;;  %v647_v63 = vrot.slane %v639_v54, 4  ;;  %v1354_v24 = vunpack.c.h.bf16 %v1352_v56 }
 0x139   : >> { %v582_v28 = vperm.slane %v578_v25, %v1743_v18  ;;  %v665_v59 = vperm.slane %v628_v53, %v1739_v6  ;;  %v631_v3 = vpack.i.b16 %v622_v61, %v620_v48  ;;  %v633_v4 = vshrl.u32 %v622_v61, 16 }
 0x13a   : >> { %v597_v29 = vsel %vm375_vm0, %v596_v27, %v589_v26 }
 0x13b   : >> { %v601_v30 = vperm.slane %v597_v29, %v1743_v18  ;;  %v583_v31 = vrot.slane %v582_v28, 4  ;;  %v607_v32 = vshrl.u32 %v582_v28, 16  ;;  %v673_v21 = vrot.slane %v665_v59, 4 }
 0x13c   : >> { %v634_v22 = vpack.i.b16 %v633_v4, %v632_v57  ;;  %v644_v41 = vperm.slane %v631_v3, %v1739_v6 }
 0x13d   : >> { %v606_v33 = vpack.i.b16 %v601_v30, %v582_v28  ;;  %v608_v34 = vshrl.u32 %v601_v30, 16  ;;  %v584_v35 = vsel %vm375_vm0, 0, %v583_v31  ;;  %v602_v36 = vrot.slane %v601_v30, 4 }
 0x13e   : >> { %v613_v42 = vshrl.u32 %v584_v35, 16  ;;  %v645_v25 = vrot.slane %v644_v41, 4  ;;  %v648_v26 = vsel %vm375_vm0, %v644_v41, %v647_v63  ;;  %v670_v27 = vperm.slane %v634_v22, %v1739_v6 }
 0x13f   : >> { %v754_v37 = vsel %vm749_vm1, %v606_v33, 0  ;;  %v609_v38 = vpack.i.b16 %v608_v34, %v607_v32  ;;  %v603_v39 = vsel %vm375_vm0, 0, %v602_v36  ;;  %v656_v29 = vperm.slane %v648_v26, %v1743_v18 }
 0x140   : >> { %763 = vmatpush.bf16.xpose.msra.mxu0 %v754_v37  ;;  %v612_v40 = vpack.i.b16 %v603_v39, %v584_v35  ;;  %v614_v43 = vshrl.u32 %v603_v39, 16  ;;  %v646_v31 = vsel %vm375_vm0, %v645_v25, %v639_v54  ;;  %v671_v32 = vrot.slane %v670_v27, 4  ;;  %v1359_v35 = vld [vmem:[%s740_s27 + $0x8] sm:$0xff]  }
 0x141   : >> { %v773_v44 = vsel %vm749_vm1, %v609_v38, 0  ;;  %v674_v33 = vsel %vm375_vm0, %v670_v27, %v673_v21  ;;  %v652_v36 = vperm.slane %v646_v31, %v1743_v18  ;;  %v659_v37 = vrot.slane %v656_v29, 4 }
 0x142   : >> { %782 = vmatpush.bf16.xpose.msra.mxu1 %v773_v44  ;;  %v792_v45 = vsel %vm749_vm1, %v612_v40, 0  ;;  %v615_v46 = vpack.i.b16 %v614_v43, %v613_v42  ;;  %v672_v39 = vsel %vm375_vm0, %v671_v32, %v665_v59  ;;  %v682_v40 = vperm.slane %v674_v33, %v1743_v18 }
 0x143   : >> { %801 = vmatpush.bf16.xpose.msra.mxu2 %v792_v45  ;;  %v657_v42 = vrot.slane %v652_v36, 4  ;;  %v660_v43 = vsel %vm375_vm0, 0, %v659_v37  ;;  %v678_v44 = vperm.slane %v672_v39, %v1743_v18  ;;  %v1357_v45 = vunpack.c.l.bf16 %v1359_v35 }
 0x144   : >> { %v811_v47 = vsel %vm749_vm1, %v615_v46, 0  ;;  %v685_v46 = vrot.slane %v682_v40, 4  ;;  %v692_v48 = vrot.slane %v660_v43, 4  ;;  %v1358_v49 = vunpack.c.h.bf16 %v1359_v35 }
 0x145   : >> { %820 = vmatpush.bf16.xpose.msra.mxu3 %v811_v47  ;;  %v687_v47 = vsel %vm375_vm0, %v659_v37, %v652_v36  ;;  %v658_v50 = vsel %vm375_vm0, 0, %v657_v42  ;;  %v683_v51 = vrot.slane %v678_v44, 4 }
 0x146   : >> { %v686_v54 = vsel %vm375_vm0, 0, %v685_v46  ;;  %v691_v56 = vperm.slane %v687_v47, %v1739_v6  ;;  %v693_v57 = vsel %vm375_vm0, %v692_v48, %v658_v50  ;;  %v706_v63 = vsel %vm375_vm0, %v685_v46, %v678_v44 }
 0x147   : >> { %1329 = vmatmul.msk.bf16.vlgmr.msra.gmra.mxu0 %vm749_vm1, %v457_v62  ;;  %v697_v61 = vperm.slane %v693_v57, %v1739_v6  ;;  %v711_v3 = vrot.slane %v686_v54, 4  ;;  %v684_v4 = vsel %vm375_vm0, 0, %v683_v51  ;;  %v710_v26 = vperm.slane %v706_v63, %v1739_v6 }
 0x149   : >> { %1330 = vmatmul.msk.bf16.vlgmr.msra.gmra.mxu1 %vm749_vm1, %v1787_v1  ;;  %v698_v41 = vrot.slane %v697_v61, 4 }
 0x14a   : >> { %1331 = vmatmul.msk.bf16.vlgmr.msra.gmra.mxu2 %vm749_vm1, %v463_v2 }
 0x14b   : >> { %v699_v29 = vsel %vm375_vm0, %v698_v41, %v691_v56 }
 0x14c   : >> { %1332 = vmatmul.msk.bf16.vlgmr.msra.gmra.mxu3 %vm749_vm1, %v1793_v5  ;;  %v703_v31 = vperm.slane %v699_v29, %v1743_v18 }
 0x14e   : >> { %v728_v37 = vshrl.u32 %v703_v31, 16 }
 0x1c4   : >> { %v765_v23 = vpop.f32.mrf.mxu0 }
 0x1c5   : >> { %v1937_v28 = vadd.f32 %v1353_v20, %v765_v23  ;;  %v712_v23 = vsel %vm375_vm0, %v711_v3, %v684_v4 }
 0x1c6   : >> { %v784_v30 = vpop.f32.mrf.mxu1  ;;  %v716_v27 = vperm.slane %v712_v23, %v1739_v6 }
 0x1c7   : >> { %v826_v34 = vsel %vm749_vm1, %v1937_v28, -inf  ;;  %v1945_v38 = vadd.f32 %v1354_v24, %v784_v30 }
 0x1c8   : >> { %827 = vmax.xlane.f32.xlu2 %v826_v34  ;;  %v717_v32 = vrot.slane %v716_v27, 4  ;;  %v704_v34 = vrot.slane %v703_v31, 4 }
 0x1c9   : >> { %v829_v53 = vsel %vm749_vm1, %v1945_v38, -inf }
 0x1ca   : >> { %v718_v33 = vsel %vm375_vm0, %v717_v32, %v710_v26  ;;  %v705_v39 = vsel %vm375_vm0, 0, %v704_v34 }
 0x1cb   : >> { %v722_v36 = vperm.slane %v718_v33, %v1743_v18 }
 0x1cc   : >> { %v767_v52 = vpop.f32.mrf.mxu0 }
 0x1cd   : >> { %v803_v59 = vpop.f32.mrf.mxu2  ;;  %v727_v42 = vpack.i.b16 %v722_v36, %v703_v31  ;;  %v729_v43 = vshrl.u32 %v722_v36, 16  ;;  %v723_v44 = vrot.slane %v722_v36, 4 }
 0x1ce   : >> { %v804_v20 = vadd.f32 %v1357_v45, %v803_v59  ;;  %v786_v21 = vpop.f32.mrf.mxu1  ;;  %v734_v45 = vshrl.u32 %v705_v39, 16 }
 0x1cf   : >> { %v822_v22 = vpop.f32.mrf.mxu3  ;;  %v899_v46 = vsel %vm897_vm2, %v727_v42, 0  ;;  %v730_v47 = vpack.i.b16 %v729_v43, %v728_v37  ;;  %v724_v48 = vsel %vm375_vm0, 0, %v723_v44 }
 0x1d0   : >> { %v823_v24 = vadd.f32 %v1358_v49, %v822_v22  ;;  %830 = vmax.xlane.f32.xlu2 %v829_v53  ;;  %v832_v25 = vsel %vm749_vm1, %v804_v20, -inf  ;;  %908 = vmatpush.bf16.msrb.mxu0 %v899_v46  ;;  %v733_v49 = vpack.i.b16 %v724_v48, %v705_v39  ;;  %v735_v50 = vshrl.u32 %v724_v48, 16 }
 0x1d1   : >> { %833 = vmax.xlane.f32.xlu0 %v832_v25  ;;  %v918_v51 = vsel %vm897_vm2, %v730_v47, 0 }
 0x1d2   : >> { %v835_v30 = vsel %vm749_vm1, %v823_v24, -inf  ;;  %927 = vmatpush.bf16.msrb.mxu1 %v918_v51  ;;  %v937_v52 = vsel %vm897_vm2, %v733_v49, 0  ;;  %v736_v53 = vpack.i.b16 %v735_v50, %v734_v45 }
 0x1d3   : >> { %836 = vmax.xlane.f32.xlu1 %v835_v30  ;;  %946 = vmatpush.bf16.msrb.mxu2 %v937_v52 }
 0x1d4   : >> { %v956_v54 = vsel %vm897_vm2, %v736_v53, 0 }
 0x1d5   : >> { %v805_v35 = vpop.f32.mrf.mxu2  ;;  %965 = vmatpush.bf16.msrb.mxu3 %v956_v54 }
 0x1d7   : >> { %v824_v40 = vpop.f32.mrf.mxu3 }
 0x23b   : >> { %v828_v56 = vpop.xlane.xlu2 %827 }
 0x23c   : >> { %v1977_v57 = vmax.f32 %v1645_v19, %v828_v56  }
 0x23e   : >> { %v842_v59 = vsub.f32 %v1645_v19, %v1977_v57  ;;  %v854_v61 = vsub.f32 %v1937_v28, %v1977_v57 }
 0x240   : >> { %v858_v63 = vmul.f32 1.442695, %v854_v61  ;;  %v846_v40 = vmul.f32 1.442695, %v842_v59 }
 0x242   : >> { %1499 = vpow2.f32 %v858_v63 }
 0x243   : >> { %v831_v3 = vpop.xlane.xlu2 %830 }
 0x244   : >> { %v1984_v4 = vmax.f32 %v1641_v17, %v831_v3   ;;  %v834_v21 = vpop.xlane.xlu0 %833 }
 0x245   : >> { %v1987_v22 = vmax.f32 %v1637_v16, %v834_v21  }
 0x246   : >> { %v843_v41 = vsub.f32 %v1641_v17, %v1984_v4  ;;  %v855_v23 = vsub.f32 %v1945_v38, %v1984_v4  ;;  %v837_v19 = vpop.xlane.xlu1 %836 }
 0x247   : >> { %v844_v28 = vsub.f32 %v1637_v16, %v1987_v22  ;;  %v856_v25 = vsub.f32 %v804_v20, %v1987_v22  ;;  %v1997_v26 = vmax.f32 %v1633_v15, %v837_v19  }
 0x248   : >> { %v860_v27 = vmul.f32 1.442695, %v855_v23  ;;  %v1500_v29 = vpop.eup %1499  ;;  %v848_v42 = vmul.f32 1.442695, %v843_v41 }
 0x249   : >> { %v862_v30 = vmul.f32 1.442695, %v856_v25  ;;  %v845_v31 = vsub.f32 %v1633_v15, %v1997_v26  ;;  %v857_v17 = vsub.f32 %v823_v24, %v1997_v26  ;;  %v870_v32 = vsel %vm749_vm1, %v1500_v29, 0.0 }
 0x24a   : >> { %v890_v38 = vpack.c.bf16 %v1500_v29, %v1500_v29  ;;  %1501 = vpow2.f32 %v860_v27  ;;  %871 = vadd.xlane.f32.xlu0 %v870_v32  ;;  %v850_v44 = vmul.f32 1.442695, %v844_v28 }
 0x24b   : >> { %v864_v33 = vmul.f32 1.442695, %v857_v17  ;;  %1503 = vpow2.f32 %v862_v30  ;;  %v852_v45 = vmul.f32 1.442695, %v845_v31 }
 0x24c   : >> { %1333 = vmatmul.msk.bf16.vlgmr.msrb.gmra.mxu0 %vm749_vm1, %v890_v38 }
 0x24d   : >> { %1505 = vpow2.f32 %v864_v33 }
 0x24e   : >> { %1507 = vpow2.f32 %v846_v40 }
 0x24f   : >> { %1509 = vpow2.f32 %v848_v42 }
 0x250   : >> { %v1502_v16 = vpop.eup %1501  ;;  %1511 = vpow2.f32 %v850_v44 }
 0x251   : >> { %v873_v20 = vsel %vm749_vm1, %v1502_v16, 0.0  ;;  %v891_v34 = vpack.c.bf16 %v1502_v16, %v1502_v16  ;;  %v1504_v35 = vpop.eup %1503  ;;  %1513 = vpow2.f32 %v852_v45  ;;  %v2130_v16 = vmov %v1987_v22 }
 0x252   : >> { %874 = vadd.xlane.f32.xlu1 %v873_v20  ;;  %v876_v15 = vsel %vm749_vm1, %v1504_v35, 0.0  ;;  %v892_v24 = vpack.c.bf16 %v1504_v35, %v1504_v35 }
 0x253   : >> { %1334 = vmatmul.msk.bf16.vlgmr.msrb.gmra.mxu1 %vm749_vm1, %v891_v34  ;;  %v1506_v36 = vpop.eup %1505  ;;  %877 = vadd.xlane.f32.xlu2 %v876_v15  ;;  %v2129_v15 = vmov %v1997_v26 }
 0x254   : >> { %1335 = vmatmul.msk.bf16.vlgmr.msrb.gmra.mxu2 %vm749_vm1, %v892_v24  ;;  %v879_v37 = vsel %vm749_vm1, %v1506_v36, 0.0  ;;  %v893_v39 = vpack.c.bf16 %v1506_v36, %v1506_v36  ;;  %v1508_v43 = vpop.eup %1507 }
 0x255   : >> { %880 = vadd.xlane.f32.xlu0 %v879_v37  ;;  %v866_v46 = vmul.f32 %v1629_v14, %v1508_v43  ;;  %v1510_v49 = vpop.eup %1509  ;;  %v886_v61 = vmul.f32 %v1613_v10, %v1508_v43 }
 0x256   : >> { %1336 = vmatmul.msk.bf16.vlgmr.msrb.gmra.mxu3 %vm749_vm1, %v893_v39  ;;  %v1512_v50 = vpop.eup %1511  ;;  %v867_v51 = vmul.f32 %v1625_v13, %v1510_v49  ;;  %v887_v19 = vmul.f32 %v1609_v9, %v1510_v49 }
 0x257   : >> { %v1514_v52 = vpop.eup %1513  ;;  %v868_v56 = vmul.f32 %v1621_v12, %v1512_v50  ;;  %v888_v13 = vmul.f32 %v1605_v8, %v1512_v50 }
 0x258   : >> { %v869_v14 = vmul.f32 %v1617_v11, %v1514_v52  ;;  %v889_v12 = vmul.f32 %v1601_v7, %v1514_v52 }
 0x2bd   : >> { %v872_v47 = vpop.xlane.xlu0 %871 }
 0x2be   : >> { %v882_v48 = vadd.f32 %v872_v47, %v866_v46  }
 0x2c0   : > { %1515 = vrcp.f32 (%p2019_p5), %v882_v48 }
 0x2c5   : >> { %v875_v53 = vpop.xlane.xlu1 %874 }
 0x2c6   : >> { %v883_v54 = vadd.f32 %v875_v53, %v867_v51   ;;  %v878_v59 = vpop.xlane.xlu2 %877  ;;  %v1516_v33 = vpop.eup (%p2019_p5), %1515 }
 0x2c7   : >> { %v884_v63 = vadd.f32 %v878_v59, %v868_v56  }
 0x2c8   : >> { %v881_v41 = vpop.xlane.xlu0 %880  ;;  %1517 = vrcp.f32 (%p2019_p5), %v883_v54 }
 0x2c9   : >> { %v910_v3 = vpop.f32.mrf.mxu0  ;;  %v885_v23 = vadd.f32 %v881_v41, %v869_v14   ;;  %v2128_v14 = vmov %v882_v48  ;;  %1519 = vrcp.f32 (%p2019_p5), %v884_v63 }
 0x2ca   : >> { %v971_v21 = vadd.f32 %v910_v3, %v886_v61  }
 0x2cb   : >> { %v2125_v11 = vmov %v885_v23  ;;  %1521 = vrcp.f32 (%p2019_p5), %v885_v23 }
 0x2cc   : > { %v979_v26 = vmul.f32 (%p2019_p5), %v1516_v33, %v971_v21 }
 0x2ce   : > { %v1518_v20 = vpop.eup (%p2019_p5), %1517  ;;  %v986_v36 = vrot.slane (%p2019_p5), %v979_v26, 4 }
 0x2cf   : > { %v1520_v34 = vpop.eup (%p2019_p5), %1519 }
 0x2d0   : >> { %v929_v25 = vpop.f32.mrf.mxu1 }
 0x2d1   : >> { %v912_v28 = vpop.f32.mrf.mxu0  ;;  %v972_v27 = vadd.f32 %v929_v25, %v887_v19   ;;  %v2132_v19 = vmov %v1977_v57  ;;  %v1522_v22 = vpop.eup (%p2019_p5), %1521 }
 0x2d3   : >> { %v2123_v9 = vmov %v972_v27  ;;  %v980_v35 = vmul.f32 (%p2019_p5), %v1518_v20, %v972_v27 }
 0x2d5   : > { %v998_v37 = vrot.slane (%p2019_p5), %v980_v35, 4 }
 0x2d7   : >> { %v948_v29 = vpop.f32.mrf.mxu2 }
 0x2d8   : >> { %v931_v30 = vpop.f32.mrf.mxu1  ;;  %v973_v31 = vadd.f32 %v948_v29, %v888_v13   ;;  %v2127_v13 = vmov %v883_v54 }
 0x2d9   : >> { %v967_v10 = vpop.f32.mrf.mxu3 }
 0x2da   : >> { %v974_v32 = vadd.f32 %v967_v10, %v889_v12   ;;  %v2122_v8 = vmov %v973_v31  ;;  %v2124_v10 = vmov %v971_v21  ;;  %v2126_v12 = vmov %v884_v63 }
 0x2db   : > { %v981_v24 = vmul.f32 (%p2019_p5), %v1520_v34, %v973_v31 }
 0x2dc   : >> { %v2121_v7 = vmov %v974_v32 }
 0x2dd   : > { %473 = sbr.rel (!%p2019_p5) target bundleno = 167 (0xa7), region = 93  ;;  %v983_v39 = vrot.slane (%p2019_p5), %v981_v24, 4  ;;  %v987_v57 = vsel (%p2019_p5), %vm375_vm0, %v981_v24, %v986_v36 }
 0x2de   : > { %v995_v40 = vperm.slane (%p2019_p5), %v987_v57, %v1739_v6 }
 0x2df   : >> { %v950_v17 = vpop.f32.mrf.mxu2  ;;  %v985_v58 = vsel (%p2019_p5), %vm375_vm0, %v983_v39, %v979_v26 }
 0x2e0   : >> { %v2131_v17 = vmov %v1984_v4  ;;  %v982_v4 = vmul.f32 (%p2019_p5), %v1522_v22, %v974_v32  ;;  %v991_v62 = vperm.slane (%p2019_p5), %v985_v58, %v1739_v6  ;;  %v1022_v1 = vrot.slane (%p2019_p5), %v995_v40, 4  ;;  %v1350_v22 = vld [vmem:[%s2118_s5 + $0x8] sm:$0xff] (%p2019_p5)  ;;  %v1146_v58 = vld [vmem:[%s1732_s14] sm:$0xff] (%p2019_p5) }
 0x2e1   : >> { %v969_v38 = vpop.f32.mrf.mxu3  ;;  %1139 = vmatpush.bf16.msra.mxu0 (%p2019_p5), %v1350_v22 }
 0x2e2   : > { %v996_v42 = vrot.slane %v982_v4, 4  ;;  %v999_v55 = vsel %vm375_vm0, %v982_v4, %v998_v37  ;;  %v1010_v7 = vrot.slane %v991_v62, 4 }
 0x2e3   : > { %v1007_v60 = vperm.slane %v999_v55, %v1739_v6 }
 0x2e4   : > { %v997_v0 = vsel %vm375_vm0, %v996_v42, %v980_v35 }
 0x2e5   : > { %v1003_v2 = vperm.slane %v997_v0, %v1739_v6  ;;  %v1020_v5 = vrot.slane %v1007_v60, 4  ;;  %v1023_v8 = vsel %vm375_vm0, %v1007_v60, %v1022_v1 }
 0x2e6   : > { %v1031_v16 = vperm.slane %v1023_v8, %v1743_v18 }
 0x2e7   : > { %v1008_v9 = vrot.slane %v1003_v2, 4  ;;  %v1021_v11 = vsel %vm375_vm0, %v1020_v5, %v995_v40  ;;  %v1011_v15 = vsel %vm375_vm0, %v1003_v2, %v1010_v7 }
 0x2e8   : > { %v1027_v43 = vperm.slane %v1021_v11, %v1743_v18  ;;  %v1019_v45 = vperm.slane %v1011_v15, %v1743_v18  ;;  %v1038_v46 = vrot.slane %v1031_v16, 4 }
 0x2e9   : > { %v1009_v44 = vsel %vm375_vm0, %v1008_v9, %v991_v62 }
 0x2ea   : > { %v1015_v47 = vperm.slane %v1009_v44, %v1743_v18  ;;  %v1036_v48 = vrot.slane %v1027_v43, 4  ;;  %v1034_v49 = vrot.slane %v1019_v45, 4  ;;  %v1039_v50 = vsel %vm375_vm0, 0.0, %v1038_v46 }
 0x2eb   : > { %v1051_v51 = vsel %vm375_vm0, %v1038_v46, %v1027_v43  ;;  %v1056_v54 = vrot.slane %v1039_v50, 4 }
 0x2ec   : > { %v1032_v52 = vrot.slane %v1015_v47, 4  ;;  %v1037_v53 = vsel %vm375_vm0, 0.0, %v1036_v48  ;;  %v1035_v56 = vsel %vm375_vm0, 0.0, %v1034_v49  ;;  %v1040_v59 = vsel %vm375_vm0, %v1034_v49, %v1015_v47 }
 0x2ed   : > { %v1055_v61 = vperm.slane %v1051_v51, %v1739_v6  ;;  %v1044_v3 = vperm.slane %v1040_v59, %v1739_v6  ;;  %v1045_v14 = vrot.slane %v1035_v56, 4  ;;  %v1057_v21 = vsel %vm375_vm0, %v1056_v54, %v1037_v53 }
 0x2ee   : > { %v1033_v63 = vsel %vm375_vm0, 0.0, %v1032_v52  ;;  %v1061_v41 = vperm.slane %v1057_v21, %v1739_v6 }
 0x2ef   : > { %v1076_v23 = vrot.slane %v1055_v61, 4  ;;  %v1046_v19 = vsel %vm375_vm0, %v1045_v14, %v1033_v63  ;;  %v1064_v28 = vrot.slane %v1044_v3, 4 }
 0x2f0   : > { %v1050_v25 = vperm.slane %v1046_v19, %v1739_v6  ;;  %v1074_v27 = vrot.slane %v1061_v41, 4 }
 0x2f1   : > { %v1077_v31 = vsel %vm375_vm0, %v1061_v41, %v1076_v23 }
 0x2f2   : > { %v1062_v13 = vrot.slane %v1050_v25, 4  ;;  %v1075_v29 = vsel %vm375_vm0, %v1074_v27, %v1055_v61  ;;  %v1065_v30 = vsel %vm375_vm0, %v1050_v25, %v1064_v28  ;;  %v1085_v38 = vperm.slane %v1077_v31, %v1743_v18 }
 0x2f3   : > { %v1073_v12 = vperm.slane %v1065_v30, %v1743_v18  ;;  %v1081_v17 = vperm.slane %v1075_v29, %v1743_v18 }
 0x2f4   : > { %v1063_v10 = vsel %vm375_vm0, %v1062_v13, %v1044_v3  ;;  %v1090_v34 = vrot.slane %v1085_v38, 4 }
 0x2f5   : > { %v1069_v32 = vperm.slane %v1063_v10, %v1743_v18  ;;  %v1092_v33 = vrot.slane %v1073_v12, 4  ;;  %v1349_v18 = vld [vmem:[%s2118_s5] sm:$0xff]  ;;  %v1086_v36 = vrot.slane %v1081_v17, 4 }
 0x2f6   : > { %v1091_v35 = vsel %vm375_vm0, %v1090_v34, %v1073_v12  ;;  %1140 = vmatpush.bf16.msra.mxu0 %v1349_v18 }
 0x2f7   : > { %v1088_v6 = vrot.slane %v1069_v32, 4  ;;  %v1093_v20 = vsel %vm375_vm0, %v1085_v38, %v1092_v33  ;;  %v1087_v4 = vsel %vm375_vm0, %v1086_v36, %v1069_v32 }
 0x2f8   : > { %1103 = vrot.lane.b32.xlu1 %v1093_v20, %s1659_s25 }
 0x2f9   : > { %v1089_v26 = vsel %vm375_vm0, %v1081_v17, %v1088_v6 }
 0x2fa   : > { %1095 = vrot.lane.b32.xlu0 %v1089_v26, %s1660_s8 }
 0x302   : > { %1099 = vrot.lane.b32.xlu0 %v1091_v35, %s1661_s11 }
 0x36a   : > { %v1104_v37 = vpop.permute.xlu1 %1103 }
 0x36c   : > { %v1096_v24 = vpop.permute.xlu0 %1095 }
 0x36d   : > { %v1107_v39 = vsel %vm749_vm1, %v1087_v4, %v1096_v24 }
 0x374   : > { %v1100_v57 = vpop.permute.xlu0 %1099 }
 0x375   : > { %v1109_v40 = vsel %vm1108_vm3, %v1107_v39, %v1100_v57 }
 0x376   : > { %v1111_v42 = vsel %vm1110_vm4, %v1109_v40, %v1104_v37 }
 0x377   : > { %v1112_v55 = vpack.c.bf16 %v1111_v42, %v1111_v42 }
 0x379   : > { %1345 = vmatmul.msk.bf16.vlgmr.msra.gmra.mxu0 %vm1129_vm5, %v1112_v55 }
 0x3f6   : > { %v1142_v60 = vpop.f32.mrf.mxu0 }
 0x3f7   : > { %v1147_v62 = vadd.f32 %v1146_v58, %v1142_v60 }
 0x3f9   : > { %1148 = vst.msk [vmem:[%s1737_s18] sm:$0xff] %vm1129_vm5, %v1147_v62 }
 0x3fe   : > { %v1144_v0 = vpop.f32.mrf.mxu0 }
 0x3ff PF: > { %s16_s23 = sadd.s32 1, %s1597_s23   ;;  %s2133_s21 = smov %s1593_s22 }
 0x400   : > { %p13_p6 = scmp.ge.s32.totalorder %s16_s23, 4   ;;  %s2134_s22 = smov %s2136_s24 }
 0x402   :  { %15 = sbr.rel (!%p13_p6) target bundleno = 2 (0x2), region = 104 }

// kernel: transformer_forward.9
= control target key start
LH: loop header
LB: loop body
LE: loop exit
PB: predicated region body
PF: predicated region fallthrough
CT: control target
= control target key end

     0   :  { %s1922_s0 = inlined_call_operand.vmem [shape: f32[2,8,32], index: 0, kind: input, shape index: {}]   ;;  %s1923_s1 = inlined_call_operand.vmem [shape: f32[1,32], index: 1, kind: input, shape index: {}]   ;;  %s1924_s2 = inlined_call_operand.vmem [shape: f32[1,32], index: 2, kind: input, shape index: {}]   ;;  %s1925_s3 = inlined_call_operand.vmem [shape: bf16[32,96], index: 3, kind: input, shape index: {}]   ;;  %s1926_s4 = inlined_call_operand.<no memory space> [shape: f32[1,1], index: 4, kind: input, shape index: {}]   ;;  %s1927_s5 = inlined_call_operand.vmem [shape: bf16[2,8,32], index: 5, kind: output, shape index: {0}]   ;;  %s1928_s6 = inlined_call_operand.vmem [shape: bf16[2,8,32], index: 6, kind: output, shape index: {1}]   ;;  %s1929_s7 = inlined_call_operand.vmem [shape: bf16[2,2,8,32], index: 7, kind: output, shape index: {2}]  }
   0x1   :  { %13 = sst [smem:[#allocation2]] %s1926_s4 }
   0x2   :  { %s1394_s26 = smov 0   ;;  %s1396_s27 = smov 0  }
   0x3   :  { %s1398_s28 = smov 0   ;;  %s1400_s29 = smov 0  }
   0x4   :  { %s1402_s30 = smov 0  }
   0x5 LB: > { %s1171_s4 = sadd.s32 4294967295, %s1338_s30   ;;  %s31_s8 = sadd.s32 1, %s1334_s29  ;;  %s1338_s30 = sphi %s1402_s30, %s19_s30   ;;  %s1334_s29 = sphi %s1400_s29, %s1950_s29   ;;  %s1330_s28 = sphi %s1398_s28, %s1949_s28   ;;  %s1326_s27 = sphi %s1396_s27, %s1948_s27   ;;  %s1322_s26 = sphi %s1394_s26, %s1947_s26  }
   0x6   : > { %p33_p0 = scmp.ge.s32.totalorder %s31_s8, 2  ;;  %s208_s9 = sadd.s32 1, %s1326_s27 }
   0x7   : > { %p218_p1 = scmp.ne.s32.totalorder %s1326_s27, %s1322_s26  ;;  %p219_p2 = scmp.eq.s32.totalorder %s1171_s4, 1 }
   0x8   : > { %s1952_s8 = smov (%p33_p0, %s31_s8), 0  ;;  %p1175_p4 = scmp.ge.s32.totalorder %s1338_s30, 1 }
   0x9   : > { %p1426_p3 = por %p219_p2, %p218_p1  ;;  %s203_s11 = ssub.s32 %s1334_s29, %s1952_s8 }
   0xa   : > { %p265_p5 = scmp.lt.s32.totalorder %s1338_s30, 3  ;;  %p206_p6 = scmp.eq.s32.totalorder %s203_s11, 0 }
   0xc   : > { %p266_p7 = pnand %p1175_p4, %p265_p5 }
   0xd   : > { %s1435_s12 = scalar_select %p206_p6, %s1326_s27, %s208_s9  }
   0xe   : > { %269 = sbr.rel (%p266_p7) target bundleno = 968 (0x3c8), region = 40  ;;  %p312_p8 = scmp.lt.s32.totalorder (!%p266_p7), %s1330_s28, 1 }
   0xf   : > { %s1341_s4 = smov (!%p266_p7), 96   ;;  %s1342_s9 = smov (!%p266_p7), 120  }
  0x10   : > { %s1343_s11 = smov (!%p266_p7), 112   ;;  %s420_s15 = sld [smem:[#allocation2]] (!%p266_p7) }
  0x11   : > { %s1347_s16 = smov (!%p266_p7), 16   ;;  %s1349_s18 = smov (!%p266_p7), 24  }
  0x12   : > { %s1350_s19 = smov (!%p266_p7), 64   ;;  %s309_s20 = sand.u32 (!%p266_p7), 1, %s1322_s26  }
  0x13   : > { %s1439_s13 = scalar_select %p312_p8, %s1330_s28, 1  ;;  %vm337_vm0 = vcmask 261120   ;;  %v1340_v2 = vmov 32.0   ;;  %v1195_v14 = vld [vmem:[%s1925_s3 + $0x8] sm:$0xff]  ;;  %v1194_v15 = vld [vmem:[%s1925_s3] sm:$0xff]  ;;  %vm432_vm5 = vcmask 1047556  }
  0x14   : > { %1264 = vrcp.f32 %v1340_v2  ;;  %401 = vmatpush.bf16.msra.mxu0 %v1195_v14  ;;  %v1262_v25 = vld [vmem:[%s1923_s1] ss:$0 sm:$0xff]  ;;  %v1345_v35 = vmov 1983009808   ;;  %v1346_v44 = vmov 1934713408  }
  0x15   : > { %s1177_s14 = sshll.u32 %s1439_s13, 3  ;;  %v1263_v28 = vld [vmem:[%s1924_s2] ss:$0 sm:$0xff]  ;;  %v437_v36 = vunpack.c.l.s4 %v1345_v35  ;;  %v461_v45 = vunpack.c.l.s4 %v1346_v44  ;;  %vm564_vm6 = vcmask 60416   ;;  %s1176_s21 = sshll.u32 %s309_s20, 3 }
  0x16   : > { %s318_s17 = scalar_lea.vmem %s1922_s0, %s1177_s14  ;;  %s1344_s14 = smov 104  }
  0x17   : > { %v334_v0 = vld [vmem:[%s318_s17] sm:$0xff]  ;;  %v1470_v41 = vunpack.c.0.s8 %v437_v36  ;;  %v1477_v49 = vunpack.c.0.s8 %v461_v45  ;;  %s1348_s17 = smov 8   ;;  %s1883_s22 = scalar_lea.vmem [#allocation3], %s1176_s21 }
  0x18   : > { %v338_v1 = vsel %vm337_vm0, %v334_v0, 0.0  ;;  %402 = vmatpush.bf16.msra.mxu0 %v1194_v15  ;;  %s1178_s23 = sshll.u32 %s1439_s13, 2 }
  0x19   : > { %339 = vadd.xlane.f32.xlu0 %v338_v1  ;;  %s325_s25 = scalar_lea.vmem %s1927_s5, %s1178_s23 }
  0x1a   : > { %v1265_v3 = vpop.eup %1264 }
  0x1b   : > { %v342_v4 = vmul.f32 32.0, %v1265_v3  ;;  %vm346_vm1 = vweird.f32 %v1265_v3 }
  0x1d   : > { %v343_v5 = vsub.f32 1.0, %v342_v4 }
  0x1f   : > { %v344_v6 = vmul.f32 %v1265_v3, %v343_v5 }
  0x21   : > { %v345_v7 = vadd.f32 %v1265_v3, %v344_v6 }
  0x23   : > { %v347_v8 = vsel %vm346_vm1, %v1265_v3, %v345_v7 }
  0x8c   : > { %v340_v9 = vpop.xlane.xlu0 %339 }
  0x8d   : > { %v348_v10 = vmul.f32 %v347_v8, %v340_v9 }
  0x8f   : > { %v349_v11 = vsub.f32 %v334_v0, %v348_v10 }
  0x91   : > { %v350_v12 = vmul.f32 %v349_v11, %v349_v11 }
  0x93   : > { %v351_v13 = vsel %vm337_vm0, %v350_v12, 0.0 }
  0x94   : > { %352 = vadd.xlane.f32.xlu0 %v351_v13 }
 0x107   : > { %v353_v16 = vpop.xlane.xlu0 %352 }
 0x108   : > { %v354_v17 = vmul.f32 %v353_v16, %v347_v8 }
 0x10a   : > { %v355_v18 = vadd.f32 1e-05, %v354_v17 }
 0x10c   : > { %1266 = vrsqrt.f32 %v355_v18  ;;  %vm362_vm3 = vweird.f32 %v355_v18 }
 0x112   : > { %v1267_v19 = vpop.eup %1266 }
 0x113   : > { %v357_v20 = vmul.f32 %v1267_v19, %v355_v18  ;;  %vm363_vm2 = vweird.f32 %v1267_v19 }
 0x114   : > { %vm364_vm4 = vmor %vm362_vm3, %vm363_vm2 }
 0x115   : > { %v358_v21 = vmul.f32 %v1267_v19, %v357_v20 }
 0x117   : > { %v359_v22 = vmul.f32 0.5, %v358_v21 }
 0x119   : > { %v360_v23 = vsub.f32 1.5, %v359_v22 }
 0x11b   : > { %v361_v24 = vmul.f32 %v1267_v19, %v360_v23 }
 0x11d   : > { %v365_v26 = vsel %vm364_vm4, %v1267_v19, %v361_v24 }
 0x11e   : > { %v366_v27 = vmul.f32 %v365_v26, %v349_v11 }
 0x120   : > { %v370_v29 = vmul.f32 %v1262_v25, %v366_v27 }
 0x122   : > { %v374_v30 = vadd.f32 %v1263_v28, %v370_v29 }
 0x124   : > { %v375_v31 = vpack.c.bf16 %v374_v30, %v374_v30 }
 0x126   : > { %1188 = vmatmul.msk.bf16.vlgmr.msra.gmra.mxu0 %vm337_vm0, %v375_v31 }
 0x1a3   : > { %v1460_v32 = vpop.f32.mrf.mxu0 }
 0x1a4   : > { %488 = vrot.lane.b32.xlu0 %v1460_v32, %s1341_s4  ;;  %422 = vrot.lane.b32.xlu2 %v1460_v32, %s1342_s9  ;;  %v434_v57 = vrot.slane %v1460_v32, 4  ;;  %s332_s9 = scalar_lea.vmem %s1928_s6, %s1178_s23 }
 0x1a5   : > { %425 = vrot.lane.b32.xlu1 %v1460_v32, %s1343_s11  ;;  %s1191_s11 = sshll.u32 (%p1426_p3), %s1330_s28, 2 }
 0x1ab   : > { %v406_v33 = vpop.f32.mrf.mxu0 }
 0x1ad   : > { %428 = vrot.lane.b32.xlu1 %v1460_v32, %s1344_s14 }
 0x1fe   : > { %v423_v38 = vpop.permute.xlu2 %422 }
 0x1ff   : > { %v446_v56 = vrot.slane %v423_v38, 4 }
 0x216   : > { %v489_v28 = vpop.permute.xlu0 %488 }
 0x217   : > { %v426_v34 = vpop.permute.xlu1 %425  ;;  %v502_v29 = vrot.slane %v489_v28, 4 }
 0x218   : > { %492 = vrot.lane.b32.xlu2 %v426_v34, %s1341_s4  ;;  %v431_v37 = vrot.slane %v426_v34, 4  ;;  %v435_v59 = vsel %vm432_vm5, %v426_v34, %v434_v57 }
 0x219   : > { %v443_v61 = vperm.slane %v435_v59, %v1470_v41 }
 0x21a   : > { %v433_v42 = vsel %vm432_vm5, %v431_v37, %v1460_v32 }
 0x21b   : > { %v439_v47 = vperm.slane %v433_v42, %v1470_v41  ;;  %v470_v63 = vrot.slane %v443_v61, 4 }
 0x21d   : > { %v458_v4 = vrot.slane %v439_v47, 4 }
 0x21f   : > { %v429_v39 = vpop.permute.xlu1 %428 }
 0x220   : > { %v444_v40 = vrot.slane %v429_v39, 4  ;;  %490 = vrot.lane.b32.xlu2 %v423_v38, %s1341_s4  ;;  %494 = vrot.lane.b32.xlu1 %v429_v39, %s1341_s4  ;;  %v447_v58 = vsel %vm432_vm5, %v429_v39, %v446_v56 }
 0x221   : > { %v455_v60 = vperm.slane %v447_v58, %v1470_v41 }
 0x222   : > { %v445_v43 = vsel %vm432_vm5, %v444_v40, %v423_v38 }
 0x223   : > { %v451_v46 = vperm.slane %v445_v43, %v1470_v41  ;;  %v468_v62 = vrot.slane %v455_v60, 4  ;;  %v471_v0 = vsel %vm432_vm5, %v455_v60, %v470_v63 }
 0x224   : > { %v1498_v2 = vperm.slane %v471_v0, %v1477_v49 }
 0x225   : > { %v456_v48 = vrot.slane %v451_v46, 4  ;;  %v469_v1 = vsel %vm432_vm5, %v468_v62, %v443_v61  ;;  %v459_v7 = vsel %vm432_vm5, %v451_v46, %v458_v4 }
 0x226   : > { %v1501_v3 = vperm.slane %v469_v1, %v1477_v49  ;;  %v562_v5 = vmul.f32 %v1498_v2, %v1498_v2  ;;  %v486_v8 = vrot.slane %v1498_v2, 4  ;;  %v1511_v10 = vperm.slane %v459_v7, %v1477_v49 }
 0x227   : > { %v457_v50 = vsel %vm432_vm5, %v456_v48, %v439_v47 }
 0x228   : > { %v1481_v51 = vperm.slane %v457_v50, %v1477_v49  ;;  %v560_v6 = vmul.f32 %v1501_v3, %v1501_v3  ;;  %v583_v9 = vsel %vm564_vm6, %v562_v5, 0.0  ;;  %v1515_v12 = vsel %vm432_vm5, 0.0, %v486_v8 }
 0x229   : > { %v558_v13 = vmul.f32 %v1511_v10, %v1511_v10  ;;  %v563_v14 = vmul.f32 %v1515_v12, %v1515_v12  ;;  %v482_v15 = vrot.slane %v1511_v10, 4  ;;  %v484_v21 = vrot.slane %v1501_v3, 4 }
 0x22a   : > { %v480_v52 = vrot.slane %v1481_v51, 4  ;;  %v577_v11 = vsel %vm564_vm6, %v560_v6, 0.0  ;;  %v556_v19 = vmul.f32 %v1481_v51, %v1481_v51 }
 0x22b   : > { %v571_v16 = vsel %vm564_vm6, %v558_v13, 0.0  ;;  %v586_v17 = vsel %vm564_vm6, %v563_v14, 0.0  ;;  %v1525_v18 = vsel %vm432_vm5, 0.0, %v482_v15  ;;  %v1535_v24 = vsel %vm432_vm5, 0.0, %v484_v21 }
 0x22c   : > { %v1485_v53 = vsel %vm432_vm5, 0.0, %v480_v52  ;;  %v559_v20 = vmul.f32 %v1525_v18, %v1525_v18  ;;  %v565_v22 = vsel %vm564_vm6, %v556_v19, 0.0  ;;  %v561_v25 = vmul.f32 %v1535_v24, %v1535_v24 }
 0x22d   : > { %v557_v54 = vmul.f32 %v1485_v53, %v1485_v53 }
 0x22e   : > { %v574_v23 = vsel %vm564_vm6, %v559_v20, 0.0  ;;  %v580_v26 = vsel %vm564_vm6, %v561_v25, 0.0 }
 0x22f   : > { %v568_v55 = vsel %vm564_vm6, %v557_v54, 0.0 }
 0x230   : > { %569 = vadd.xlane.f32.xlu0 %v568_v55 }
 0x249   : > { %584 = vadd.xlane.f32.xlu2 %v583_v9 }
 0x24a   : > { %578 = vadd.xlane.f32.xlu1 %v577_v11 }
 0x251   : > { %572 = vadd.xlane.f32.xlu2 %v571_v16 }
 0x252   : > { %587 = vadd.xlane.f32.xlu1 %v586_v17 }
 0x259   : > { %566 = vadd.xlane.f32.xlu2 %v565_v22 }
 0x25a   : > { %575 = vadd.xlane.f32.xlu1 %v574_v23 }
 0x262   : > { %581 = vadd.xlane.f32.xlu1 %v580_v26 }
 0x272   : > { %v493_v27 = vpop.permute.xlu2 %492 }
 0x273   : > { %v500_v30 = vrot.slane %v493_v27, 4  ;;  %v503_v31 = vsel %vm432_vm5, %v493_v27, %v502_v29 }
 0x274   : > { %v511_v35 = vperm.slane %v503_v31, %v1470_v41 }
 0x275   : > { %v501_v34 = vsel %vm432_vm5, %v500_v30, %v489_v28 }
 0x276   : > { %v507_v37 = vperm.slane %v501_v34, %v1470_v41  ;;  %v538_v42 = vrot.slane %v511_v35, 4 }
 0x278   : > { %v526_v45 = vrot.slane %v507_v37, 4 }
 0x27a   : > { %v491_v33 = vpop.permute.xlu2 %490 }
 0x27b   : > { %v514_v36 = vrot.slane %v491_v33, 4 }
 0x292   : > { %v495_v38 = vpop.permute.xlu1 %494 }
 0x293   : > { %v512_v39 = vrot.slane %v495_v38, 4  ;;  %v515_v40 = vsel %vm432_vm5, %v495_v38, %v514_v36 }
 0x294   : > { %v523_v43 = vperm.slane %v515_v40, %v1470_v41 }
 0x295   : > { %v513_v44 = vsel %vm432_vm5, %v512_v39, %v491_v33 }
 0x296   : > { %v519_v46 = vperm.slane %v513_v44, %v1470_v41  ;;  %v536_v47 = vrot.slane %v523_v43, 4  ;;  %v539_v48 = vsel %vm432_vm5, %v523_v43, %v538_v42 }
 0x297   : > { %v1550_v50 = vperm.slane %v539_v48, %v1477_v49 }
 0x298   : > { %v524_v52 = vrot.slane %v519_v46, 4  ;;  %v537_v54 = vsel %vm432_vm5, %v536_v47, %v511_v35  ;;  %v527_v55 = vsel %vm432_vm5, %v519_v46, %v526_v45 }
 0x299   : > { %v683_v56 = vmul.f32 %v1550_v50, %v1550_v50  ;;  %v1557_v57 = vperm.slane %v527_v55, %v1477_v49  ;;  %v554_v58 = vrot.slane %v1550_v50, 4  ;;  %v1561_v59 = vperm.slane %v537_v54, %v1477_v49 }
 0x29a   : > { %v525_v60 = vsel %vm432_vm5, %v524_v52, %v507_v37 }
 0x29b   : > { %v703_v61 = vsel %vm564_vm6, %v683_v56, 0.0  ;;  %v679_v62 = vmul.f32 %v1557_v57, %v1557_v57  ;;  %v1568_v63 = vsel %vm432_vm5, 0.0, %v554_v58  ;;  %v1571_v0 = vperm.slane %v525_v60, %v1477_v49 }
 0x29c   : > { %704 = vadd.xlane.f32.xlu0 %v703_v61  ;;  %v684_v1 = vmul.f32 %v1568_v63, %v1568_v63  ;;  %v550_v4 = vrot.slane %v1557_v57, 4  ;;  %v552_v5 = vrot.slane %v1561_v59, 4  ;;  %v681_v21 = vmul.f32 %v1561_v59, %v1561_v59 }
 0x29d   : > { %v691_v6 = vsel %vm564_vm6, %v679_v62, 0.0  ;;  %v548_v7 = vrot.slane %v1571_v0, 4  ;;  %v677_v22 = vmul.f32 %v1571_v0, %v1571_v0 }
 0x29e   : > { %692 = vadd.xlane.f32.xlu2 %v691_v6  ;;  %v706_v8 = vsel %vm564_vm6, %v684_v1, 0.0  ;;  %v1581_v9 = vsel %vm432_vm5, 0.0, %v550_v4  ;;  %v1587_v13 = vsel %vm432_vm5, 0.0, %v552_v5  ;;  %v697_v23 = vsel %vm564_vm6, %v681_v21, 0.0 }
 0x29f   : > { %707 = vadd.xlane.f32.xlu1 %v706_v8  ;;  %v1584_v11 = vsel %vm432_vm5, 0.0, %v548_v7  ;;  %v680_v15 = vmul.f32 %v1581_v9, %v1581_v9  ;;  %v682_v17 = vmul.f32 %v1587_v13, %v1587_v13  ;;  %v685_v25 = vsel %vm564_vm6, %v677_v22, 0.0 }
 0x2a0   : > { %v678_v14 = vmul.f32 %v1584_v11, %v1584_v11 }
 0x2a1   : > { %v694_v19 = vsel %vm564_vm6, %v680_v15, 0.0  ;;  %v700_v20 = vsel %vm564_vm6, %v682_v17, 0.0 }
 0x2a2   : > { %v688_v16 = vsel %vm564_vm6, %v678_v14, 0.0 }
 0x2a3   : > { %v570_v26 = vpop.xlane.xlu0 %569 }
 0x2a4   : > { %689 = vadd.xlane.f32.xlu0 %v688_v16  ;;  %v590_v27 = vmax.f32 %v570_v26, 1e-24 }
 0x2a6   : > { %695 = vadd.xlane.f32.xlu2 %v694_v19  ;;  %1268 = vrsqrt.f32 %v590_v27  ;;  %vm613_vm8 = vweird.f32 %v590_v27 }
 0x2a7   : > { %701 = vadd.xlane.f32.xlu1 %v700_v20 }
 0x2ac   : > { %698 = vadd.xlane.f32.xlu0 %v697_v23  ;;  %v1609_v33 = vpop.eup %1268  ;;  %v1651_v23 = vstv %s420_s15 }
 0x2ad   : > { %v608_v39 = vmul.f32 %v1609_v33, %v590_v27  ;;  %vm614_vm7 = vweird.f32 %v1609_v33 }
 0x2ae   : > { %686 = vadd.xlane.f32.xlu2 %v685_v25  ;;  %vm1655_vm9 = vmor %vm613_vm8, %vm614_vm7 }
 0x2af   : > { %v609_v43 = vmul.f32 %v1609_v33, %v608_v39 }
 0x2b1   : > { %v610_v58 = vmul.f32 0.5, %v609_v43 }
 0x2b3   : > { %v611_v5 = vsub.f32 1.5, %v610_v58 }
 0x2b5   : > { %v612_v21 = vmul.f32 %v1609_v33, %v611_v5 }
 0x2b7   : > { %v616_v43 = vsel %vm1655_vm9, %v1609_v33, %v612_v21 }
 0x2bc   : > { %v585_v28 = vpop.xlane.xlu2 %584 }
 0x2bd   : > { %v1604_v29 = vmax.f32 %v585_v28, 1e-24  ;;  %v579_v30 = vpop.xlane.xlu1 %578 }
 0x2be   : > { %v1607_v31 = vmax.f32 %v579_v30, 1e-24 }
 0x2bf   : > { %1270 = vrsqrt.f32 %v1604_v29  ;;  %vm663_vm11 = vweird.f32 %v1604_v29 }
 0x2c0   : > { %1272 = vrsqrt.f32 %v1607_v31  ;;  %vm643_vm8 = vweird.f32 %v1607_v31 }
 0x2c4   : > { %v573_v34 = vpop.xlane.xlu2 %572 }
 0x2c5   : > { %v1612_v35 = vmax.f32 %v573_v34, 1e-24  ;;  %v588_v36 = vpop.xlane.xlu1 %587  ;;  %v1616_v38 = vpop.eup %1270 }
 0x2c6   : > { %v1614_v37 = vmax.f32 %v588_v36, 1e-24  ;;  %v658_v40 = vmul.f32 %v1616_v38, %v1604_v29  ;;  %v1623_v42 = vpop.eup %1272  ;;  %vm664_vm10 = vweird.f32 %v1616_v38 }
 0x2c7   : > { %1274 = vrsqrt.f32 %v1612_v35  ;;  %v638_v54 = vmul.f32 %v1623_v42, %v1607_v31  ;;  %vm644_vm13 = vweird.f32 %v1623_v42  ;;  %vm623_vm14 = vweird.f32 %v1612_v35  ;;  %vm1669_vm0 = vmor %vm663_vm11, %vm664_vm10 }
 0x2c8   : > { %1276 = vrsqrt.f32 %v1614_v37  ;;  %v659_v52 = vmul.f32 %v1616_v38, %v658_v40  ;;  %vm673_vm3 = vweird.f32 %v1614_v37  ;;  %vm1697_vm11 = vmor %vm643_vm8, %vm644_vm13 }
 0x2c9   : > { %v639_v4 = vmul.f32 %v1623_v42, %v638_v54 }
 0x2ca   : > { %v660_v1 = vmul.f32 0.5, %v659_v52 }
 0x2cb   : > { %v640_v17 = vmul.f32 0.5, %v639_v4 }
 0x2cc   : > { %v567_v44 = vpop.xlane.xlu2 %566  ;;  %v661_v16 = vsub.f32 1.5, %v660_v1  ;;  %v799_v1 = vmul.f32 %v1651_v23, %v616_v43 }
 0x2cd   : > { %v1626_v45 = vpop.eup %1274  ;;  %v1628_v46 = vmax.f32 %v567_v44, 1e-24  ;;  %v576_v47 = vpop.xlane.xlu1 %575  ;;  %v641_v39 = vsub.f32 1.5, %v640_v17 }
 0x2ce   : > { %v1630_v48 = vpop.eup %1276  ;;  %v618_v55 = vmul.f32 %v1626_v45, %v1612_v35  ;;  %v592_v56 = vmax.f32 %v576_v47, 1e-24  ;;  %v662_v36 = vmul.f32 %v1616_v38, %v661_v16  ;;  %vm624_vm12 = vweird.f32 %v1626_v45 }
 0x2cf   : > { %v668_v60 = vmul.f32 %v1630_v48, %v1614_v37  ;;  %1278 = vrsqrt.f32 %v1628_v46  ;;  %vm674_vm15 = vweird.f32 %v1630_v48  ;;  %v642_v35 = vmul.f32 %v1623_v42, %v641_v39  ;;  %vm1679_vm2 = vmor %vm623_vm14, %vm624_vm12 }
 0x2d0   : > { %1280 = vrsqrt.f32 %v592_v56  ;;  %v619_v61 = vmul.f32 %v1626_v45, %v618_v55  ;;  %v666_v55 = vsel %vm1669_vm0, %v1616_v38, %v662_v36  ;;  %vm633_vm4 = vweird.f32 %v592_v56  ;;  %vm1684_vm6 = vmor %vm673_vm3, %vm674_vm15 }
 0x2d1   : > { %v669_v62 = vmul.f32 %v1630_v48, %v668_v60  ;;  %vm603_vm9 = vweird.f32 %v1628_v46 }
 0x2d2   : > { %v620_v7 = vmul.f32 0.5, %v619_v61 }
 0x2d3   : > { %v670_v8 = vmul.f32 0.5, %v669_v62 }
 0x2d4   : > { %v621_v26 = vsub.f32 1.5, %v620_v7 }
 0x2d5   : > { %v1643_v6 = vpop.eup %1278  ;;  %v582_v14 = vpop.xlane.xlu1 %581  ;;  %v671_v28 = vsub.f32 1.5, %v670_v8  ;;  %v646_v8 = vsel %vm1697_vm11, %v1623_v42, %v642_v35 }
 0x2d6   : > { %v1281_v15 = vpop.eup %1280  ;;  %v598_v19 = vmul.f32 %v1643_v6, %v1628_v46  ;;  %v1647_v20 = vmax.f32 %v582_v14, 1e-24  ;;  %v622_v52 = vmul.f32 %v1626_v45, %v621_v26  ;;  %vm604_vm7 = vweird.f32 %v1643_v6 }
 0x2d7   : > { %v628_v22 = vmul.f32 %v1281_v15, %v592_v56  ;;  %v672_v33 = vmul.f32 %v1630_v48, %v671_v28  ;;  %vm634_vm1 = vweird.f32 %v1281_v15  ;;  %v804_v46 = vmul.f32 %v1651_v23, %v666_v55  ;;  %vm605_vm12 = vmor %vm603_vm9, %vm604_vm7 }
 0x2d8   : > { %v599_v25 = vmul.f32 %v1643_v6, %v598_v19  ;;  %1282 = vrsqrt.f32 %v1647_v20  ;;  %vm635_vm10 = vmor %vm633_vm4, %vm634_vm1  ;;  %v626_v56 = vsel %vm1679_vm2, %v1626_v45, %v622_v52  ;;  %vm653_vm14 = vweird.f32 %v1647_v20 }
 0x2d9   : > { %v629_v30 = vmul.f32 %v1281_v15, %v628_v22  ;;  %v676_v4 = vsel %vm1684_vm6, %v1630_v48, %v672_v33  ;;  %v800_v45 = vmul.f32 %v1651_v23, %v626_v56  ;;  %v812_v21 = vmul.f32 %v804_v46, %v1498_v2 }
 0x2da   : > { %v600_v40 = vmul.f32 0.5, %v599_v25  ;;  %v805_v17 = vmul.f32 %v1651_v23, %v676_v4  ;;  %v802_v22 = vmul.f32 %v1651_v23, %v646_v8 }
 0x2db   : > { %v630_v27 = vmul.f32 0.5, %v629_v30  ;;  %v826_v30 = vrot.slane %v812_v21, 4 }
 0x2dc   : > { %v601_v44 = vsub.f32 1.5, %v600_v40  ;;  %v813_v28 = vmul.f32 %v805_v17, %v1515_v12  ;;  %v810_v34 = vmul.f32 %v802_v22, %v1501_v3 }
 0x2dd   : > { %v631_v54 = vsub.f32 1.5, %v630_v27 }
 0x2de   : > { %v1283_v29 = vpop.eup %1282  ;;  %v602_v61 = vmul.f32 %v1643_v6, %v601_v44  ;;  %v827_v12 = vsel %vm432_vm5, %v826_v30, %v810_v34 }
 0x2df   : > { %v632_v62 = vmul.f32 %v1281_v15, %v631_v54  ;;  %v648_v38 = vmul.f32 %v1283_v29, %v1647_v20  ;;  %vm654_vm13 = vweird.f32 %v1283_v29  ;;  %v832_v20 = vrot.slane %v813_v28, 4 }
 0x2e0   : > { %v606_v14 = vsel %vm605_vm12, %v1643_v6, %v602_v61  ;;  %v808_v6 = vmul.f32 %v800_v45, %v1511_v10  ;;  %vm655_vm15 = vmor %vm653_vm14, %vm654_vm13  ;;  %v1739_v3 = vperm.slane %v827_v12, %v1470_v41 }
 0x2e1   : > { %v636_v5 = vsel %vm635_vm10, %v1281_v15, %v632_v62  ;;  %v649_v31 = vmul.f32 %v1283_v29, %v648_v38  ;;  %v807_v15 = vmul.f32 %v799_v1, %v1485_v53  ;;  %v798_v25 = vmul.f32 %v1651_v23, %v606_v14 }
 0x2e2   : > { %v801_v7 = vmul.f32 %v1651_v23, %v636_v5  ;;  %v814_v40 = vrot.slane %v808_v6, 4 }
 0x2e3   : > { %v650_v16 = vmul.f32 0.5, %v649_v31  ;;  %v806_v2 = vmul.f32 %v798_v25, %v1481_v51 }
 0x2e4   : > { %v809_v48 = vmul.f32 %v801_v7, %v1525_v18 }
 0x2e5   : > { %v651_v19 = vsub.f32 1.5, %v650_v16  ;;  %v815_v43 = vsel %vm432_vm5, %v814_v40, %v806_v2 }
 0x2e6   : > { %v820_v42 = vrot.slane %v809_v48, 4 }
 0x2e7   : > { %v652_v26 = vmul.f32 %v1283_v29, %v651_v19 }
 0x2e8   : > { %v821_v18 = vsel %vm432_vm5, %v820_v42, %v807_v15 }
 0x2e9   : > { %v656_v53 = vsel %vm655_vm15, %v1283_v29, %v652_v26  ;;  %v1728_v39 = vperm.slane %v821_v18, %v1470_v41 }
 0x2ea   : > { %v803_v36 = vmul.f32 %v1651_v23, %v656_v53  ;;  %v1742_v23 = vperm.slane %v815_v43, %v1470_v41 }
 0x2eb   : > { %v838_v51 = vrot.slane %v1728_v39, 4 }
 0x2ec   : > { %v811_v10 = vmul.f32 %v803_v36, %v1535_v24 }
 0x2ed   : > { %v839_v24 = vsel %vm432_vm5, %v838_v51, %v1742_v23 }
 0x2ee   : > { %v833_v27 = vsel %vm432_vm5, %v832_v20, %v811_v10  ;;  %v1753_v54 = vperm.slane %v839_v24, %v1477_v49 }
 0x2ef   : > { %v1735_v44 = vperm.slane %v833_v27, %v1470_v41 }
 0x2f1   : > { %v850_v47 = vrot.slane %v1735_v44, 4 }
 0x2f3   : > { %v851_v52 = vsel %vm432_vm5, %v850_v47, %v1739_v3 }
 0x2f4   : > { %v1750_v33 = vperm.slane %v851_v52, %v1477_v49 }
 0x2f6   : > { %v862_v29 = vrot.slane %v1750_v33, 4 }
 0x2f8   : > { %v1758_v55 = vsel %vm432_vm5, %v862_v29, %v1753_v54 }
 0x30f   : > { %v705_v35 = vpop.xlane.xlu0 %704 }
 0x310   : > { %v1760_v58 = vmax.f32 %v705_v35, 1e-24 }
 0x311   : > { %v693_v60 = vpop.xlane.xlu2 %692 }
 0x312   : > { %1284 = vrsqrt.f32 %v1760_v58  ;;  %v1763_v61 = vmax.f32 %v693_v60, 1e-24  ;;  %v708_v62 = vpop.xlane.xlu1 %707  ;;  %vm783_vm2 = vweird.f32 %v1760_v58 }
 0x313   : > { %v716_v38 = vmax.f32 %v708_v62, 1e-24 }
 0x314   : > { %1286 = vrsqrt.f32 %v1763_v61 }
 0x315   : > { %1288 = vrsqrt.f32 %v716_v38  ;;  %vm793_vm1 = vweird.f32 %v716_v38 }
 0x317   : > { %v690_v1 = vpop.xlane.xlu0 %689 }
 0x318   : > { %v1766_v37 = vpop.eup %1284  ;;  %v1768_v56 = vmax.f32 %v690_v1, 1e-24 }
 0x319   : > { %v778_v4 = vmul.f32 %v1766_v37, %v1760_v58  ;;  %v696_v5 = vpop.xlane.xlu2 %695  ;;  %vm784_vm4 = vweird.f32 %v1766_v37 }
 0x31a   : > { %v1772_v31 = vpop.eup %1286  ;;  %1290 = vrsqrt.f32 %v1768_v56  ;;  %v712_v46 = vmax.f32 %v696_v5, 1e-24  ;;  %v702_v7 = vpop.xlane.xlu1 %701  ;;  %vm733_vm7 = vweird.f32 %v1768_v56  ;;  %vm1807_vm9 = vmor %vm783_vm2, %vm784_vm4  ;;  %vm743_vm2 = vweird.f32 %v1763_v61 }
 0x31b   : > { %v1289_v8 = vpop.eup %1288  ;;  %v1775_v14 = vmax.f32 %v702_v7, 1e-24  ;;  %v779_v45 = vmul.f32 %v1766_v37, %v778_v4  ;;  %v738_v17 = vmul.f32 %v1772_v31, %v1763_v61  ;;  %vm744_vm14 = vweird.f32 %v1772_v31 }
 0x31c   : > { %v788_v16 = vmul.f32 %v1289_v8, %v716_v38  ;;  %1292 = vrsqrt.f32 %v712_v46  ;;  %vm794_vm0 = vweird.f32 %v1289_v8  ;;  %vm753_vm10 = vweird.f32 %v712_v46 }
 0x31d   : > { %1294 = vrsqrt.f32 %v1775_v14  ;;  %v780_v25 = vmul.f32 0.5, %v779_v45  ;;  %v739_v28 = vmul.f32 %v1772_v31, %v738_v17  ;;  %vm1794_vm3 = vmor %vm793_vm1, %vm794_vm0  ;;  %vm773_vm13 = vweird.f32 %v1775_v14 }
 0x31e   : > { %v789_v48 = vmul.f32 %v1289_v8, %v788_v16 }
 0x31f   : > { %v699_v15 = vpop.xlane.xlu0 %698  ;;  %v781_v20 = vsub.f32 1.5, %v780_v25  ;;  %v740_v43 = vmul.f32 0.5, %v739_v28 }
 0x320   : > { %v1781_v19 = vpop.eup %1290  ;;  %v790_v21 = vmul.f32 0.5, %v789_v48  ;;  %v1783_v22 = vmax.f32 %v699_v15, 1e-24 }
 0x321   : > { %v728_v42 = vmul.f32 %v1781_v19, %v1768_v56  ;;  %v687_v26 = vpop.xlane.xlu2 %686  ;;  %v782_v60 = vmul.f32 %v1766_v37, %v781_v20  ;;  %v741_v1 = vsub.f32 1.5, %v740_v43  ;;  %vm734_vm11 = vweird.f32 %v1781_v19 }
 0x322   : > { %v1293_v6 = vpop.eup %1292  ;;  %v791_v18 = vsub.f32 1.5, %v790_v21  ;;  %1296 = vrsqrt.f32 %v1783_v22  ;;  %v1790_v2 = vmax.f32 %v687_v26, 1e-24  ;;  %vm1827_vm0 = vmor %vm733_vm7, %vm734_vm11  ;;  %vm763_vm4 = vweird.f32 %v1783_v22 }
 0x323   : > { %v1295_v53 = vpop.eup %1294  ;;  %v729_v30 = vmul.f32 %v1781_v19, %v728_v42  ;;  %v748_v34 = vmul.f32 %v1293_v6, %v712_v46  ;;  %vm754_vm6 = vweird.f32 %v1293_v6  ;;  %v786_v58 = vsel %vm1807_vm9, %v1766_v37, %v782_v60 }
 0x324   : > { %v792_v36 = vmul.f32 %v1289_v8, %v791_v18  ;;  %v768_v40 = vmul.f32 %v1295_v53, %v1775_v14  ;;  %1298 = vrsqrt.f32 %v1790_v2  ;;  %vm774_vm8 = vweird.f32 %v1295_v53  ;;  %vm755_vm12 = vmor %vm753_vm10, %vm754_vm6 }
 0x325   : > { %v730_v10 = vmul.f32 0.5, %v729_v30  ;;  %v749_v12 = vmul.f32 %v1293_v6, %v748_v34  ;;  %vm775_vm15 = vmor %vm773_vm13, %vm774_vm8  ;;  %v742_v46 = vmul.f32 %v1772_v31, %v741_v1  ;;  %v896_v28 = vmul.f32 %v786_v58, %v1550_v50 }
 0x326   : > { %v769_v27 = vmul.f32 %v1295_v53, %v768_v40  ;;  %v796_v52 = vsel %vm1794_vm3, %v1289_v8, %v792_v36  ;;  %vm745_vm3 = vmor %vm743_vm2, %vm744_vm14  ;;  %vm723_vm8 = vweird.f32 %v1790_v2  ;;  %vm413_vm10 = vcmask 257024  }
 0x327   : > { %v750_v47 = vmul.f32 0.5, %v749_v12  ;;  %v731_v29 = vsub.f32 1.5, %v730_v10  ;;  %v897_v7 = vmul.f32 %v796_v52, %v1568_v63  ;;  %vm884_vm11 = vcmask 130048  }
 0x328   : > { %v1297_v24 = vpop.eup %1296  ;;  %v770_v35 = vmul.f32 0.5, %v769_v27  ;;  %v840_v27 = vrot.slane %v1742_v23, 4 }
 0x329   : > { %v751_v62 = vsub.f32 1.5, %v750_v47  ;;  %v758_v38 = vmul.f32 %v1297_v24, %v1783_v22  ;;  %v732_v45 = vmul.f32 %v1781_v19, %v731_v29  ;;  %v916_v26 = vrot.slane %v897_v7, 4 }
 0x32a   : > { %v771_v4 = vsub.f32 1.5, %v770_v35  ;;  %v1299_v48 = vpop.eup %1298  ;;  %vm764_vm1 = vweird.f32 %v1297_v24  ;;  %v852_v22 = vrot.slane %v1739_v3, 4  ;;  %v841_v23 = vsel %vm432_vm5, %v1728_v39, %v840_v27 }
 0x32b   : > { %v752_v8 = vmul.f32 %v1293_v6, %v751_v62  ;;  %v759_v16 = vmul.f32 %v1297_v24, %v758_v38  ;;  %v718_v42 = vmul.f32 %v1299_v48, %v1790_v2  ;;  %vm765_vm6 = vmor %vm763_vm4, %vm764_vm1  ;;  %vm724_vm7 = vweird.f32 %v1299_v48 }
 0x32c   : > { %v772_v17 = vmul.f32 %v1295_v53, %v771_v4  ;;  %vm725_vm9 = vmor %vm723_vm8, %vm724_vm7 }
 0x32d   : > { %v756_v15 = vsel %vm755_vm12, %v1293_v6, %v752_v8  ;;  %v760_v63 = vmul.f32 0.5, %v759_v16  ;;  %v719_v18 = vmul.f32 %v1299_v48, %v718_v42  ;;  %vm886_vm12 = vcmask 195584  }
 0x32e   : > { %v893_v21 = vmul.f32 %v756_v15, %v1581_v9  ;;  %v776_v25 = vsel %vm775_vm15, %v1295_v53, %v772_v17  ;;  %v736_v9 = vsel %vm1827_vm0, %v1781_v19, %v732_v45  ;;  %v910_v19 = vrot.slane %v896_v28, 4 }
 0x32f   : > { %v895_v14 = vmul.f32 %v776_v25, %v1587_v13  ;;  %v761_v6 = vsub.f32 1.5, %v760_v63  ;;  %v746_v13 = vsel %vm745_vm3, %v1772_v31, %v742_v46  ;;  %v720_v50 = vmul.f32 0.5, %v719_v18 }
 0x330   : > { %v904_v56 = vrot.slane %v893_v21, 4  ;;  %v891_v61 = vmul.f32 %v736_v9, %v1584_v11  ;;  %v892_v10 = vmul.f32 %v746_v13, %v1557_v57 }
 0x331   : > { %v917_v53 = vsel %vm432_vm5, %v916_v26, %v895_v14  ;;  %v762_v30 = vmul.f32 %v1297_v24, %v761_v6  ;;  %v721_v20 = vsub.f32 1.5, %v720_v50 }
 0x332   : > { %v921_v34 = vperm.slane %v917_v53, %v1470_v41  ;;  %v905_v12 = vsel %vm432_vm5, %v904_v56, %v891_v61 }
 0x333   : > { %v766_v36 = vsel %vm765_vm6, %v1297_v24, %v762_v30  ;;  %v722_v43 = vmul.f32 %v1299_v48, %v721_v20  ;;  %v909_v57 = vperm.slane %v905_v12, %v1470_v41  ;;  %v898_v24 = vrot.slane %v892_v10, 4 }
 0x334   : > { %v894_v40 = vmul.f32 %v766_v36, %v1561_v59  ;;  %v853_v59 = vsel %vm432_vm5, %v1735_v44, %v852_v22  ;;  %v934_v51 = vrot.slane %v921_v34, 4 }
 0x335   : > { %v726_v47 = vsel %vm725_vm9, %v1299_v48, %v722_v43  ;;  %v861_v2 = vperm.slane %v853_v59, %v1477_v49  ;;  %v922_v1 = vrot.slane %v909_v57, 4  ;;  %v864_v48 = vrot.slane %v1753_v54, 4 }
 0x336   : > { %v911_v31 = vsel %vm432_vm5, %v910_v19, %v894_v40  ;;  %v890_v3 = vmul.f32 %v726_v47, %v1571_v0  ;;  %v849_v0 = vperm.slane %v841_v23, %v1477_v49 }
 0x337   : > { %v915_v11 = vperm.slane %v911_v31, %v1470_v41  ;;  %v866_v5 = vrot.slane %v861_v2, 4  ;;  %v865_v21 = vsel %vm432_vm5, %v1750_v33, %v864_v48  ;;  %v408_v33 = vpack.c.bf16 %v1460_v32, %v1460_v32 }
 0x338   : > { %v899_v60 = vsel %vm432_vm5, %v898_v24, %v890_v3  ;;  %v868_v63 = vrot.slane %v849_v0, 4 }
 0x339   : > { %v936_v52 = vrot.slane %v915_v11, 4  ;;  %v935_v29 = vsel %vm432_vm5, %v934_v51, %v915_v11  ;;  %v903_v62 = vperm.slane %v899_v60, %v1470_v41  ;;  %v867_v15 = vsel %vm432_vm5, %v866_v5, %v849_v0 }
 0x33a   : > { %v941_v35 = vperm.slane %v935_v29, %v1477_v49 }
 0x33b   : > { %v937_v44 = vsel %vm432_vm5, %v921_v34, %v936_v52  ;;  %v924_v7 = vrot.slane %v903_v62, 4  ;;  %v923_v8 = vsel %vm432_vm5, %v922_v1, %v903_v62 }
 0x33c   : > { %v945_v38 = vperm.slane %v937_v44, %v1477_v49  ;;  %v946_v4 = vrot.slane %v941_v35, 4  ;;  %v929_v45 = vperm.slane %v923_v8, %v1477_v49 }
 0x33d   : > { %v925_v17 = vsel %vm432_vm5, %v909_v57, %v924_v7 }
 0x33e   : > { %v950_v16 = vrot.slane %v945_v38, 4  ;;  %v933_v39 = vperm.slane %v925_v17, %v1477_v49  ;;  %v948_v41 = vrot.slane %v929_v45, 4  ;;  %v947_v58 = vsel %vm432_vm5, %v946_v4, %v929_v45 }
 0x33f   : > { %v869_v49 = vsel %vm432_vm5, %v861_v2, %v868_v63 }
 0x340   : > { %v951_v46 = vsel %vm432_vm5, %v950_v16, %v933_v39  ;;  %v949_v25 = vsel %vm432_vm5, %v941_v35, %v948_v41  ;;  %v952_v42 = vrot.slane %v933_v39, 4 }
 0x341   : > { %v1247_v26 = vpack.i.bf16 %v951_v46, %v867_v15  ;;  %v1252_v37 = vpack.i.bf16 %v949_v25, %v865_v21 }
 0x342   : > { %v953_v54 = vsel %vm432_vm5, %v945_v38, %v952_v42  ;;  %vm882_vm5 = vcmask 64512  }
 0x343   : > { %1248 = vrot.lane.b32.xlu2 %v1247_v26, %s1347_s16  ;;  %1253 = vrot.lane.b32.xlu0 %v1252_v37, %s1348_s17  ;;  %v1257_v14 = vpack.i.bf16 %v953_v54, %v869_v49  ;;  %s1000_s16 = scalar_lea.vmem (%p1426_p3), %s1929_s7, %s1191_s11 }
 0x345   : > { %1258 = vrot.lane.b32.xlu1 %v1257_v14, %s1349_s18 }
 0x34b   : > { %415 = vrot.lane.b32.xlu2 %v408_v33, %s1350_s19  ;;  %410 = vrot.lane.b32.xlu0 %v408_v33, %s1341_s4 }
 0x39d   : > { %v1249_v6 = vpop.permute.xlu2 %1248 }
 0x39e   : > { %v1251_v32 = vunpack.i.h.bf16 %v1249_v6  ;;  %v1250_v53 = vunpack.i.l.bf16 %v1249_v6 }
 0x3a5   : > { %v416_v28 = vpop.permute.xlu2 %415 }
 0x3a6   : > { %1189 = vst.msk [vmem:[%s1883_s22 + $0x4] sm:$0xf] %vm413_vm10, %v416_v28 }
 0x3ad   : > { %v1019_v31 = vld [vmem:[%s1883_s22 + $0x4] sm:$0xf] (%p1426_p3) }
 0x3ae   : > { %1020 = vst [vmem:[%s1000_s16 + $0x8] sm:$0xf] (%p1426_p3), %v1019_v31 }
 0x3b5   : > { %v1254_v9 = vpop.permute.xlu0 %1253 }
 0x3b6   : > { %v1256_v18 = vunpack.i.h.bf16 %v1254_v9  ;;  %v1255_v56 = vunpack.i.l.bf16 %v1254_v9 }
 0x3b7   : > { %v1259_v30 = vpop.permute.xlu1 %1258 }
 0x3b8   : > { %v883_v13 = vsel %vm882_vm5, %v1758_v55, %v1255_v56  ;;  %v966_v50 = vsel %vm882_vm5, %v947_v58, %v1256_v18  ;;  %v1261_v61 = vunpack.i.h.bf16 %v1259_v30  ;;  %v1260_v34 = vunpack.i.l.bf16 %v1259_v30 }
 0x3b9   : > { %v885_v36 = vsel %vm884_vm11, %v883_v13, %v1250_v53  ;;  %v967_v19 = vsel %vm884_vm11, %v966_v50, %v1251_v32 }
 0x3ba   : > { %v887_v40 = vsel %vm886_vm12, %v885_v36, %v1260_v34  ;;  %v968_v20 = vsel %vm886_vm12, %v967_v19, %v1261_v61 }
 0x3bb   : > { %v888_v10 = vpack.c.bf16 %v887_v40, %v887_v40  ;;  %v969_v12 = vpack.c.bf16 %v968_v20, %v968_v20  ;;  %997 = sbr.rel (!%p1426_p3) target bundleno = 968 (0x3c8), region = 52 }
 0x3bd   : > { %889 = vst.msk [vmem:[%s325_s25] sm:$0xf] %vm413_vm10, %v888_v10  ;;  %v411_v55 = vpop.permute.xlu0 %410 }
 0x3be   : > { %970 = vst.msk [vmem:[%s332_s9] sm:$0xf] %vm413_vm10, %v969_v12 }
 0x3bf   : > { %414 = vst.msk [vmem:[%s1883_s22] sm:$0xf] %vm413_vm10, %v411_v55 }
 0x3c6   : > { %v1017_v22 = vld [vmem:[%s1883_s22] sm:$0xf] }
 0x3c7   : > { %1018 = vst [vmem:[%s1000_s16] sm:$0xf] %v1017_v22 }
 0x3c8 PF: > { %s19_s30 = sadd.s32 1, %s1338_s30   ;;  %s1947_s26 = smov %s1326_s27 }
 0x3c9   : > { %p16_p9 = scmp.ge.s32.totalorder %s19_s30, 4   ;;  %s1948_s27 = smov %s1435_s12 }
 0x3ca   : > { %s1949_s28 = smov %s1334_s29  ;;  %s1950_s29 = smov %s1952_s8 }
 0x3cb   :  { %18 = sbr.rel (!%p16_p9) target bundleno = 5 (0x5), region = 136 }

// kernel: transformer_forward.8
= control target key start
LH: loop header
LB: loop body
LE: loop exit
PB: predicated region body
PF: predicated region fallthrough
CT: control target
= control target key end

     0   :  { %s1024_s30 = smov 0   ;;  %s1026_s10 = smov 0   ;;  %s1127_s0 = inlined_call_operand.vmem [shape: f32[2,8,32], index: 0, kind: input, shape index: {}]   ;;  %s1128_s1 = inlined_call_operand.vmem [shape: f32[1,32], index: 1, kind: input, shape index: {}]   ;;  %s1129_s2 = inlined_call_operand.vmem [shape: f32[1,32], index: 2, kind: input, shape index: {}, may-alias: {2,8}]   ;;  %s1130_s3 = inlined_call_operand.vmem [shape: bf16[32,128], index: 3, kind: input, shape index: {}]   ;;  %s1131_s4 = inlined_call_operand.vmem [shape: bf16[32,128], index: 4, kind: input, shape index: {}]   ;;  %s1132_s5 = inlined_call_operand.vmem [shape: f32[1,128], index: 5, kind: input, shape index: {}, may-alias: {5,6}]   ;;  %s1133_s6 = inlined_call_operand.vmem [shape: f32[1,128], index: 6, kind: input, shape index: {}, may-alias: {5,6}]   ;;  %s1134_s7 = inlined_call_operand.vmem [shape: bf16[128,32], index: 7, kind: input, shape index: {}]   ;;  %s1135_s8 = inlined_call_operand.vmem [shape: f32[1,32], index: 8, kind: input, shape index: {}, may-alias: {2,8}]   ;;  %s1136_s9 = inlined_call_operand.vmem [shape: f32[2,8,32], index: 9, kind: output, shape index: {}]  }
   0x1   :  { %s1028_s11 = smov 0  }
   0x2 LB: > { %s38_s12 = sadd.s32 1, %s966_s10  ;;  %p841_p0 = scmp.ge.s32.totalorder %s970_s11, 1  ;;  %s970_s11 = sphi %s1028_s11, %s19_s11   ;;  %s966_s10 = sphi %s1026_s10, %s1138_s10   ;;  %s962_s30 = sphi %s1024_s30, %s1137_s30  }
   0x3   : > { %p40_p1 = scmp.ge.s32.totalorder %s38_s12, 2  ;;  %p357_p2 = scmp.lt.s32.totalorder %s970_s11, 3 }
   0x5   : > { %s1140_s12 = smov (%p40_p1, %s38_s12), 0  ;;  %p358_p3 = pnand %p841_p0, %p357_p2 }
   0x6   : > { %p416_p4 = scmp.lt.s32.totalorder (!%p358_p3), %s962_s30, 1 }
   0x7   : > { %361 = sbr.rel (%p358_p3) target bundleno = 603 (0x25b), region = 56 }
   0xc   : > { %s1142_s30 = smov (!%p416_p4, %s962_s30), 1  ;;  %vm458_vm0 = vcmask 261120   ;;  %v972_v2 = vmov 32.0   ;;  %v898_v14 = vld [vmem:[%s1130_s3 + $0x8] sm:$0xff]  ;;  %v897_v17 = vld [vmem:[%s1130_s3] sm:$0xff]  ;;  %vm497_vm5 = vcmask 257024  }
   0xd   : > { %s842_s13 = sshll.u32 %s1142_s30, 3  ;;  %940 = vrcp.f32 %v972_v2  ;;  %v900_v15 = vld [vmem:[%s1131_s4 + $0x8] sm:$0xff]  ;;  %531 = vmatpush.bf16.msra.mxu0 %v898_v14  ;;  %v899_v18 = vld [vmem:[%s1131_s4] sm:$0xff]  ;;  %v908_v35 = vld [vmem:[%s1134_s7 + $0x38] sm:$0xff]  ;;  %v973_v48 = vmov 0.0  }
   0xe   : > { %s422_s16 = scalar_lea.vmem %s1127_s0, %s842_s13  ;;  %564 = vmatpush.bf16.msra.mxu1 %v900_v15  ;;  %v935_v27 = vld [vmem:[%s1128_s1] ss:$0 sm:$0xff]  ;;  %658 = vmatpush.bf16.msra.mxu2 %v908_v35  ;;  %v907_v36 = vld [vmem:[%s1134_s7 + $0x30] sm:$0xff]  ;;  %v906_v37 = vld [vmem:[%s1134_s7 + $0x28] sm:$0xff]  ;;  %499 = vst.msk [vmem:[#allocation3] sm:$0xff] %vm458_vm0, %v973_v48  ;;  %s449_s21 = scalar_lea.vmem %s1136_s9, %s842_s13 }
   0xf   : > { %v1050_v0 = vld [vmem:[%s422_s16] sm:$0xff]  ;;  %v904_v39 = vld [vmem:[%s1134_s7 + $0x18] sm:$0xff]  ;;  %v903_v40 = vld [vmem:[%s1134_s7 + $0x10] sm:$0xff] }
  0x10   : > { %v459_v1 = vsel %vm458_vm0, %v1050_v0, 0.0  ;;  %v936_v29 = vld [vmem:[%s1129_s2] ss:$0 sm:$0xff]  ;;  %v902_v41 = vld [vmem:[%s1134_s7 + $0x8] sm:$0xff] }
  0x11   : > { %460 = vadd.xlane.f32.xlu0 %v459_v1  ;;  %532 = vmatpush.bf16.msra.mxu0 %v897_v17  ;;  %v905_v38 = vld [vmem:[%s1134_s7 + $0x20] sm:$0xff] }
  0x12   : > { %565 = vmatpush.bf16.msra.mxu1 %v899_v18  ;;  %659 = vmatpush.bf16.msra.mxu2 %v907_v36  ;;  %v938_v42 = vld [vmem:[%s1133_s6] ss:$0 sm:$0xff] }
  0x13   : > { %v941_v3 = vpop.eup %940  ;;  %v901_v43 = vld [vmem:[%s1134_s7] sm:$0xff] }
  0x14   : > { %v463_v4 = vmul.f32 32.0, %v941_v3  ;;  %vm467_vm1 = vweird.f32 %v941_v3  ;;  %v937_v59 = vld [vmem:[%s1132_s5] ss:$0 sm:$0xff] }
  0x16   : > { %v464_v5 = vsub.f32 1.0, %v463_v4  ;;  %660 = vmatpush.bf16.msra.mxu2 %v906_v37 }
  0x18   : > { %v465_v6 = vmul.f32 %v941_v3, %v464_v5  ;;  %v592_v5 = vld [vmem:[#allocation3] sm:$0xff] }
  0x1a   : > { %v466_v7 = vadd.f32 %v941_v3, %v465_v6  ;;  %661 = vmatpush.bf16.msra.mxu2 %v905_v38 }
  0x1c   : > { %v468_v8 = vsel %vm467_vm1, %v941_v3, %v466_v7 }
  0x1e   : > { %662 = vmatpush.bf16.msra.mxu2 %v904_v39 }
  0x22   : > { %663 = vmatpush.bf16.msra.mxu2 %v903_v40 }
  0x26   : > { %664 = vmatpush.bf16.msra.mxu2 %v902_v41 }
  0x2a   : > { %665 = vmatpush.bf16.msra.mxu2 %v901_v43 }
  0x84   : > { %v461_v9 = vpop.xlane.xlu0 %460 }
  0x85   : > { %v469_v10 = vmul.f32 %v468_v8, %v461_v9  ;;  %v939_v9 = vld [vmem:[%s1135_s8] ss:$0 sm:$0xff] }
  0x87   : > { %v470_v11 = vsub.f32 %v1050_v0, %v469_v10 }
  0x89   : > { %v471_v12 = vmul.f32 %v470_v11, %v470_v11 }
  0x8b   : > { %v472_v13 = vsel %vm458_vm0, %v471_v12, 0.0 }
  0x8c   : > { %473 = vadd.xlane.f32.xlu0 %v472_v13 }
  0xff   : > { %v474_v16 = vpop.xlane.xlu0 %473 }
 0x100   : > { %v475_v19 = vmul.f32 %v474_v16, %v468_v8 }
 0x102   : > { %v476_v20 = vadd.f32 1e-05, %v475_v19 }
 0x104   : > { %942 = vrsqrt.f32 %v476_v20  ;;  %vm483_vm3 = vweird.f32 %v476_v20 }
 0x10a   : > { %v943_v21 = vpop.eup %942 }
 0x10b   : > { %v478_v22 = vmul.f32 %v943_v21, %v476_v20  ;;  %vm484_vm2 = vweird.f32 %v943_v21 }
 0x10c   : > { %vm485_vm4 = vmor %vm483_vm3, %vm484_vm2 }
 0x10d   : > { %v479_v23 = vmul.f32 %v943_v21, %v478_v22 }
 0x10f   : > { %v480_v24 = vmul.f32 0.5, %v479_v23 }
 0x111   : > { %v481_v25 = vsub.f32 1.5, %v480_v24 }
 0x113   : > { %v482_v26 = vmul.f32 %v943_v21, %v481_v25 }
 0x115   : > { %v486_v28 = vsel %vm485_vm4, %v943_v21, %v482_v26 }
 0x116   : > { %v487_v30 = vmul.f32 %v486_v28, %v470_v11 }
 0x118   : > { %v491_v31 = vmul.f32 %v935_v27, %v487_v30 }
 0x11a   : > { %v495_v32 = vadd.f32 %v936_v29, %v491_v31 }
 0x11c   : > { %v496_v33 = vpack.c.bf16 %v495_v32, %v495_v32 }
 0x11e   : > { %498 = vst.msk [vmem:[#allocation2] sm:$0xf] %vm497_vm5, %v496_v33 }
 0x125   : > { %v500_v34 = vld [vmem:[#allocation2] sm:$0xf] }
 0x126   : > { %852 = vmatmul.msk.bf16.vlgmr.msra.gmra.mxu0 %vm458_vm0, %v500_v34  ;;  %861 = vmatmul.msk.bf16.vlgmr.msra.gmra.mxu1 %vm458_vm0, %v500_v34 }
 0x1a3   : > { %v534_v44 = vpop.f32.mrf.mxu0  ;;  %v567_v45 = vpop.f32.mrf.mxu1 }
 0x1a4   : > { %v568_v46 = vadd.f32 %v938_v42, %v567_v45  ;;  %v535_v1 = vadd.f32 %v937_v59, %v534_v44 }
 0x1a6   : > { %v862_v47 = vmul.f32 -1.442695, %v568_v46 }
 0x1a8   : > { %944 = vpow2.f32 %v862_v47 }
 0x1ab   : > { %v536_v49 = vpop.f32.mrf.mxu0  ;;  %v569_v50 = vpop.f32.mrf.mxu1 }
 0x1ae   : > { %v945_v51 = vpop.eup %944 }
 0x1af   : > { %v574_v52 = vadd.f32 1.0, %v945_v51 }
 0x1b1   : > { %946 = vrcp.f32 %v574_v52  ;;  %v586_v56 = vand.u32 2147483648, %v574_v52  ;;  %v584_v58 = vand.u32 2147483647, %v574_v52  ;;  %vm580_vm7 = vweird.f32 %v574_v52 }
 0x1b3   : > { %v587_v61 = vor.u32 1.1754944e-38, %v586_v56  ;;  %vm585_vm9 = vcmp.eq.f32.partialorder %v584_v58, 8.507059e+37 }
 0x1b7   : > { %v947_v53 = vpop.eup %946 }
 0x1b8   : > { %v576_v54 = vmul.f32 %v947_v53, %v574_v52  ;;  %vm581_vm6 = vweird.f32 %v947_v53 }
 0x1b9   : > { %vm582_vm8 = vmor %vm580_vm7, %vm581_vm6 }
 0x1ba   : > { %v577_v55 = vsub.f32 1.0, %v576_v54 }
 0x1bc   : > { %v578_v57 = vmul.f32 %v947_v53, %v577_v55 }
 0x1be   : > { %v579_v60 = vadd.f32 %v947_v53, %v578_v57 }
 0x1c0   : > { %v583_v62 = vsel %vm582_vm8, %v947_v53, %v579_v60 }
 0x1c1   : > { %v588_v63 = vsel %vm585_vm9, %v587_v61, %v583_v62 }
 0x1c2   : > { %v590_v2 = vmul.f32 %v588_v63, %v568_v46 }
 0x1c4   : > { %v591_v3 = vmul.f32 %v590_v2, %v535_v1 }
 0x1c6   : > { %v593_v4 = vpack.c.bf16 %v591_v3, %v591_v3 }
 0x1c8   : > { %666 = vmatmul.bf16.vlgmr.msra.gmra.mxu2 %v593_v4 }
 0x24b   : > { %v667_v6 = vpop.f32.mrf.mxu2 }
 0x24c   : > { %v671_v7 = vadd.f32 %v667_v6, %v592_v5 }
 0x24e   : > { %672 = vst.msk [vmem:[#allocation3] sm:$0xff] %vm458_vm0, %v671_v7 }
 0x253   : > { %v669_v8 = vpop.f32.mrf.mxu2 }
 0x255   : > { %v677_v10 = vld [vmem:[#allocation3] sm:$0xff] }
 0x256   : > { %v678_v11 = vadd.f32 %v677_v10, %v1050_v0 }
 0x258   : > { %v683_v12 = vadd.f32 %v939_v9, %v678_v11 }
 0x25a   : > { %684 = vst.msk [vmem:[%s449_s21] sm:$0xff] %vm458_vm0, %v683_v12 }
 0x25b PF: > { %s19_s11 = sadd.s32 1, %s970_s11   ;;  %s1137_s30 = smov %s966_s10 }
 0x25c   : > { %p16_p5 = scmp.ge.s32.totalorder %s19_s11, 4   ;;  %s1138_s10 = smov %s1140_s12 }
 0x25e   :  { %18 = sbr.rel (!%p16_p5) target bundleno = 2 (0x2), region = 109 }

// kernel: transformer_forward.11
= control target key start
LH: loop header
LB: loop body
LE: loop exit
PB: predicated region body
PF: predicated region fallthrough
CT: control target
= control target key end

     0   :  { %14 = vsyncpa [#allocation5], 0  ;;  %s1280_s0 = inlined_call_operand.vmem [shape: f32[2,8,32], index: 0, kind: input, shape index: {}]   ;;  %s1281_s1 = inlined_call_operand.vmem [shape: f32[1,32], index: 1, kind: input, shape index: {}]   ;;  %s1282_s2 = inlined_call_operand.vmem [shape: f32[1,32], index: 2, kind: input, shape index: {}, may-alias: {2,8}]   ;;  %s1283_s3 = inlined_call_operand.vmem [shape: bf16[32,128], index: 3, kind: input, shape index: {}]   ;;  %s1284_s4 = inlined_call_operand.vmem [shape: bf16[32,128], index: 4, kind: input, shape index: {}]   ;;  %s1285_s5 = inlined_call_operand.vmem [shape: f32[1,128], index: 5, kind: input, shape index: {}, may-alias: {5,6}]   ;;  %s1286_s6 = inlined_call_operand.vmem [shape: f32[1,128], index: 6, kind: input, shape index: {}, may-alias: {5,6}]   ;;  %s1287_s7 = inlined_call_operand.vmem [shape: bf16[128,32], index: 7, kind: input, shape index: {}]   ;;  %s1288_s8 = inlined_call_operand.vmem [shape: f32[1,32], index: 8, kind: input, shape index: {}, may-alias: {2,8}]   ;;  %s1289_s9 = inlined_call_operand.hbm [shape: f32[2,8,32], index: 9, kind: output, shape index: {}]  }
   0x1   :  { %16 = vsyncpa [#allocation5 + $0x1], 0  ;;  %s1120_s30 = smov 0   ;;  %s1122_s10 = smov 0  }
   0x2   :  { %s1124_s11 = smov 0   ;;  %s1126_s12 = smov 0  }
   0x3   :  { %s1128_s13 = smov 0   ;;  %s1130_s14 = smov 0  }
   0x4 LB: > { %s839_s15 = sadd.s32 4294967295, %s1066_s14   ;;  %s840_s16 = sadd.s32 4294967294, %s1066_s14   ;;  %s1066_s14 = sphi %s1130_s14, %s22_s14   ;;  %s1062_s13 = sphi %s1128_s13, %s1296_s13   ;;  %s1058_s12 = sphi %s1126_s12, %s1295_s12   ;;  %s1054_s11 = sphi %s1124_s11, %s1294_s11   ;;  %s1050_s10 = sphi %s1122_s10, %s1293_s10   ;;  %s1046_s30 = sphi %s1120_s30, %s1292_s30  }
   0x5   : > { %s41_s17 = sadd.s32 1, %s1062_s13  ;;  %s271_s18 = sadd.s32 1, %s1054_s11 }
   0x6   : > { %p43_p0 = scmp.ge.s32.totalorder %s41_s17, 2  ;;  %p281_p1 = scmp.ne.s32.totalorder %s1054_s11, %s1050_s10 }
   0x7   : > { %p282_p2 = scmp.eq.s32.totalorder %s839_s15, 1  ;;  %p287_p3 = scmp.ne.s32.totalorder %s1050_s10, %s1046_s30 }
   0x8   : > { %s1298_s17 = smov (%p43_p0, %s41_s17), 0  ;;  %p288_p5 = scmp.eq.s32.totalorder %s840_s16, 1 }
   0x9   : > { %p1160_p4 = por %p282_p2, %p281_p1  ;;  %s266_s20 = ssub.s32 %s1062_s13, %s1298_s17 }
   0xa   : > { %p848_p6 = scmp.ge.s32.totalorder %s1066_s14, 1  ;;  %p269_p7 = scmp.eq.s32.totalorder %s266_s20, 0 }
   0xb   : > { %p1167_p8 = por %p288_p5, %p287_p3  ;;  %p360_p9 = scmp.lt.s32.totalorder %s1066_s14, 3 }
   0xc   : > { %s1173_s22 = scalar_select %p269_p7, %s1054_s11, %s271_s18  }
   0xd   : > { %p361_p10 = pnand %p848_p6, %p360_p9 }
   0xe   : > { %p417_p11 = scmp.lt.s32.totalorder (!%p361_p10), %s1058_s12, 1  ;;  %s903_s29 = sshll.u32 (!%p361_p10), %s1058_s12, 3 }
   0xf   : > { %364 = sbr.rel (%p361_p10) target bundleno = 614 (0x266), region = 56  ;;  %s691_s18 = scalar_lea.hbm (!%p361_p10), %s1289_s9, %s903_s29 }
  0x10   : > { %s695_s26 = sshll.u32 (!%p361_p10), %s691_s18, 4  ;;  %s696_s26 = int_to_ptr.hbm [resolvable:$true] %s695_s26 }
  0x11   : > { %s1002_s15 = sshra.s32 (!%p361_p10), %s696_s26, 4  ;;  %s1003_s15 = int_to_ptr.hbm [resolvable:$true] %s1002_s15 }
  0x12   : > { %s1004_s29 = scalar_lea.hbm (!%p361_p10), %s1003_s15, 8  ;;  %p1009_p1 = scmp.lt.s32.totalorder (!%p361_p10), %s1003_s15, %s1289_s9 }
  0x13   : > { %p1005_p12 = scmp.ne.s32.totalorder (!%p361_p10), %s1003_s15, %s1004_s29 }
  0x14   : > { %s418_s23 = scalar_select %p417_p11, %s1058_s12, 1  ;;  %vm452_vm0 = vcmask 261120   ;;  %v1068_v2 = vmov 32.0   ;;  %v907_v14 = vld [vmem:[%s1283_s3 + $0x8] sm:$0xff]  ;;  %v906_v17 = vld [vmem:[%s1283_s3] sm:$0xff]  ;;  %vm491_vm5 = vcmask 257024  }
  0x15   : > { %980 = vrcp.f32 %v1068_v2  ;;  %v909_v15 = vld [vmem:[%s1284_s4 + $0x8] sm:$0xff]  ;;  %525 = vmatpush.bf16.msra.mxu0 %v907_v14  ;;  %v908_v18 = vld [vmem:[%s1284_s4] sm:$0xff]  ;;  %v917_v35 = vld [vmem:[%s1287_s7 + $0x38] sm:$0xff]  ;;  %v1069_v48 = vmov 0.0   ;;  %p1006_p13 = pnand %p1005_p12, %p1160_p4 }
  0x16   : > { %s850_s24 = sshll.u32 %s418_s23, 3  ;;  %558 = vmatpush.bf16.msra.mxu1 %v909_v15  ;;  %v975_v27 = vld [vmem:[%s1281_s1] ss:$0 sm:$0xff]  ;;  %652 = vmatpush.bf16.msra.mxu2 %v917_v35  ;;  %v916_v36 = vld [vmem:[%s1287_s7 + $0x30] sm:$0xff]  ;;  %v915_v37 = vld [vmem:[%s1287_s7 + $0x28] sm:$0xff]  ;;  %493 = vst.msk [vmem:[#allocation3] sm:$0xff] %vm452_vm0, %v1069_v48 }
  0x17   : > { %s423_s27 = scalar_lea.vmem %s1280_s0, %s850_s24  ;;  %v976_v29 = vld [vmem:[%s1282_s2] ss:$0 sm:$0xff]  ;;  %v913_v39 = vld [vmem:[%s1287_s7 + $0x18] sm:$0xff]  ;;  %v912_v40 = vld [vmem:[%s1287_s7 + $0x10] sm:$0xff]  ;;  %p1007_p0 = pneg %p1006_p13 }
  0x18   : > { %v1180_v0 = vld [vmem:[%s423_s27] sm:$0xff]  ;;  %v911_v41 = vld [vmem:[%s1287_s7 + $0x8] sm:$0xff]  ;;  %s414_s27 = sand.u32 1, %s1050_s10  }
  0x19   : > { %v453_v1 = vsel %vm452_vm0, %v1180_v0, 0.0  ;;  %526 = vmatpush.bf16.msra.mxu0 %v906_v17  ;;  %v914_v38 = vld [vmem:[%s1287_s7 + $0x20] sm:$0xff]  ;;  %s849_s28 = sshll.u32 %s414_s27, 3  ;;  %s680_s12 = scalar_lea.sflag [#allocation5], %s414_s27 }
  0x1a   : > { %454 = vadd.xlane.f32.xlu0 %v453_v1  ;;  %559 = vmatpush.bf16.msra.mxu1 %v908_v18  ;;  %v978_v42 = vld [vmem:[%s1286_s6] ss:$0 sm:$0xff]  ;;  %s416_s24 = scalar_lea.vmem [#allocation4], %s849_s28  ;;  %s1008_s28 = scalar_lea.hbm %s1289_s9, 16 }
  0x1b   : > { %v981_v3 = vpop.eup %980  ;;  %653 = vmatpush.bf16.msra.mxu2 %v916_v36  ;;  %v910_v43 = vld [vmem:[%s1287_s7] sm:$0xff]  ;;  %s693_s25 = sshll.u32 %s416_s24, 4  ;;  %p1010_p2 = scmp.lt.s32.totalorder %s1008_s28, %s1004_s29  ;;  %s694_s25 = int_to_ptr.vmem [resolvable:$true] %s693_s25 }
  0x1c   : > { %v457_v4 = vmul.f32 32.0, %v981_v3  ;;  %vm461_vm1 = vweird.f32 %v981_v3  ;;  %v977_v59 = vld [vmem:[%s1285_s5] ss:$0 sm:$0xff] }
  0x1d   : > { %p1011_p3 = por %p1010_p2, %p1009_p1 }
  0x1e   : > { %v458_v5 = vsub.f32 1.0, %v457_v4 }
  0x1f   : > { %654 = vmatpush.bf16.msra.mxu2 %v915_v37  ;;  %p1012_p5 = pnand %p1011_p3, %p1007_p0 }
  0x20   : > { %v459_v6 = vmul.f32 %v981_v3, %v458_v5  ;;  %v586_v5 = vld [vmem:[#allocation3] sm:$0xff] }
  0x22   : > { %v460_v7 = vadd.f32 %v981_v3, %v459_v6 }
  0x23   : > { %655 = vmatpush.bf16.msra.mxu2 %v914_v38 }
  0x24   : > { %v462_v8 = vsel %vm461_vm1, %v981_v3, %v460_v7 }
  0x27   : > { %656 = vmatpush.bf16.msra.mxu2 %v913_v39 }
  0x2b   : > { %657 = vmatpush.bf16.msra.mxu2 %v912_v40 }
  0x2f   : > { %658 = vmatpush.bf16.msra.mxu2 %v911_v41 }
  0x33   : > { %659 = vmatpush.bf16.msra.mxu2 %v910_v43 }
  0x8d   : > { %v455_v9 = vpop.xlane.xlu0 %454 }
  0x8e   : > { %v463_v10 = vmul.f32 %v462_v8, %v455_v9  ;;  %v979_v9 = vld [vmem:[%s1288_s8] ss:$0 sm:$0xff] }
  0x90   : > { %v464_v11 = vsub.f32 %v1180_v0, %v463_v10 }
  0x92   : > { %v465_v12 = vmul.f32 %v464_v11, %v464_v11 }
  0x94   : > { %v466_v13 = vsel %vm452_vm0, %v465_v12, 0.0 }
  0x95   : > { %467 = vadd.xlane.f32.xlu0 %v466_v13 }
 0x108   : > { %v468_v16 = vpop.xlane.xlu0 %467 }
 0x109   : > { %v469_v19 = vmul.f32 %v468_v16, %v462_v8 }
 0x10b   : > { %v470_v20 = vadd.f32 1e-05, %v469_v19 }
 0x10d   : > { %982 = vrsqrt.f32 %v470_v20  ;;  %vm477_vm3 = vweird.f32 %v470_v20 }
 0x113   : > { %v983_v21 = vpop.eup %982 }
 0x114   : > { %v472_v22 = vmul.f32 %v983_v21, %v470_v20  ;;  %vm478_vm2 = vweird.f32 %v983_v21 }
 0x115   : > { %vm479_vm4 = vmor %vm477_vm3, %vm478_vm2 }
 0x116   : > { %v473_v23 = vmul.f32 %v983_v21, %v472_v22 }
 0x118   : > { %v474_v24 = vmul.f32 0.5, %v473_v23 }
 0x11a   : > { %v475_v25 = vsub.f32 1.5, %v474_v24 }
 0x11c   : > { %v476_v26 = vmul.f32 %v983_v21, %v475_v25 }
 0x11e   : > { %v480_v28 = vsel %vm479_vm4, %v983_v21, %v476_v26 }
 0x11f   : > { %v481_v30 = vmul.f32 %v480_v28, %v464_v11 }
 0x121   : > { %v485_v31 = vmul.f32 %v975_v27, %v481_v30 }
 0x123   : > { %v489_v32 = vadd.f32 %v976_v29, %v485_v31 }
 0x125   : > { %v490_v33 = vpack.c.bf16 %v489_v32, %v489_v32 }
 0x127   : > { %492 = vst.msk [vmem:[#allocation2] sm:$0xf] %vm491_vm5, %v490_v33 }
 0x12e   : > { %v494_v34 = vld [vmem:[#allocation2] sm:$0xf] }
 0x12f   : > { %859 = vmatmul.msk.bf16.vlgmr.msra.gmra.mxu0 %vm452_vm0, %v494_v34  ;;  %868 = vmatmul.msk.bf16.vlgmr.msra.gmra.mxu1 %vm452_vm0, %v494_v34 }
 0x1ac   : > { %v528_v44 = vpop.f32.mrf.mxu0  ;;  %v561_v45 = vpop.f32.mrf.mxu1 }
 0x1ad   : > { %v562_v46 = vadd.f32 %v978_v42, %v561_v45  ;;  %v529_v1 = vadd.f32 %v977_v59, %v528_v44 }
 0x1af   : > { %v869_v47 = vmul.f32 -1.442695, %v562_v46 }
 0x1b1   : > { %984 = vpow2.f32 %v869_v47 }
 0x1b4   : > { %v530_v49 = vpop.f32.mrf.mxu0  ;;  %v563_v50 = vpop.f32.mrf.mxu1 }
 0x1b7   : > { %v985_v51 = vpop.eup %984 }
 0x1b8   : > { %v568_v52 = vadd.f32 1.0, %v985_v51 }
 0x1ba   : > { %986 = vrcp.f32 %v568_v52  ;;  %v580_v56 = vand.u32 2147483648, %v568_v52  ;;  %v578_v58 = vand.u32 2147483647, %v568_v52  ;;  %vm574_vm7 = vweird.f32 %v568_v52 }
 0x1bc   : > { %v581_v61 = vor.u32 1.1754944e-38, %v580_v56  ;;  %vm579_vm9 = vcmp.eq.f32.partialorder %v578_v58, 8.507059e+37 }
 0x1c0   : > { %v987_v53 = vpop.eup %986 }
 0x1c1   : > { %v570_v54 = vmul.f32 %v987_v53, %v568_v52  ;;  %vm575_vm6 = vweird.f32 %v987_v53 }
 0x1c2   : > { %vm576_vm8 = vmor %vm574_vm7, %vm575_vm6 }
 0x1c3   : > { %v571_v55 = vsub.f32 1.0, %v570_v54 }
 0x1c5   : > { %v572_v57 = vmul.f32 %v987_v53, %v571_v55 }
 0x1c7   : > { %v573_v60 = vadd.f32 %v987_v53, %v572_v57 }
 0x1c9   : > { %v577_v62 = vsel %vm576_vm8, %v987_v53, %v573_v60 }
 0x1ca   : > { %v582_v63 = vsel %vm579_vm9, %v581_v61, %v577_v62 }
 0x1cb   : > { %v584_v2 = vmul.f32 %v582_v63, %v562_v46 }
 0x1cd   : > { %v585_v3 = vmul.f32 %v584_v2, %v529_v1 }
 0x1cf   : > { %v587_v4 = vpack.c.bf16 %v585_v3, %v585_v3 }
 0x1d1   : > { %660 = vmatmul.bf16.vlgmr.msra.gmra.mxu2 %v587_v4 }
 0x254   : > { %v661_v6 = vpop.f32.mrf.mxu2 }
 0x255   : > { %v665_v7 = vadd.f32 %v661_v6, %v586_v5 }
 0x257   : > { %666 = vst.msk [vmem:[#allocation3] sm:$0xff] %vm452_vm0, %v665_v7 }
 0x25c   : > { %v663_v8 = vpop.f32.mrf.mxu2 }
 0x25e   : > { %v671_v10 = vld [vmem:[#allocation3] sm:$0xff] }
 0x25f   : > { %v672_v11 = vadd.f32 %v671_v10, %v1180_v0 }
 0x261   : > { %v677_v12 = vadd.f32 %v979_v9, %v672_v11 }
 0x263   : > { %678 = vst.msk [vmem:[%s416_s24] sm:$0xff] %vm452_vm0, %v677_v12 }
 0x264   : > { %1015 = shalt.err (!%p1012_p5)
}
 0x265   : > { %918 = dma.vmem_to_hbm [thread:$0]  (%p1160_p4), %s694_s25, 128, %s696_s26, %s680_s12  }
 0x266 PF: > { %p924_p6 = scmp.ge.s32.totalorder %s1066_s14, 2  ;;  %s707_s27 = sand.u32 1, %s1046_s30  }
 0x267   : > { %s708_s24 = scalar_lea.sflag [#allocation5], %s707_s27 }
 0x268   : > { %p921_p7 = pnand %p924_p6, %p1167_p8 }
 0x26a   : > { %p922_p9 = pneg %p921_p7 }
 0x26c   : > { %1041 = dma.done.wait (%p922_p9), %s708_s24, 128  }
 0x26d   : > { %1043 = vsyncadd (%p922_p9), %s708_s24, 4294967168  ;;  %s22_s14 = sadd.s32 1, %s1066_s14   ;;  %s1292_s30 = smov %s1050_s10 }
 0x26e   : > { %p19_p10 = scmp.ge.s32.totalorder %s22_s14, 4   ;;  %s1293_s10 = smov %s1054_s11 }
 0x26f   : > { %s1294_s11 = smov %s1173_s22  ;;  %s1295_s12 = smov %s1062_s13 }
 0x270   : > { %s1296_s13 = smov %s1298_s17  ;;  %21 = sbr.rel (!%p19_p10) target bundleno = 4 (0x4), region = 114 }
 0x275   :  { %714 = vsyncpa [#allocation5], 1 }
 0x276   :  { %716 = vsyncpa [#allocation5 + $0x1], 1 }

</bundles_post_ra>
